<compile_context>
chip_gen: v6e
topology: v6e:2x2x1
jax: 0.10.0
libtpu: 0.0.40
codegen_flags: <defaults>
</compile_context>

<pallas_src>
import jax
import jax.numpy as jnp
from jax.experimental import pallas as pl
from jax.experimental.pallas import tpu as pltpu

EPS = 1e-9   # CBN2D.eps in the PyTorch module is explicitly 1e-09.


# ----------------------------------------------------------------------------
# Fused ResSeq kernel (one batch element per grid step)
# ----------------------------------------------------------------------------
def _make_resseq_kernel(HWp, WP, C, n_blocks, padr):
    C3 = 3 * C
    bf16 = jnp.bfloat16

    def kernel(x_ref, coef_ref, pm_ref, w1_ref, w3_ref, out_ref,
               res_ref, ypad_ref):
        # Zero only the border rows of the shift scratch (the interior is fully
        # overwritten every block).  Done every grid step so each core's
        # private scratch is valid under the "parallel" (megacore) split.
        zb = jnp.zeros((padr, C), jnp.float32)
        ypad_ref[0:padr, :] = zb
        ypad_ref[padr + HWp:2 * padr + HWp, :] = zb

        pm = pm_ref[...]            # (HWp,1): 1.0 on real columns, 0.0 on the
                                    # two pad columns of every image row
        x = x_ref[0]                # (HWp, C) one image, W padded 14 -> 16
        zrows = jnp.zeros((WP, C3), bf16)

        for blk in range(n_blocks):
            c1b = coef_ref[0, blk, 0:1, :]
            s1 = coef_ref[0, blk, 1:2, :]
            t1 = coef_ref[0, blk, 2:3, :]
            s2 = coef_ref[0, blk, 3:4, :]
            t2 = coef_ref[0, blk, 4:5, :]

            # 1x1 conv + bias + ReLU: one whole-image matmul (bf16 operands).
            res = jnp.dot(x.astype(bf16), w1_ref[blk],
                          preferred_element_type=jnp.float32)
            res = jnp.maximum(res + c1b, 0.0)
            res_ref[...] = res      # park residual; frees vregs for conv3

            # CBN1 + ReLU; zero the pad columns so they provide the horizontal
            # zero padding of the 3x3 conv (no per-tap masks needed).
            y = jnp.maximum(res * s1 + t1, 0.0) * pm
            ypad_ref[padr:padr + HWp, :] = y

            # im2col over the 3 horizontal taps -> (HWp, 3C) bf16.
            yl = ypad_ref[padr - 1:padr - 1 + HWp, :]   # [r] = y[r-1]
            yr = ypad_ref[padr + 1:padr + 1 + HWp, :]   # [r] = y[r+1]
            ycat = jnp.concatenate(
                [yl.astype(bf16), y.astype(bf16), yr.astype(bf16)], axis=1)

            # 3x3 conv = 3 matmuls with K=3C over +-WP row shifts of ycat.
            # WP=16 equals the bf16 sublane packing, so the shifts are plain
            # vreg-aligned register concats with a zero block.
            acc = jnp.dot(ycat, w3_ref[blk, 1],
                          preferred_element_type=jnp.float32)
            down = jnp.concatenate([zrows, ycat[:HWp - WP]], axis=0)  # y[r-WP]
            acc = acc + jnp.dot(down, w3_ref[blk, 0],
                                preferred_element_type=jnp.float32)
            up = jnp.concatenate([ycat[WP:], zrows], axis=0)          # y[r+WP]
            acc = acc + jnp.dot(up, w3_ref[blk, 2],
                                preferred_element_type=jnp.float32)

            # CBN2 (conv3 bias folded into t2) + residual add + ReLU.
            x = jnp.maximum(acc * s2 + t2 + res_ref[...], 0.0)

        # MaxPool2d(14) + squeeze == max over the real spatial positions.
        # x >= 0 after ReLU, so zeroing the pad columns cannot raise the max.
        out_ref[0] = jnp.max(x * pm, axis=0, keepdims=True)

    return kernel


def res_seq_forward(att_feat_nchw, prev_hidden, params):
    x = jnp.transpose(att_feat_nchw, (0, 2, 3, 1)).astype(jnp.float32)  # NHWC
    B, H, W, C = x.shape
    n_blocks = len(params)
    WP = 16                      # pad W 14 -> 16 (needs >= one zero column)
    assert W < WP
    HWp = H * WP
    PADR = 8                     # zero border rows around the y scratch

    # ---- activations: pad W and flatten to (B, H*WP, C) --------------------
    x_flat = jnp.pad(x, ((0, 0), (0, 0), (0, WP - W), (0, 0))).reshape(B, HWp, C)

    # column mask: 1.0 where the flat row is a real pixel (w < W)
    pm = (jnp.arange(HWp) % WP < W).astype(jnp.float32).reshape(HWp, 1)

    # ---- per-(batch, block) coefficients, computed in plain XLA ------------
    # alpha_beta MLPs depend only on prev_hidden -> hoisted out of the kernel;
    # CBN affine and conv3 bias folded in:
    #   CBN(v) = v*scale + shift, scale = (gamma+1)/sqrt(var+eps),
    #   shift1 = beta1 - miu1*scale1, shift2 = beta2 + (conv3_b - miu2)*scale2
    hid = prev_hidden.astype(jnp.float32)

    def mlp(h, w1, b1, w2, b2):
        return jnp.maximum(h @ w1 + b1, 0.0) @ w2 + b2

    coef_blocks, w1_blocks, w3_blocks = [], [], []
    for p in params:
        g1 = mlp(hid, p['ab1_w1'], p['ab1_b1'], p['ab1_w2'], p['ab1_b2'])
        g2 = mlp(hid, p['ab2_w1'], p['ab2_b1'], p['ab2_w2'], p['ab2_b2'])
        inv1 = 1.0 / jnp.sqrt(p['bn1_var'] + EPS)
        inv2 = 1.0 / jnp.sqrt(p['bn2_var'] + EPS)
        s1 = (g1[:, :C] + 1.0) * inv1
        t1 = g1[:, C:] - p['bn1_miu'] * s1
        s2 = (g2[:, :C] + 1.0) * inv2
        t2 = g2[:, C:] + (p['conv3_b'] - p['bn2_miu']) * s2
        c1b = jnp.broadcast_to(p['conv1_b'], (B, C))
        coef_blocks.append(jnp.stack([c1b, s1, t1, s2, t2], axis=1))  # (B,5,C)
        w1_blocks.append(p['conv1_w'])
        # conv3 HWIO (3,3,C,C) -> (ky, kx*Cin, Cout); row order matches the
        # [dx=-1 | dx=0 | dx=+1] lane order of the im2col concat in the kernel.
        w3_blocks.append(p['conv3_w'].reshape(3, 3 * C, C))

    coef = jnp.stack(coef_blocks, axis=1).astype(jnp.float32)    # (B, NB, 5, C)
    w1 = jnp.stack(w1_blocks, axis=0).astype(jnp.bfloat16)       # (NB, C, C)
    w3 = jnp.stack(w3_blocks, axis=0).astype(jnp.bfloat16)       # (NB, 3, 3C, C)

    kernel = _make_resseq_kernel(HWp, WP, C, n_blocks, PADR)
    out = pl.pallas_call(
        kernel,
        out_shape=jax.ShapeDtypeStruct((B, 1, C), jnp.float32),
        grid=(B,),
        in_specs=[
            pl.BlockSpec((1, HWp, C), lambda b: (b, 0, 0)),              # image b
            pl.BlockSpec((1, n_blocks, 5, C), lambda b: (b, 0, 0, 0)),   # coefs b
            pl.BlockSpec((HWp, 1), lambda b: (0, 0)),                    # col mask
            pl.BlockSpec((n_blocks, C, C), lambda b: (0, 0, 0)),         # conv1 w
            pl.BlockSpec((n_blocks, 3, 3 * C, C), lambda b: (0, 0, 0, 0)),  # conv3 w
        ],
        out_specs=pl.BlockSpec((1, 1, C), lambda b: (b, 0, 0)),
        scratch_shapes=[
            pltpu.VMEM((HWp, C), jnp.float32),              # parked residual
            pltpu.VMEM((2 * PADR + HWp, C), jnp.float32),   # padded y (+-1 shifts)
        ],
        compiler_params=pltpu.CompilerParams(
            dimension_semantics=("parallel",)),   # v7x: one image per core
    )(x_flat, coef, pm, w1, w3)
    return out.reshape(B, C)


# ----------------------------------------------------------------------------
# Pure-JAX reference (verification only; exact f32 semantics of the module)
# ----------------------------------------------------------------------------
def ref_forward(att_feat_nchw, prev_hidden, params):
    x = jnp.transpose(att_feat_nchw, (0, 2, 3, 1)).astype(jnp.float32)
    for p in params:
        C = p['conv1_w'].shape[0]

        def mlp(h, w1, b1, w2, b2):
            return jnp.maximum(h @ w1 + b1, 0.0) @ w2 + b2

        g1 = mlp(prev_hidden, p['ab1_w1'], p['ab1_b1'], p['ab1_w2'], p['ab1_b2'])
        g2 = mlp(prev_hidden, p['ab2_w1'], p['ab2_b1'], p['ab2_w2'], p['ab2_b2'])

        def cbn(v, gatta, miu, var):
            gamma = gatta[:, None, None, :C]
            beta = gatta[:, None, None, C:]
            return (v - miu) / jnp.sqrt(var + EPS) * (gamma + 1.0) + beta

        res = jnp.maximum(
            jnp.einsum('bhwc,cd->bhwd', x, p['conv1_w']) + p['conv1_b'], 0.0)
        y = jnp.maximum(cbn(res, g1, p['bn1_miu'], p['bn1_var']), 0.0)
        z = jax.lax.conv_general_dilated(
            y, p['conv3_w'], (1, 1), 'SAME',
            dimension_numbers=('NHWC', 'HWIO', 'NHWC')) + p['conv3_b']
        z = cbn(z, g2, p['bn2_miu'], p['bn2_var'])
        x = jnp.maximum(z + res, 0.0)
    return jnp.max(x, axis=(1, 2))


# ----------------------------------------------------------------------------
# Deterministic parameter init
# ----------------------------------------------------------------------------
def init_params(key, C, n_blocks):
    params = []
    for _ in range(n_blocks):
        key, *ks = jax.random.split(key, 13)
        r = lambda k, shape: 0.1 * jax.random.normal(k, shape, jnp.float32)
        params.append(dict(
            conv1_w=r(ks[0], (C, C)),          # (Cin, Cout)
            conv1_b=r(ks[1], (C,)),
            conv3_w=r(ks[2], (3, 3, C, C)),    # HWIO
            conv3_b=r(ks[3], (C,)),
            bn1_miu=jnp.zeros((C,), jnp.float32),
            bn1_var=jnp.ones((C,), jnp.float32),
            bn2_miu=jnp.zeros((C,), jnp.float32),
            bn2_var=jnp.ones((C,), jnp.float32),
            ab1_w1=r(ks[4], (C, C)), ab1_b1=r(ks[5], (C,)),
            ab1_w2=r(ks[6], (C, 2 * C)), ab1_b2=r(ks[7], (2 * C,)),
            ab2_w1=r(ks[8], (C, C)), ab2_b1=r(ks[9], (C,)),
            ab2_w2=r(ks[10], (C, 2 * C)), ab2_b2=r(ks[11], (2 * C,)),
        ))
    return params


if __name__ == "__main__":
    # opt.rnn_size = 32, opt.resblock_num = 2, 14x14 attention map (MaxPool2d(14))
    B, C, S, NBLK = 2, 32, 14, 2
    key = jax.random.PRNGKey(0)
    k1, k2, k3 = jax.random.split(key, 3)
    att_feat = jax.random.normal(k1, (B, C, S, S), jnp.float32)    # NCHW input
    prev_hidden = jax.random.normal(k2, (B, C), jnp.float32)
    params = init_params(k3, C, NBLK)

    out = jax.block_until_ready(res_seq_forward(att_feat, prev_hidden, params))
    assert out.shape == (B, C), out.shape

    ref = jax.block_until_ready(ref_forward(att_feat, prev_hidden, params))
    # Tolerance accommodates bf16 matmul operands (elementwise math stays f32).
    if not jnp.allclose(out, ref, atol=5e-2, rtol=5e-2):
        raise AssertionError(
            f"mismatch vs reference, max abs diff = {jnp.max(jnp.abs(out - ref))}")

    print("KERNEL_OK")
</pallas_src>

<mosaic_0001>
module attributes {stable_mosaic.version = 11 : i64} {
  func.func @kernel(%arg0: i32, %arg1: memref<1x224x32xf32, #tpu.memory_space<vmem>>, %arg2: memref<1x2x5x32xf32, #tpu.memory_space<vmem>>, %arg3: memref<224x1xf32, #tpu.memory_space<vmem>>, %arg4: memref<2x32x32xbf16, #tpu.memory_space<vmem>>, %arg5: memref<2x3x96x32xbf16, #tpu.memory_space<vmem>>, %arg6: memref<1x1x32xf32, #tpu.memory_space<vmem>>, %arg7: memref<224x32xf32, #tpu.memory_space<vmem>>, %arg8: memref<240x32xf32, #tpu.memory_space<vmem>>) attributes {dimension_semantics = [#tpu.dimension_semantics<parallel>], iteration_bounds = array<i64: 2>, scalar_prefetch = 0 : i64, scratch_operands = 2 : i64, tpu.core_type = #tpu.core_type<tc>, window_params = [{transform_indices = @transform_0, window_bounds = array<i64: 1, 224, 32>}, {transform_indices = @transform_1, window_bounds = array<i64: 1, 2, 5, 32>}, {pipeline_mode = #tpu.pipeline_mode<synchronous>, transform_indices = @transform_2, window_bounds = array<i64: 224, 1>}, {pipeline_mode = #tpu.pipeline_mode<synchronous>, transform_indices = @transform_3, window_bounds = array<i64: 2, 32, 32>}, {pipeline_mode = #tpu.pipeline_mode<synchronous>, transform_indices = @transform_4, window_bounds = array<i64: 2, 3, 96, 32>}, {transform_indices = @transform_5, window_bounds = array<i64: 1, 1, 32>}]} {
    %cst = arith.constant 0.000000e+00 : f32
    %0 = vector.broadcast %cst : f32 to vector<8x32xf32>
    %c0 = arith.constant 0 : index
    %c0_0 = arith.constant 0 : index
    %1 = vector.load %arg8[%c0, %c0_0] : memref<240x32xf32, #tpu.memory_space<vmem>>, vector<8x32xf32>
    tpu.vector_store %arg8[%c0, %c0_0], %0 {strides = array<i32>} : memref<240x32xf32, #tpu.memory_space<vmem>>, vector<8x32xf32>,
    %c232 = arith.constant 232 : index
    %c0_1 = arith.constant 0 : index
    %2 = vector.load %arg8[%c232, %c0_1] : memref<240x32xf32, #tpu.memory_space<vmem>>, vector<8x32xf32>
    tpu.vector_store %arg8[%c232, %c0_1], %0 {strides = array<i32>} : memref<240x32xf32, #tpu.memory_space<vmem>>, vector<8x32xf32>,
    %c0_2 = arith.constant 0 : index
    %c0_3 = arith.constant 0 : index
    %3 = vector.load %arg3[%c0_2, %c0_3] : memref<224x1xf32, #tpu.memory_space<vmem>>, vector<224x1xf32>
    %c0_4 = arith.constant 0 : index
    %c0_5 = arith.constant 0 : index
    %c0_6 = arith.constant 0 : index
    %4 = vector.load %arg1[%c0_4, %c0_5, %c0_6] : memref<1x224x32xf32, #tpu.memory_space<vmem>>, vector<1x224x32xf32>
    %5 = vector.shape_cast %4 : vector<1x224x32xf32> to vector<224x32xf32>
    %cst_7 = arith.constant 0.000000e+00 : bf16
    %6 = vector.broadcast %cst_7 : bf16 to vector<16x96xbf16>
    %c0_8 = arith.constant 0 : index
    %c0_9 = arith.constant 0 : index
    %c0_10 = arith.constant 0 : index
    %c0_11 = arith.constant 0 : index
    %7 = vector.load %arg2[%c0_8, %c0_9, %c0_10, %c0_11] : memref<1x2x5x32xf32, #tpu.memory_space<vmem>>, vector<1x1x1x32xf32>
    %8 = vector.shape_cast %7 : vector<1x1x1x32xf32> to vector<1x32xf32>
    %c0_12 = arith.constant 0 : index
    %c0_13 = arith.constant 0 : index
    %c1 = arith.constant 1 : index
    %c0_14 = arith.constant 0 : index
    %9 = vector.load %arg2[%c0_12, %c0_13, %c1, %c0_14] : memref<1x2x5x32xf32, #tpu.memory_space<vmem>>, vector<1x1x1x32xf32>
    %10 = vector.shape_cast %9 : vector<1x1x1x32xf32> to vector<1x32xf32>
    %c0_15 = arith.constant 0 : index
    %c0_16 = arith.constant 0 : index
    %c2 = arith.constant 2 : index
    %c0_17 = arith.constant 0 : index
    %11 = vector.load %arg2[%c0_15, %c0_16, %c2, %c0_17] : memref<1x2x5x32xf32, #tpu.memory_space<vmem>>, vector<1x1x1x32xf32>
    %12 = vector.shape_cast %11 : vector<1x1x1x32xf32> to vector<1x32xf32>
    %c0_18 = arith.constant 0 : index
    %c0_19 = arith.constant 0 : index
    %c3 = arith.constant 3 : index
    %c0_20 = arith.constant 0 : index
    %13 = vector.load %arg2[%c0_18, %c0_19, %c3, %c0_20] : memref<1x2x5x32xf32, #tpu.memory_space<vmem>>, vector<1x1x1x32xf32>
    %14 = vector.shape_cast %13 : vector<1x1x1x32xf32> to vector<1x32xf32>
    %c0_21 = arith.constant 0 : index
    %c0_22 = arith.constant 0 : index
    %c4 = arith.constant 4 : index
    %c0_23 = arith.constant 0 : index
    %15 = vector.load %arg2[%c0_21, %c0_22, %c4, %c0_23] : memref<1x2x5x32xf32, #tpu.memory_space<vmem>>, vector<1x1x1x32xf32>
    %16 = vector.shape_cast %15 : vector<1x1x1x32xf32> to vector<1x32xf32>
    %17 = arith.truncf %5 : vector<224x32xf32> to vector<224x32xbf16>
    %c0_24 = arith.constant 0 : index
    %c0_25 = arith.constant 0 : index
    %c0_26 = arith.constant 0 : index
    %18 = vector.load %arg4[%c0_24, %c0_25, %c0_26] : memref<2x32x32xbf16, #tpu.memory_space<vmem>>, vector<1x32x32xbf16>
    %19 = vector.shape_cast %18 : vector<1x32x32xbf16> to vector<32x32xbf16>
    %cst_27 = arith.constant dense<0.000000e+00> : vector<224x32xf32>
    %20 = tpu.matmul %17, %19, %cst_27 {dimension_numbers = #tpu.dot_dimension_numbers<[1], [0], [0], [1], [0, 0, 1, 1], [], []>} : vector<224x32xbf16>, vector<32x32xbf16>, vector<224x32xf32> -> vector<224x32xf32>
    %21 = vector.broadcast %8 : vector<1x32xf32> to vector<224x32xf32>
    %22 = arith.addf %20, %21 : vector<224x32xf32>
    %cst_28 = arith.constant 0.000000e+00 : f32
    %23 = vector.broadcast %cst_28 : f32 to vector<224x32xf32>
    %24 = arith.maximumf %22, %23 : vector<224x32xf32>
    %c0_29 = arith.constant 0 : index
    %c0_30 = arith.constant 0 : index
    %25 = vector.load %arg7[%c0_29, %c0_30] : memref<224x32xf32, #tpu.memory_space<vmem>>, vector<224x32xf32>
    tpu.vector_store %arg7[%c0_29, %c0_30], %24 {strides = array<i32>} : memref<224x32xf32, #tpu.memory_space<vmem>>, vector<224x32xf32>,
    %26 = vector.broadcast %10 : vector<1x32xf32> to vector<224x32xf32>
    %27 = arith.mulf %24, %26 : vector<224x32xf32>
    %28 = vector.broadcast %12 : vector<1x32xf32> to vector<224x32xf32>
    %29 = arith.addf %27, %28 : vector<224x32xf32>
    %cst_31 = arith.constant 0.000000e+00 : f32
    %30 = vector.broadcast %cst_31 : f32 to vector<224x32xf32>
    %31 = arith.maximumf %29, %30 : vector<224x32xf32>
    %32 = vector.broadcast %3 : vector<224x1xf32> to vector<224x32xf32>
    %33 = arith.mulf %31, %32 : vector<224x32xf32>
    %c8 = arith.constant 8 : index
    %c0_32 = arith.constant 0 : index
    %34 = vector.load %arg8[%c8, %c0_32] : memref<240x32xf32, #tpu.memory_space<vmem>>, vector<224x32xf32>
    tpu.vector_store %arg8[%c8, %c0_32], %33 {strides = array<i32>} : memref<240x32xf32, #tpu.memory_space<vmem>>, vector<224x32xf32>,
    %c7 = arith.constant 7 : index
    %c0_33 = arith.constant 0 : index
    %35 = vector.load %arg8[%c7, %c0_33] : memref<240x32xf32, #tpu.memory_space<vmem>>, vector<224x32xf32>
    %c9 = arith.constant 9 : index
    %c0_34 = arith.constant 0 : index
    %36 = vector.load %arg8[%c9, %c0_34] : memref<240x32xf32, #tpu.memory_space<vmem>>, vector<224x32xf32>
    %37 = arith.truncf %35 : vector<224x32xf32> to vector<224x32xbf16>
    %38 = arith.truncf %33 : vector<224x32xf32> to vector<224x32xbf16>
    %39 = arith.truncf %36 : vector<224x32xf32> to vector<224x32xbf16>
    %40 = tpu.concatenate %37, %38, %39 in 1 : vector<224x32xbf16>, vector<224x32xbf16>, vector<224x32xbf16> -> vector<224x96xbf16>
    %c0_35 = arith.constant 0 : index
    %c1_36 = arith.constant 1 : index
    %c0_37 = arith.constant 0 : index
    %c0_38 = arith.constant 0 : index
    %41 = vector.load %arg5[%c0_35, %c1_36, %c0_37, %c0_38] : memref<2x3x96x32xbf16, #tpu.memory_space<vmem>>, vector<1x1x96x32xbf16>
    %42 = vector.shape_cast %41 : vector<1x1x96x32xbf16> to vector<96x32xbf16>
    %cst_39 = arith.constant dense<0.000000e+00> : vector<224x32xf32>
    %43 = tpu.matmul %40, %42, %cst_39 {dimension_numbers = #tpu.dot_dimension_numbers<[1], [0], [0], [1], [0, 0, 1, 1], [], []>} : vector<224x96xbf16>, vector<96x32xbf16>, vector<224x32xf32> -> vector<224x32xf32>
    %44 = vector.extract_strided_slice %40 {offsets = [0, 0], sizes = [208, 96], strides = [1, 1]} : vector<224x96xbf16> to vector<208x96xbf16>
    %45 = tpu.concatenate %6, %44 in 0 : vector<16x96xbf16>, vector<208x96xbf16> -> vector<224x96xbf16>
    %c0_40 = arith.constant 0 : index
    %c0_41 = arith.constant 0 : index
    %c0_42 = arith.constant 0 : index
    %c0_43 = arith.constant 0 : index
    %46 = vector.load %arg5[%c0_40, %c0_41, %c0_42, %c0_43] : memref<2x3x96x32xbf16, #tpu.memory_space<vmem>>, vector<1x1x96x32xbf16>
    %47 = vector.shape_cast %46 : vector<1x1x96x32xbf16> to vector<96x32xbf16>
    %cst_44 = arith.constant dense<0.000000e+00> : vector<224x32xf32>
    %48 = tpu.matmul %45, %47, %cst_44 {dimension_numbers = #tpu.dot_dimension_numbers<[1], [0], [0], [1], [0, 0, 1, 1], [], []>} : vector<224x96xbf16>, vector<96x32xbf16>, vector<224x32xf32> -> vector<224x32xf32>
    %49 = arith.addf %43, %48 : vector<224x32xf32>
    %50 = vector.extract_strided_slice %40 {offsets = [16, 0], sizes = [208, 96], strides = [1, 1]} : vector<224x96xbf16> to vector<208x96xbf16>
    %51 = tpu.concatenate %50, %6 in 0 : vector<208x96xbf16>, vector<16x96xbf16> -> vector<224x96xbf16>
    %c0_45 = arith.constant 0 : index
    %c2_46 = arith.constant 2 : index
    %c0_47 = arith.constant 0 : index
    %c0_48 = arith.constant 0 : index
    %52 = vector.load %arg5[%c0_45, %c2_46, %c0_47, %c0_48] : memref<2x3x96x32xbf16, #tpu.memory_space<vmem>>, vector<1x1x96x32xbf16>
    %53 = vector.shape_cast %52 : vector<1x1x96x32xbf16> to vector<96x32xbf16>
    %cst_49 = arith.constant dense<0.000000e+00> : vector<224x32xf32>
    %54 = tpu.matmul %51, %53, %cst_49 {dimension_numbers = #tpu.dot_dimension_numbers<[1], [0], [0], [1], [0, 0, 1, 1], [], []>} : vector<224x96xbf16>, vector<96x32xbf16>, vector<224x32xf32> -> vector<224x32xf32>
    %55 = arith.addf %49, %54 : vector<224x32xf32>
    %56 = vector.broadcast %14 : vector<1x32xf32> to vector<224x32xf32>
    %57 = arith.mulf %55, %56 : vector<224x32xf32>
    %58 = vector.broadcast %16 : vector<1x32xf32> to vector<224x32xf32>
    %59 = arith.addf %57, %58 : vector<224x32xf32>
    %c0_50 = arith.constant 0 : index
    %c0_51 = arith.constant 0 : index
    %60 = vector.load %arg7[%c0_50, %c0_51] : memref<224x32xf32, #tpu.memory_space<vmem>>, vector<224x32xf32>
    %61 = arith.addf %59, %60 : vector<224x32xf32>
    %cst_52 = arith.constant 0.000000e+00 : f32
    %62 = vector.broadcast %cst_52 : f32 to vector<224x32xf32>
    %63 = arith.maximumf %61, %62 : vector<224x32xf32>
    %c0_53 = arith.constant 0 : index
    %c1_54 = arith.constant 1 : index
    %c0_55 = arith.constant 0 : index
    %c0_56 = arith.constant 0 : index
    %64 = vector.load %arg2[%c0_53, %c1_54, %c0_55, %c0_56] : memref<1x2x5x32xf32, #tpu.memory_space<vmem>>, vector<1x1x1x32xf32>
    %65 = vector.shape_cast %64 : vector<1x1x1x32xf32> to vector<1x32xf32>
    %c0_57 = arith.constant 0 : index
    %c1_58 = arith.constant 1 : index
    %c1_59 = arith.constant 1 : index
    %c0_60 = arith.constant 0 : index
    %66 = vector.load %arg2[%c0_57, %c1_58, %c1_59, %c0_60] : memref<1x2x5x32xf32, #tpu.memory_space<vmem>>, vector<1x1x1x32xf32>
    %67 = vector.shape_cast %66 : vector<1x1x1x32xf32> to vector<1x32xf32>
    %c0_61 = arith.constant 0 : index
    %c1_62 = arith.constant 1 : index
    %c2_63 = arith.constant 2 : index
    %c0_64 = arith.constant 0 : index
    %68 = vector.load %arg2[%c0_61, %c1_62, %c2_63, %c0_64] : memref<1x2x5x32xf32, #tpu.memory_space<vmem>>, vector<1x1x1x32xf32>
    %69 = vector.shape_cast %68 : vector<1x1x1x32xf32> to vector<1x32xf32>
    %c0_65 = arith.constant 0 : index
    %c1_66 = arith.constant 1 : index
    %c3_67 = arith.constant 3 : index
    %c0_68 = arith.constant 0 : index
    %70 = vector.load %arg2[%c0_65, %c1_66, %c3_67, %c0_68] : memref<1x2x5x32xf32, #tpu.memory_space<vmem>>, vector<1x1x1x32xf32>
    %71 = vector.shape_cast %70 : vector<1x1x1x32xf32> to vector<1x32xf32>
    %c0_69 = arith.constant 0 : index
    %c1_70 = arith.constant 1 : index
    %c4_71 = arith.constant 4 : index
    %c0_72 = arith.constant 0 : index
    %72 = vector.load %arg2[%c0_69, %c1_70, %c4_71, %c0_72] : memref<1x2x5x32xf32, #tpu.memory_space<vmem>>, vector<1x1x1x32xf32>
    %73 = vector.shape_cast %72 : vector<1x1x1x32xf32> to vector<1x32xf32>
    %74 = arith.truncf %63 : vector<224x32xf32> to vector<224x32xbf16>
    %c1_73 = arith.constant 1 : index
    %c0_74 = arith.constant 0 : index
    %c0_75 = arith.constant 0 : index
    %75 = vector.load %arg4[%c1_73, %c0_74, %c0_75] : memref<2x32x32xbf16, #tpu.memory_space<vmem>>, vector<1x32x32xbf16>
    %76 = vector.shape_cast %75 : vector<1x32x32xbf16> to vector<32x32xbf16>
    %cst_76 = arith.constant dense<0.000000e+00> : vector<224x32xf32>
    %77 = tpu.matmul %74, %76, %cst_76 {dimension_numbers = #tpu.dot_dimension_numbers<[1], [0], [0], [1], [0, 0, 1, 1], [], []>} : vector<224x32xbf16>, vector<32x32xbf16>, vector<224x32xf32> -> vector<224x32xf32>
    %78 = vector.broadcast %65 : vector<1x32xf32> to vector<224x32xf32>
    %79 = arith.addf %77, %78 : vector<224x32xf32>
    %cst_77 = arith.constant 0.000000e+00 : f32
    %80 = vector.broadcast %cst_77 : f32 to vector<224x32xf32>
    %81 = arith.maximumf %79, %80 : vector<224x32xf32>
    %c0_78 = arith.constant 0 : index
    %c0_79 = arith.constant 0 : index
    %82 = vector.load %arg7[%c0_78, %c0_79] : memref<224x32xf32, #tpu.memory_space<vmem>>, vector<224x32xf32>
    tpu.vector_store %arg7[%c0_78, %c0_79], %81 {strides = array<i32>} : memref<224x32xf32, #tpu.memory_space<vmem>>, vector<224x32xf32>,
    %83 = vector.broadcast %67 : vector<1x32xf32> to vector<224x32xf32>
    %84 = arith.mulf %81, %83 : vector<224x32xf32>
    %85 = vector.broadcast %69 : vector<1x32xf32> to vector<224x32xf32>
    %86 = arith.addf %84, %85 : vector<224x32xf32>
    %cst_80 = arith.constant 0.000000e+00 : f32
    %87 = vector.broadcast %cst_80 : f32 to vector<224x32xf32>
    %88 = arith.maximumf %86, %87 : vector<224x32xf32>
    %89 = vector.broadcast %3 : vector<224x1xf32> to vector<224x32xf32>
    %90 = arith.mulf %88, %89 : vector<224x32xf32>
    %c8_81 = arith.constant 8 : index
    %c0_82 = arith.constant 0 : index
    %91 = vector.load %arg8[%c8_81, %c0_82] : memref<240x32xf32, #tpu.memory_space<vmem>>, vector<224x32xf32>
    tpu.vector_store %arg8[%c8_81, %c0_82], %90 {strides = array<i32>} : memref<240x32xf32, #tpu.memory_space<vmem>>, vector<224x32xf32>,
    %c7_83 = arith.constant 7 : index
    %c0_84 = arith.constant 0 : index
    %92 = vector.load %arg8[%c7_83, %c0_84] : memref<240x32xf32, #tpu.memory_space<vmem>>, vector<224x32xf32>
    %c9_85 = arith.constant 9 : index
    %c0_86 = arith.constant 0 : index
    %93 = vector.load %arg8[%c9_85, %c0_86] : memref<240x32xf32, #tpu.memory_space<vmem>>, vector<224x32xf32>
    %94 = arith.truncf %92 : vector<224x32xf32> to vector<224x32xbf16>
    %95 = arith.truncf %90 : vector<224x32xf32> to vector<224x32xbf16>
    %96 = arith.truncf %93 : vector<224x32xf32> to vector<224x32xbf16>
    %97 = tpu.concatenate %94, %95, %96 in 1 : vector<224x32xbf16>, vector<224x32xbf16>, vector<224x32xbf16> -> vector<224x96xbf16>
    %c1_87 = arith.constant 1 : index
    %c1_88 = arith.constant 1 : index
    %c0_89 = arith.constant 0 : index
    %c0_90 = arith.constant 0 : index
    %98 = vector.load %arg5[%c1_87, %c1_88, %c0_89, %c0_90] : memref<2x3x96x32xbf16, #tpu.memory_space<vmem>>, vector<1x1x96x32xbf16>
    %99 = vector.shape_cast %98 : vector<1x1x96x32xbf16> to vector<96x32xbf16>
    %cst_91 = arith.constant dense<0.000000e+00> : vector<224x32xf32>
    %100 = tpu.matmul %97, %99, %cst_91 {dimension_numbers = #tpu.dot_dimension_numbers<[1], [0], [0], [1], [0, 0, 1, 1], [], []>} : vector<224x96xbf16>, vector<96x32xbf16>, vector<224x32xf32> -> vector<224x32xf32>
    %101 = vector.extract_strided_slice %97 {offsets = [0, 0], sizes = [208, 96], strides = [1, 1]} : vector<224x96xbf16> to vector<208x96xbf16>
    %102 = tpu.concatenate %6, %101 in 0 : vector<16x96xbf16>, vector<208x96xbf16> -> vector<224x96xbf16>
    %c1_92 = arith.constant 1 : index
    %c0_93 = arith.constant 0 : index
    %c0_94 = arith.constant 0 : index
    %c0_95 = arith.constant 0 : index
    %103 = vector.load %arg5[%c1_92, %c0_93, %c0_94, %c0_95] : memref<2x3x96x32xbf16, #tpu.memory_space<vmem>>, vector<1x1x96x32xbf16>
    %104 = vector.shape_cast %103 : vector<1x1x96x32xbf16> to vector<96x32xbf16>
    %cst_96 = arith.constant dense<0.000000e+00> : vector<224x32xf32>
    %105 = tpu.matmul %102, %104, %cst_96 {dimension_numbers = #tpu.dot_dimension_numbers<[1], [0], [0], [1], [0, 0, 1, 1], [], []>} : vector<224x96xbf16>, vector<96x32xbf16>, vector<224x32xf32> -> vector<224x32xf32>
    %106 = arith.addf %100, %105 : vector<224x32xf32>
    %107 = vector.extract_strided_slice %97 {offsets = [16, 0], sizes = [208, 96], strides = [1, 1]} : vector<224x96xbf16> to vector<208x96xbf16>
    %108 = tpu.concatenate %107, %6 in 0 : vector<208x96xbf16>, vector<16x96xbf16> -> vector<224x96xbf16>
    %c1_97 = arith.constant 1 : index
    %c2_98 = arith.constant 2 : index
    %c0_99 = arith.constant 0 : index
    %c0_100 = arith.constant 0 : index
    %109 = vector.load %arg5[%c1_97, %c2_98, %c0_99, %c0_100] : memref<2x3x96x32xbf16, #tpu.memory_space<vmem>>, vector<1x1x96x32xbf16>
    %110 = vector.shape_cast %109 : vector<1x1x96x32xbf16> to vector<96x32xbf16>
    %cst_101 = arith.constant dense<0.000000e+00> : vector<224x32xf32>
    %111 = tpu.matmul %108, %110, %cst_101 {dimension_numbers = #tpu.dot_dimension_numbers<[1], [0], [0], [1], [0, 0, 1, 1], [], []>} : vector<224x96xbf16>, vector<96x32xbf16>, vector<224x32xf32> -> vector<224x32xf32>
    %112 = arith.addf %106, %111 : vector<224x32xf32>
    %113 = vector.broadcast %71 : vector<1x32xf32> to vector<224x32xf32>
    %114 = arith.mulf %112, %113 : vector<224x32xf32>
    %115 = vector.broadcast %73 : vector<1x32xf32> to vector<224x32xf32>
    %116 = arith.addf %114, %115 : vector<224x32xf32>
    %c0_102 = arith.constant 0 : index
    %c0_103 = arith.constant 0 : index
    %117 = vector.load %arg7[%c0_102, %c0_103] : memref<224x32xf32, #tpu.memory_space<vmem>>, vector<224x32xf32>
    %118 = arith.addf %116, %117 : vector<224x32xf32>
    %cst_104 = arith.constant 0.000000e+00 : f32
    %119 = vector.broadcast %cst_104 : f32 to vector<224x32xf32>
    %120 = arith.maximumf %118, %119 : vector<224x32xf32>
    %121 = vector.broadcast %3 : vector<224x1xf32> to vector<224x32xf32>
    %122 = arith.mulf %120, %121 : vector<224x32xf32>
    %cst_105 = arith.constant dense<0xFF800000> : vector<32xf32>
    %123 = vector.multi_reduction <maximumf>, %122, %cst_105 [0] : vector<224x32xf32> to vector<32xf32>
    %124 = vector.shape_cast %123 : vector<32xf32> to vector<1x32xf32>
    %c0_106 = arith.constant 0 : index
    %c0_107 = arith.constant 0 : index
    %c0_108 = arith.constant 0 : index
    %125 = vector.load %arg6[%c0_106, %c0_107, %c0_108] : memref<1x1x32xf32, #tpu.memory_space<vmem>>, vector<1x1x32xf32>
    %126 = vector.shape_cast %125 : vector<1x1x32xf32> to vector<1x32xf32>
    %127 = vector.shape_cast %124 : vector<1x32xf32> to vector<1x1x32xf32>
    tpu.vector_store %arg6[%c0_106, %c0_107, %c0_108], %127 {strides = array<i32>} : memref<1x1x32xf32, #tpu.memory_space<vmem>>, vector<1x1x32xf32>,
    return
  }
  func.func @transform_0(%arg0: i32) -> (i32, i32, i32) {
    %c0_i32 = arith.constant 0 : i32
    %c0_i32_0 = arith.constant 0 : i32
    %c0_i32_1 = arith.constant 0 : i32
    return %arg0, %c0_i32, %c0_i32_0 : i32, i32, i32
  }
  func.func @transform_1(%arg0: i32) -> (i32, i32, i32, i32) {
    %c0_i32 = arith.constant 0 : i32
    %c0_i32_0 = arith.constant 0 : i32
    %c0_i32_1 = arith.constant 0 : i32
    %c0_i32_2 = arith.constant 0 : i32
    return %arg0, %c0_i32, %c0_i32_0, %c0_i32_1 : i32, i32, i32, i32
  }
  func.func @transform_2(%arg0: i32) -> (i32, i32) {
    %c0_i32 = arith.constant 0 : i32
    %c0_i32_0 = arith.constant 0 : i32
    %c0_i32_1 = arith.constant 0 : i32
    return %c0_i32, %c0_i32_0 : i32, i32
  }
  func.func @transform_3(%arg0: i32) -> (i32, i32, i32) {
    %c0_i32 = arith.constant 0 : i32
    %c0_i32_0 = arith.constant 0 : i32
    %c0_i32_1 = arith.constant 0 : i32
    %c0_i32_2 = arith.constant 0 : i32
    return %c0_i32, %c0_i32_0, %c0_i32_1 : i32, i32, i32
  }
  func.func @transform_4(%arg0: i32) -> (i32, i32, i32, i32) {
    %c0_i32 = arith.constant 0 : i32
    %c0_i32_0 = arith.constant 0 : i32
    %c0_i32_1 = arith.constant 0 : i32
    %c0_i32_2 = arith.constant 0 : i32
    %c0_i32_3 = arith.constant 0 : i32
    return %c0_i32, %c0_i32_0, %c0_i32_1, %c0_i32_2 : i32, i32, i32, i32
  }
  func.func @transform_5(%arg0: i32) -> (i32, i32, i32) {
    %c0_i32 = arith.constant 0 : i32
    %c0_i32_0 = arith.constant 0 : i32
    %c0_i32_1 = arith.constant 0 : i32
    return %arg0, %c0_i32, %c0_i32_0 : i32, i32, i32
  }
}

</mosaic_0001>

<bundles_post_ra>
// kernel: tpu_custom_call.1
= control target key start
LH: loop header
LB: loop body
LE: loop exit
PB: predicated region body
PF: predicated region fallthrough
CT: control target
= control target key end

     0   :  { %10 = vsyncpa [#allocation5], 0  ;;  %s6016_s0 = inlined_call_operand.vmem [shape: f32[2,224,32], index: 0, kind: input, shape index: {}]   ;;  %s6017_s1 = inlined_call_operand.vmem [shape: f32[2,2,5,32], index: 1, kind: input, shape index: {}]   ;;  %s6018_s2 = inlined_call_operand.vmem [shape: f32[224,1], index: 2, kind: input, shape index: {}]   ;;  %s6019_s3 = inlined_call_operand.vmem [shape: bf16[2,32,32], index: 3, kind: input, shape index: {}]   ;;  %s6020_s4 = inlined_call_operand.vmem [shape: bf16[2,3,96,32], index: 4, kind: input, shape index: {}]   ;;  %s6021_s5 = inlined_call_operand.hbm [shape: f32[2,1,32], index: 5, kind: output, shape index: {}]  }
   0x1   :  { %12 = vsyncpa [#allocation5 + $0x1], 0  ;;  %s4444_s18 = smov 0   ;;  %s4446_s19 = smov 0  }
   0x2   :  { %s4448_s20 = smov 0   ;;  %s4450_s21 = smov 0  }
   0x3 LB: > { %s4465_s22 = sadd.s32 4294967295, %s4407_s21   ;;  %s3555_s23 = sadd.s32 4294967294, %s4407_s21   ;;  %s4407_s21 = sphi %s4450_s21, %s6195_s21   ;;  %s4403_s20 = sphi %s4448_s20, %s6194_s20   ;;  %s4399_s19 = sphi %s4446_s19, %s6193_s19   ;;  %s4395_s18 = sphi %s4444_s18, %s6192_s18  }
   0x4   : > { %s4469_s24 = sadd.s32 1, %s4407_s21   ;;  %s140_s25 = sadd.s32 1, %s4403_s20 }
   0x5   : > { %s137_s26 = ssub.s32 %s4407_s21, %s4469_s24  ;;  %p150_p0 = scmp.ne.s32.totalorder %s4403_s20, %s4399_s19 }
   0x6   : > { %p138_p1 = scmp.eq.s32.totalorder %s137_s26, 0  ;;  %p151_p2 = scmp.eq.s32.totalorder %s4465_s22, 1 }
   0x7   : > { %p156_p3 = scmp.ne.s32.totalorder %s4399_s19, %s4395_s18  ;;  %p157_p4 = scmp.eq.s32.totalorder %s3555_s23, 1 }
   0x8   : > { %s4480_s27 = scalar_select %p138_p1, %s4403_s20, %s140_s25  }
   0x9   : > { %p4482_p5 = por %p151_p2, %p150_p0  ;;  %p4486_p6 = por %p157_p4, %p156_p3 }
   0xa   : > { %p3558_p7 = scmp.ge.s32.totalorder %s4407_s21, 1  ;;  %p200_p8 = scmp.lt.s32.totalorder %s4407_s21, 3 }
   0xc   : > { %p201_p9 = pnand %p3558_p7, %p200_p8 }
   0xe   : > { %204 = sbr.rel (%p201_p9) target bundleno = 1327 (0x52f), region = 40 }
  0x13   : > { %v4307_v0 = vld [vmem:[%s6019_s3 + $0x8] sm:$0xff]   ;;  %p232_p10 = scmp.lt.s32.totalorder %s4465_s22, 1  ;;  %v4308_v1 = vld [vmem:[%s6019_s3] sm:$0xff]   ;;  %v6022_v3 = vmov 0   ;;  %v248_v4 = vld [vmem:[%s6018_s2 + $0x10] sm:$0xff]  ;;  %vm243_vm0 = vcmask 261120  }
  0x14   : > { %3945 = vmatprep.subr.bf16.mxu0 %v4307_v0  ;;  %v246_v2 = vld [vmem:[%s6018_s2] sm:$0xff]  ;;  %4305 = vset.pattern.permute.xlu0 %v6022_v3  ;;  %v247_v5 = vld [vmem:[%s6018_s2 + $0x8] sm:$0xff]  ;;  %v249_v6 = vld [vmem:[%s6018_s2 + $0x18] sm:$0xff]  ;;  %s4411_s10 = smov 32   ;;  %vm1096_vm1 = vcmask 523264   ;;  %vm1186_vm2 = vcmask 785408  }
  0x15   : > { %s4500_s9 = scalar_select %p232_p10, %s4465_s22, 1  ;;  %3946 = vmatpush3.bf16.msra.mxu0 %v4307_v0  ;;  %678 = vperm.xlu0 %4305, %v246_v2   ;;  %v250_v16 = vld [vmem:[%s6018_s2 + $0x20] sm:$0xff]  ;;  %v251_v17 = vld [vmem:[%s6018_s2 + $0x28] sm:$0xff]  ;;  %v252_v22 = vld [vmem:[%s6018_s2 + $0x30] sm:$0xff]  ;;  %vm3473_vm3 = vcmask 253952  }
  0x16   : > { %3947 = vmatprep.subr.bf16.mxu0 %v4308_v1  ;;  %4306 = vset.pattern.permute.xlu1 %v6022_v3  ;;  %v253_v24 = vld [vmem:[%s6018_s2 + $0x38] sm:$0xff]  ;;  %v254_v26 = vld [vmem:[%s6018_s2 + $0x40] sm:$0xff]  ;;  %v255_v27 = vld [vmem:[%s6018_s2 + $0x48] sm:$0xff]  ;;  %s3789_s7 = sshll.u32 %s4465_s22, 4 }
  0x17   : > { %s4261_s14 = smul.u32 224, %s4500_s9  ;;  %3989 = vmatprep.mubr.bf16.mxu1 %v6022_v3  ;;  %688 = vperm.xlu1 %4306, %v248_v4   ;;  %v256_v30 = vld [vmem:[%s6018_s2 + $0x50] sm:$0xff]  ;;  %v257_v33 = vld [vmem:[%s6018_s2 + $0x58] sm:$0xff]  ;;  %v258_v35 = vld [vmem:[%s6018_s2 + $0x60] sm:$0xff]  ;;  %s3792_s15 = sshll.u32 %s4500_s9, 4 }
  0x18   : > { %v259_v37 = vld [vmem:[%s6018_s2 + $0x68] sm:$0xff]  ;;  %v260_v42 = vld [vmem:[%s6018_s2 + $0x70] sm:$0xff]  ;;  %v261_v43 = vld [vmem:[%s6018_s2 + $0x78] sm:$0xff]  ;;  %s4680_s23 = scalar_lea.vmem %s6017_s1, %s3792_s15 }
  0x19   : > { %s4518_s25 = scalar_lea.vmem %s6016_s0, %s4261_s14  ;;  %3948 = vmatpush3.bf16.msra.mxu0 %v4308_v1  ;;  %683 = vperm.xlu0 %4305, %v247_v5   ;;  %v262_v45 = vld [vmem:[%s6018_s2 + $0x80] sm:$0xff]  ;;  %v263_v47 = vld [vmem:[%s6018_s2 + $0x88] sm:$0xff]  ;;  %v264_v52 = vld [vmem:[%s6018_s2 + $0x90] sm:$0xff]  ;;  %s3486_s14 = scalar_lea.hbm %s6021_s5, %s3789_s7 }
  0x1a   : > { %v274_v7 = vld [vmem:[%s4518_s25] sm:$0xff]  ;;  %v275_v8 = vld [vmem:[%s4518_s25 + $0x8] sm:$0xff]  ;;  %v276_v9 = vld [vmem:[%s4518_s25 + $0x10] sm:$0xff] }
  0x1b   : > { %v307_v10 = vpack.c.bf16 %v275_v8, %v274_v7  ;;  %v277_v11 = vld [vmem:[%s4518_s25 + $0x18] sm:$0xff]  ;;  %v278_v12 = vld [vmem:[%s4518_s25 + $0x20] sm:$0xff]  ;;  %v279_v13 = vld [vmem:[%s4518_s25 + $0x28] sm:$0xff]  ;;  %693 = vperm.xlu1 %4306, %v249_v6  }
  0x1c   : > { %v308_v14 = vpack.c.bf16 %v277_v11, %v276_v9  ;;  %v309_v15 = vpack.c.bf16 %v279_v13, %v278_v12  ;;  %v280_v18 = vld [vmem:[%s4518_s25 + $0x30] sm:$0xff]  ;;  %v281_v19 = vld [vmem:[%s4518_s25 + $0x38] sm:$0xff]  ;;  %v282_v20 = vld [vmem:[%s4518_s25 + $0x40] sm:$0xff] }
  0x1d   : > { %3949 = vmatprep.mubr.msk.bf16.mxu0 %vm243_vm0, %v307_v10  ;;  %698 = vperm.xlu0 %4305, %v250_v16   ;;  %v283_v21 = vld [vmem:[%s4518_s25 + $0x48] sm:$0xff]  ;;  %v310_v23 = vpack.c.bf16 %v281_v19, %v280_v18  ;;  %v284_v28 = vld [vmem:[%s4518_s25 + $0x50] sm:$0xff]  ;;  %v285_v29 = vld [vmem:[%s4518_s25 + $0x58] sm:$0xff]  ;;  %v4410_v10 = vmov 0.0  }
  0x1e   : > { %3950 = vmatmul.mubr.msk.bf16.vlgmr.msra.gmra.mxu0 %vm243_vm0, %v308_v14  ;;  %v311_v25 = vpack.c.bf16 %v283_v21, %v282_v20  ;;  %v286_v31 = vld [vmem:[%s4518_s25 + $0x60] sm:$0xff]  ;;  %v287_v32 = vld [vmem:[%s4518_s25 + $0x68] sm:$0xff]  ;;  %v312_v34 = vpack.c.bf16 %v285_v29, %v284_v28  ;;  %v288_v38 = vld [vmem:[%s4518_s25 + $0x70] sm:$0xff]  ;;  %244 = vst.msk [vmem:[#allocation3] sm:$0xff] %vm243_vm0, %v4410_v10 }
  0x1f   : > { %3953 = vmatprep.mubr.msk.bf16.mxu0 %vm243_vm0, %v309_v15  ;;  %703 = vperm.xlu1 %4306, %v251_v17   ;;  %v313_v36 = vpack.c.bf16 %v287_v32, %v286_v31  ;;  %v289_v39 = vld [vmem:[%s4518_s25 + $0x78] sm:$0xff]  ;;  %v290_v40 = vld [vmem:[%s4518_s25 + $0x80] sm:$0xff]  ;;  %v291_v41 = vld [vmem:[%s4518_s25 + $0x88] sm:$0xff]  ;;  %245 = vst.msk [vmem:[#allocation3 + $0xe8] sm:$0xff] %vm243_vm0, %v4410_v10 }
  0x20   : > { %v314_v44 = vpack.c.bf16 %v289_v39, %v288_v38  ;;  %v315_v46 = vpack.c.bf16 %v291_v41, %v290_v40  ;;  %v292_v48 = vld [vmem:[%s4518_s25 + $0x90] sm:$0xff]  ;;  %v293_v49 = vld [vmem:[%s4518_s25 + $0x98] sm:$0xff]  ;;  %v294_v50 = vld [vmem:[%s4518_s25 + $0xa0] sm:$0xff] }
  0x21   : > { %708 = vperm.xlu0 %4305, %v252_v22   ;;  %v295_v51 = vld [vmem:[%s4518_s25 + $0xa8] sm:$0xff]  ;;  %v316_v53 = vpack.c.bf16 %v293_v49, %v292_v48  ;;  %v265_v54 = vld [vmem:[%s6018_s2 + $0x98] sm:$0xff]  ;;  %v266_v55 = vld [vmem:[%s6018_s2 + $0xa0] sm:$0xff] }
  0x22   : > { %v317_v56 = vpack.c.bf16 %v295_v51, %v294_v50  ;;  %v267_v57 = vld [vmem:[%s6018_s2 + $0xa8] sm:$0xff]  ;;  %v296_v58 = vld [vmem:[%s4518_s25 + $0xb0] sm:$0xff]  ;;  %v297_v59 = vld [vmem:[%s4518_s25 + $0xb8] sm:$0xff] }
  0x23   : > { %713 = vperm.xlu1 %4306, %v253_v24   ;;  %v298_v60 = vld [vmem:[%s4518_s25 + $0xc0] sm:$0xff]  ;;  %v299_v61 = vld [vmem:[%s4518_s25 + $0xc8] sm:$0xff]  ;;  %v268_v62 = vld [vmem:[%s6018_s2 + $0xb0] sm:$0xff]  ;;  %v318_v63 = vpack.c.bf16 %v297_v59, %v296_v58 }
  0x24   : > { %v269_v0 = vld [vmem:[%s6018_s2 + $0xb8] sm:$0xff]  ;;  %v319_v1 = vpack.c.bf16 %v299_v61, %v298_v60  ;;  %v270_v2 = vld [vmem:[%s6018_s2 + $0xc0] sm:$0xff]  ;;  %v271_v4 = vld [vmem:[%s6018_s2 + $0xc8] sm:$0xff] }
  0x25   : > { %718 = vperm.xlu0 %4305, %v254_v26   ;;  %v300_v5 = vld [vmem:[%s4518_s25 + $0xd0] sm:$0xff]  ;;  %v301_v6 = vld [vmem:[%s4518_s25 + $0xd8] sm:$0xff]  ;;  %v4313_v13 = vld [vmem:[%s6020_s4 + $0x28] sm:$0xff]   ;;  %s4412_s25 = smov 64  }
  0x26   : > { %3954 = vmatmul.mubr.msk.bf16.gmra.mxu0 %vm243_vm0, %v310_v23  ;;  %v272_v7 = vld [vmem:[%s6018_s2 + $0xd0] sm:$0xff]  ;;  %v320_v8 = vpack.c.bf16 %v301_v6, %v300_v5  ;;  %v273_v9 = vld [vmem:[%s6018_s2 + $0xd8] sm:$0xff]  ;;  %v4314_v14 = vld [vmem:[%s6020_s4 + $0x20] sm:$0xff]   ;;  %3977 = vmatprep.subr.bf16.mxu1 %v4313_v13 }
  0x27   : > { %3957 = vmatprep.mubr.msk.bf16.mxu0 %vm243_vm0, %v311_v25  ;;  %723 = vperm.xlu1 %4306, %v255_v27   ;;  %v4309_v11 = vld [vmem:[%s6020_s4 + $0x58] sm:$0xff]   ;;  %v4310_v12 = vld [vmem:[%s6020_s4 + $0x50] sm:$0xff]   ;;  %v4311_v15 = vld [vmem:[%s6020_s4 + $0x48] sm:$0xff]  }
  0x28   : > { %4017 = vmatprep.subr.bf16.mxu0 %v4309_v11  ;;  %3978 = vmatpush3.bf16.msra.mxu1 %v4313_v13  ;;  %v4315_v16 = vld [vmem:[%s6020_s4 + $0x18] sm:$0xff]   ;;  %v4312_v17 = vld [vmem:[%s6020_s4 + $0x40] sm:$0xff]   ;;  %v4317_v18 = vld [vmem:[%s6020_s4 + $0x10] sm:$0xff]  }
  0x29   : > { %728 = vperm.xlu0 %4305, %v256_v30   ;;  %4018 = vmatpush3.bf16.msra.mxu0 %v4309_v11  ;;  %v4316_v19 = vld [vmem:[%s6020_s4 + $0x38] sm:$0xff]   ;;  %v4687_v27 = vld [vmem:[%s4680_s23] ss:$0 sm:$0xff]  ;;  %v4691_v30 = vld [vmem:[%s4680_s23 + $0x1] ss:$0 sm:$0xff] }
  0x2a   : > { %4019 = vmatprep.subr.bf16.mxu0 %v4310_v12  ;;  %3979 = vmatprep.subr.bf16.mxu1 %v4314_v14 }
  0x2b   : > { %733 = vperm.xlu1 %4306, %v257_v33  }
  0x2c   : > { %3980 = vmatpush3.bf16.msra.mxu1 %v4314_v14 }
  0x2d   : > { %738 = vperm.xlu0 %4305, %v258_v35   ;;  %4020 = vmatpush3.bf16.msra.mxu0 %v4310_v12 }
  0x2e   : > { %3958 = vmatmul.mubr.msk.bf16.gmra.mxu0 %vm243_vm0, %v312_v34  ;;  %4021 = vmatprep.subr.bf16.mxu0 %v4311_v15 }
  0x2f   : > { %3961 = vmatprep.mubr.msk.bf16.mxu0 %vm243_vm0, %v313_v36  ;;  %743 = vperm.xlu1 %4306, %v259_v37   ;;  %v4699_v36 = vld [vmem:[%s4680_s23 + $0x2] ss:$0 sm:$0xff] }
  0x30   : > { %3981 = vmatprep.subr.bf16.mxu1 %v4315_v16 }
  0x31   : > { %748 = vperm.xlu0 %4305, %v260_v42   ;;  %4022 = vmatpush3.bf16.msra.mxu0 %v4311_v15 }
  0x32   : > { %4023 = vmatprep.subr.bf16.mxu0 %v4312_v17  ;;  %3982 = vmatpush3.bf16.msra.mxu1 %v4315_v16 }
  0x33   : > { %753 = vperm.xlu1 %4306, %v261_v43   ;;  %3983 = vmatprep.subr.bf16.mxu1 %v4317_v18 }
  0x35   : > { %758 = vperm.xlu0 %4305, %v262_v45   ;;  %4024 = vmatpush3.bf16.msra.mxu0 %v4312_v17 }
  0x36   : > { %3962 = vmatmul.mubr.msk.bf16.gmra.mxu0 %vm243_vm0, %v314_v44  ;;  %4025 = vmatprep.subr.bf16.mxu0 %v4316_v19 }
  0x37   : > { %3965 = vmatprep.mubr.msk.bf16.mxu0 %vm243_vm0, %v315_v46  ;;  %763 = vperm.xlu1 %4306, %v263_v47  }
  0x38   : > { %3984 = vmatpush3.bf16.msra.mxu1 %v4317_v18 }
  0x39   : > { %768 = vperm.xlu0 %4305, %v264_v52   ;;  %4026 = vmatpush3.bf16.msra.mxu0 %v4316_v19  ;;  %v4318_v52 = vld [vmem:[%s6020_s4 + $0x8] sm:$0xff]  }
  0x3a   : > { %3985 = vmatprep.subr.bf16.mxu1 %v4318_v52 }
  0x3b   : > { %773 = vperm.xlu1 %4306, %v265_v54   ;;  %v4320_v54 = vld [vmem:[%s6020_s4] sm:$0xff]  }
  0x3c   : > { %3986 = vmatpush3.bf16.msra.mxu1 %v4318_v52  ;;  %v4772_v52 = vld [vmem:[%s6020_s4 + $0x88] sm:$0xff]  }
  0x3d   : > { %778 = vperm.xlu0 %4305, %v266_v55   ;;  %3987 = vmatprep.subr.bf16.mxu1 %v4320_v54 }
  0x3e   : > { %3966 = vmatmul.mubr.msk.bf16.gmra.mxu0 %vm243_vm0, %v316_v53  ;;  %v4319_v53 = vld [vmem:[%s6020_s4 + $0x30] sm:$0xff]  }
  0x3f   : > { %3969 = vmatprep.mubr.msk.bf16.mxu0 %vm243_vm0, %v317_v56  ;;  %783 = vperm.xlu1 %4306, %v267_v57  }
  0x40   : > { %4027 = vmatprep.subr.bf16.mxu0 %v4319_v53  ;;  %3988 = vmatpush3.bf16.msra.mxu1 %v4320_v54 }
  0x41   : > { %788 = vperm.xlu0 %4305, %v268_v62   ;;  %4028 = vmatpush3.bf16.msra.mxu0 %v4319_v53 }
  0x42   : > { %4057 = vmatprep.subr.bf16.mxu0 %v4772_v52  ;;  %4249 = vmatprep.subr.bf16.mxu1 %v4772_v52 }
  0x43   : > { %793 = vperm.xlu1 %4306, %v269_v0  }
  0x45   : > { %798 = vperm.xlu0 %4305, %v270_v2  }
  0x46   : > { %3970 = vmatmul.mubr.msk.bf16.gmra.mxu0 %vm243_vm0, %v318_v63 }
  0x47   : > { %3973 = vmatprep.mubr.msk.bf16.mxu0 %vm243_vm0, %v319_v1  ;;  %803 = vperm.xlu1 %4306, %v271_v4  }
  0x49   : > { %808 = vperm.xlu0 %4305, %v272_v7  }
  0x4b   : > { %813 = vperm.xlu1 %4306, %v273_v9  }
  0x4e   : > { %3974 = vmatmul.mubr.msk.bf16.gmra.mxu0 %vm243_vm0, %v320_v8 }
  0x90   : > { %v4666_v20 = vpop.permute.xlu0 %678 }
  0x91   : > { %6081 = vst [vmem:[#allocation7_spill] sm:$0xff] %v4666_v20 }
  0x92   : > { %v4668_v21 = vpop.permute.xlu1 %688 }
  0x93   : > { %6082 = vst [vmem:[#allocation8_spill] sm:$0xff] %v4668_v21 }
  0x94   : > { %v4670_v22 = vpop.permute.xlu0 %683 }
  0x95   : > { %6083 = vst [vmem:[#allocation9_spill] sm:$0xff] %v4670_v22 }
  0x96   : > { %v4672_v23 = vpop.permute.xlu1 %693 }
  0x97   : > { %6084 = vst [vmem:[#allocation10_spill] sm:$0xff] %v4672_v23 }
  0x98   : > { %v4675_v24 = vpop.permute.xlu0 %698 }
  0x99   : > { %6085 = vst [vmem:[#allocation11_spill] sm:$0xff] %v4675_v24 }
  0x9a   : > { %v4682_v25 = vpop.permute.xlu1 %703 }
  0x9b   : > { %6086 = vst [vmem:[#allocation12_spill] sm:$0xff] %v4682_v25 }
  0x9c   : > { %v4684_v26 = vpop.permute.xlu0 %708 }
  0x9d   : > { %6087 = vst [vmem:[#allocation13_spill] sm:$0xff] %v4684_v26 }
  0x9e   : > { %v4693_v32 = vpop.permute.xlu1 %713 }
  0x9f   : > { %6088 = vst [vmem:[#allocation14_spill] sm:$0xff] %v4693_v32 }
  0xa0   : > { %v4696_v35 = vpop.permute.xlu0 %718 }
  0xa1   : > { %6089 = vst [vmem:[#allocation15_spill] sm:$0xff] %v4696_v35 }
  0xa2   : > { %v4708_v47 = vpop.permute.xlu1 %723 }
  0xa3   : > { %6090 = vst [vmem:[#allocation16_spill] sm:$0xff] %v4708_v47 }
  0xa4   : > { %v4722_v55 = vpop.permute.xlu0 %728 }
  0xa5   : > { %6091 = vst [vmem:[#allocation17_spill] sm:$0xff] %v4722_v55 }
  0xa6   : > { %v4736_v9 = vpop.permute.xlu1 %733 }
  0xa7   : > { %6092 = vst [vmem:[#allocation18_spill] sm:$0xff] %v4736_v9 }
  0xa8   : > { %v4741_v14 = vpop.permute.xlu0 %738 }
  0xa9   : > { %6093 = vst [vmem:[#allocation19_spill] sm:$0xff] %v4741_v14 }
  0xac   : > { %v4774_v53 = vpop.permute.xlu0 %748 }
  0xad   : > { %6095 = vst [vmem:[#allocation21_spill] sm:$0xff] %v4774_v53 }
  0xde   : > { %v3951_v28 = vpop.f32.mrf.mxu0 }
  0xdf   : > { %v426_v29 = vadd.f32 %v3951_v28, %v4687_v27 }
  0xe0   : > { %v417_v31 = vpop.f32.mrf.mxu0 }
  0xe1   : > { %v530_v33 = vmax.f32 %v426_v29, 0.0  ;;  %v418_v34 = vadd.f32 %v4687_v27, %v417_v31 }
  0xe2   : > { %v3952_v37 = vpop.f32.mrf.mxu0 }
  0xe3   : > { %558 = vst.msk [vmem:[#allocation2 + $0x10] sm:$0xff] %vm243_vm0, %v530_v33  ;;  %v590_v38 = vmul.f32 %v4691_v30, %v530_v33  ;;  %v528_v39 = vmax.f32 %v418_v34, 0.0  ;;  %v429_v40 = vadd.f32 %v3952_v37, %v4687_v27 }
  0xe4   : > { %v420_v41 = vpop.f32.mrf.mxu0 }
  0xe5   : > { %v622_v42 = vadd.f32 %v4699_v36, %v590_v38  ;;  %556 = vst.msk [vmem:[#allocation2] sm:$0xff] %vm243_vm0, %v528_v39  ;;  %v588_v43 = vmul.f32 %v4691_v30, %v528_v39  ;;  %v531_v44 = vmax.f32 %v429_v40, 0.0  ;;  %v421_v45 = vadd.f32 %v4687_v27, %v420_v41 }
  0xe6   : > { %v3955_v46 = vpop.f32.mrf.mxu0 }
  0xe7   : > { %v650_v48 = vmax.f32 %v622_v42, 0.0  ;;  %v620_v49 = vadd.f32 %v4699_v36, %v588_v43  ;;  %559 = vst.msk [vmem:[#allocation2 + $0x18] sm:$0xff] %vm243_vm0, %v531_v44  ;;  %v591_v50 = vmul.f32 %v4691_v30, %v531_v44  ;;  %v529_v51 = vmax.f32 %v421_v45, 0.0 }
  0xe8   : > { %v442_v56 = vadd.f32 %v3955_v46, %v4687_v27  ;;  %v433_v57 = vpop.f32.mrf.mxu0  ;;  %v4761_v46 = vpop.permute.xlu1 %743 }
  0xe9   : > { %v648_v58 = vmax.f32 %v620_v49, 0.0  ;;  %v623_v59 = vadd.f32 %v4699_v36, %v591_v50  ;;  %557 = vst.msk [vmem:[#allocation2 + $0x8] sm:$0xff] %vm243_vm0, %v529_v51  ;;  %v589_v60 = vmul.f32 %v4691_v30, %v529_v51  ;;  %v434_v61 = vadd.f32 %v4687_v27, %v433_v57  ;;  %6094 = vst [vmem:[#allocation20_spill] sm:$0xff] %v4761_v46 }
  0xea   : > { %v534_v62 = vmax.f32 %v442_v56, 0.0  ;;  %v3956_v63 = vpop.f32.mrf.mxu0  ;;  %v818_v0 = vmul.f32 %v4668_v21, %v650_v48 }
  0xeb   : > { %v651_v1 = vmax.f32 %v623_v59, 0.0  ;;  %v621_v2 = vadd.f32 %v4699_v36, %v589_v60  ;;  %v532_v4 = vmax.f32 %v434_v61, 0.0  ;;  %v445_v5 = vadd.f32 %v3956_v63, %v4687_v27 }
  0xec   : > { %562 = vst.msk [vmem:[#allocation2 + $0x30] sm:$0xff] %vm243_vm0, %v534_v62  ;;  %v594_v6 = vmul.f32 %v4691_v30, %v534_v62  ;;  %v436_v7 = vpop.f32.mrf.mxu0  ;;  %846 = vst.msk [vmem:[#allocation3 + $0x18] sm:$0xff] %vm243_vm0, %v818_v0  ;;  %v816_v8 = vmul.f32 %v4666_v20, %v648_v58 }
  0xed   : > { %v649_v10 = vmax.f32 %v621_v2, 0.0  ;;  %560 = vst.msk [vmem:[#allocation2 + $0x20] sm:$0xff] %vm243_vm0, %v532_v4  ;;  %v592_v11 = vmul.f32 %v4691_v30, %v532_v4  ;;  %v535_v12 = vmax.f32 %v445_v5, 0.0  ;;  %v437_v13 = vadd.f32 %v4687_v27, %v436_v7 }
  0xee   : > { %v626_v15 = vadd.f32 %v4699_v36, %v594_v6  ;;  %v3959_v16 = vpop.f32.mrf.mxu0  ;;  %v819_v17 = vmul.f32 %v4672_v23, %v651_v1  ;;  %844 = vst.msk [vmem:[#allocation3 + $0x8] sm:$0xff] %vm243_vm0, %v816_v8 }
  0xef   : > { %v624_v18 = vadd.f32 %v4699_v36, %v592_v11  ;;  %563 = vst.msk [vmem:[#allocation2 + $0x38] sm:$0xff] %vm243_vm0, %v535_v12  ;;  %v595_v19 = vmul.f32 %v4691_v30, %v535_v12  ;;  %v533_v28 = vmax.f32 %v437_v13, 0.0  ;;  %v458_v29 = vadd.f32 %v3959_v16, %v4687_v27 }
  0xf0   : > { %v654_v31 = vmax.f32 %v626_v15, 0.0  ;;  %v449_v33 = vpop.f32.mrf.mxu0  ;;  %v943_v34 = vpack.c.bf16 %v819_v17, %v818_v0  ;;  %847 = vst.msk [vmem:[#allocation3 + $0x20] sm:$0xff] %vm243_vm0, %v819_v17  ;;  %v817_v37 = vmul.f32 %v4670_v22, %v649_v10  ;;  %v4798_v10 = vpop.permute.xlu1 %753 }
  0xf1   : > { %v652_v38 = vmax.f32 %v624_v18, 0.0  ;;  %v627_v39 = vadd.f32 %v4699_v36, %v595_v19  ;;  %561 = vst.msk [vmem:[#allocation2 + $0x28] sm:$0xff] %vm243_vm0, %v533_v28  ;;  %v593_v40 = vmul.f32 %v4691_v30, %v533_v28  ;;  %v538_v41 = vmax.f32 %v458_v29, 0.0  ;;  %6096 = vst [vmem:[#allocation22_spill] sm:$0xff] %v4798_v10  ;;  %v4804_v17 = vpop.permute.xlu0 %758 }
  0xf2   : > { %v450_v42 = vadd.f32 %v4687_v27, %v449_v33  ;;  %986 = vrot.lane.b32.xlu1 %v943_v34, %s4411_s10  ;;  %v3960_v43 = vpop.f32.mrf.mxu0  ;;  %845 = vst.msk [vmem:[#allocation3 + $0x10] sm:$0xff] %vm243_vm0, %v817_v37  ;;  %v942_v44 = vpack.c.bf16 %v817_v37, %v816_v8  ;;  %v4759_v45 = vmul.f32 %v4684_v26, %v654_v31  ;;  %6097 = vst [vmem:[#allocation23_spill] sm:$0xff] %v4804_v17 }
  0xf3   : > { %v4764_v48 = vmul.f32 %v4675_v24, %v652_v38  ;;  %v655_v49 = vmax.f32 %v627_v39, 0.0  ;;  %v625_v50 = vadd.f32 %v4699_v36, %v593_v40  ;;  %566 = vst.msk [vmem:[#allocation2 + $0x50] sm:$0xff] %vm243_vm0, %v538_v41  ;;  %v598_v51 = vmul.f32 %v4691_v30, %v538_v41 }
  0xf4   : > { %v536_v54 = vmax.f32 %v450_v42, 0.0  ;;  %v461_v56 = vadd.f32 %v3960_v43, %v4687_v27  ;;  %984 = vrot.lane.b32.xlu0 %v942_v44, %s4411_s10  ;;  %v452_v57 = vpop.f32.mrf.mxu0  ;;  %850 = vst.msk [vmem:[#allocation3 + $0x38] sm:$0xff] %vm243_vm0, %v4759_v45 }
  0xf5   : > { %848 = vst.msk [vmem:[#allocation3 + $0x28] sm:$0xff] %vm243_vm0, %v4764_v48  ;;  %v653_v58 = vmax.f32 %v625_v50, 0.0  ;;  %v630_v59 = vadd.f32 %v4699_v36, %v598_v51  ;;  %v453_v60 = vadd.f32 %v4687_v27, %v452_v57  ;;  %v4785_v61 = vmul.f32 %v4693_v32, %v655_v49 }
  0xf6   : > { %564 = vst.msk [vmem:[#allocation2 + $0x40] sm:$0xff] %vm243_vm0, %v536_v54  ;;  %v596_v62 = vmul.f32 %v4691_v30, %v536_v54  ;;  %v539_v63 = vmax.f32 %v461_v56, 0.0  ;;  %v3963_v0 = vpop.f32.mrf.mxu0 }
  0xf7   : > { %v658_v1 = vmax.f32 %v630_v59, 0.0  ;;  %v537_v2 = vmax.f32 %v453_v60, 0.0  ;;  %v474_v4 = vadd.f32 %v3963_v0, %v4687_v27  ;;  %v821_v5 = vmul.f32 %v4682_v25, %v653_v58  ;;  %851 = vst.msk [vmem:[#allocation3 + $0x40] sm:$0xff] %vm243_vm0, %v4785_v61  ;;  %v902_v51 = vld [vmem:[#allocation3 + $0x19] sm:$0xff]  ;;  %v4830_v60 = vpop.permute.xlu1 %763 }
  0xf8   : > { %v628_v6 = vadd.f32 %v4699_v36, %v596_v62  ;;  %567 = vst.msk [vmem:[#allocation2 + $0x58] sm:$0xff] %vm243_vm0, %v539_v63  ;;  %v599_v7 = vmul.f32 %v4691_v30, %v539_v63  ;;  %v465_v8 = vpop.f32.mrf.mxu0  ;;  %6098 = vst [vmem:[#allocation24_spill] sm:$0xff] %v4830_v60 }
  0xf9   : > { %565 = vst.msk [vmem:[#allocation2 + $0x48] sm:$0xff] %vm243_vm0, %v537_v2  ;;  %v597_v11 = vmul.f32 %v4691_v30, %v537_v2  ;;  %v542_v12 = vmax.f32 %v474_v4, 0.0  ;;  %v466_v13 = vadd.f32 %v4687_v27, %v465_v8  ;;  %v900_v15 = vld [vmem:[#allocation3 + $0x9] sm:$0xff]  ;;  %v901_v16 = vld [vmem:[#allocation3 + $0x11] sm:$0xff]  ;;  %849 = vst.msk [vmem:[#allocation3 + $0x30] sm:$0xff] %vm243_vm0, %v821_v5  ;;  %v4808_v31 = vmul.f32 %v4722_v55, %v658_v1  ;;  %v4836_v2 = vpop.permute.xlu0 %768 }
  0xfa   : > { %v656_v18 = vmax.f32 %v628_v6, 0.0  ;;  %v631_v19 = vadd.f32 %v4699_v36, %v599_v7  ;;  %v3964_v28 = vpop.f32.mrf.mxu0  ;;  %v956_v29 = vpack.c.bf16 %v901_v16, %v900_v15  ;;  %v944_v58 = vpack.c.bf16 %v821_v5, %v4764_v48  ;;  %6099 = vst [vmem:[#allocation25_spill] sm:$0xff] %v4836_v2 }
  0xfb   : > { %v629_v33 = vadd.f32 %v4699_v36, %v597_v11  ;;  %570 = vst.msk [vmem:[#allocation2 + $0x70] sm:$0xff] %vm243_vm0, %v542_v12  ;;  %v602_v34 = vmul.f32 %v4691_v30, %v542_v12  ;;  %v540_v37 = vmax.f32 %v466_v13, 0.0  ;;  %v477_v38 = vadd.f32 %v3964_v28, %v4687_v27  ;;  %854 = vst.msk [vmem:[#allocation3 + $0x58] sm:$0xff] %vm243_vm0, %v4808_v31 }
  0xfc   : > { %v4815_v39 = vmul.f32 %v4696_v35, %v656_v18  ;;  %v659_v40 = vmax.f32 %v631_v19, 0.0  ;;  %1026 = vrot.lane.b32.xlu0 %v956_v29, %s4412_s25  ;;  %v468_v41 = vpop.f32.mrf.mxu0  ;;  %v903_v42 = vld [vmem:[#allocation3 + $0x21] sm:$0xff]  ;;  %v945_v18 = vpack.c.bf16 %v4785_v61, %v4759_v45  ;;  %v4864_v61 = vpop.permute.xlu1 %773 }
  0xfd   : > { %v657_v43 = vmax.f32 %v629_v33, 0.0  ;;  %v634_v44 = vadd.f32 %v4699_v36, %v602_v34  ;;  %568 = vst.msk [vmem:[#allocation2 + $0x60] sm:$0xff] %vm243_vm0, %v540_v37  ;;  %v600_v49 = vmul.f32 %v4691_v30, %v540_v37  ;;  %v543_v50 = vmax.f32 %v477_v38, 0.0  ;;  %6100 = vst [vmem:[#allocation26_spill] sm:$0xff] %v4864_v61 }
  0xfe   : > { %852 = vst.msk [vmem:[#allocation3 + $0x48] sm:$0xff] %vm243_vm0, %v4815_v39  ;;  %v469_v54 = vadd.f32 %v4687_v27, %v468_v41  ;;  %v3967_v56 = vpop.f32.mrf.mxu0  ;;  %v957_v57 = vpack.c.bf16 %v903_v42, %v902_v51  ;;  %v4828_v59 = vmul.f32 %v4736_v9, %v659_v40  ;;  %v4875_v51 = vpop.permute.xlu0 %778 }
  0xff   : > { %v662_v62 = vmax.f32 %v634_v44, 0.0  ;;  %v632_v63 = vadd.f32 %v4699_v36, %v600_v49  ;;  %571 = vst.msk [vmem:[#allocation2 + $0x78] sm:$0xff] %vm243_vm0, %v543_v50  ;;  %v603_v0 = vmul.f32 %v4691_v30, %v543_v50  ;;  %v490_v1 = vadd.f32 %v3967_v56, %v4687_v27  ;;  %v906_v44 = vld [vmem:[#allocation3 + $0x39] sm:$0xff]  ;;  %6101 = vst [vmem:[#allocation27_spill] sm:$0xff] %v4875_v51 }
 0x100   : > { %v541_v4 = vmax.f32 %v469_v54, 0.0  ;;  %1028 = vrot.lane.b32.xlu1 %v957_v57, %s4412_s25  ;;  %988 = vrot.lane.b32.xlu0 %v944_v58, %s4411_s10  ;;  %v481_v48 = vpop.f32.mrf.mxu0  ;;  %v904_v5 = vld [vmem:[#allocation3 + $0x29] sm:$0xff]  ;;  %v905_v6 = vld [vmem:[#allocation3 + $0x31] sm:$0xff]  ;;  %v825_v7 = vmul.f32 %v4708_v47, %v657_v43  ;;  %855 = vst.msk [vmem:[#allocation3 + $0x60] sm:$0xff] %vm243_vm0, %v4828_v59 }
 0x101   : > { %v660_v8 = vmax.f32 %v632_v63, 0.0  ;;  %v635_v11 = vadd.f32 %v4699_v36, %v603_v0  ;;  %v546_v12 = vmax.f32 %v490_v1, 0.0  ;;  %v482_v13 = vadd.f32 %v4687_v27, %v481_v48 }
 0x102   : > { %569 = vst.msk [vmem:[#allocation2 + $0x68] sm:$0xff] %vm243_vm0, %v541_v4  ;;  %v601_v15 = vmul.f32 %v4691_v30, %v541_v4  ;;  %v3968_v16 = vpop.f32.mrf.mxu0  ;;  %v958_v19 = vpack.c.bf16 %v905_v6, %v904_v5  ;;  %853 = vst.msk [vmem:[#allocation3 + $0x50] sm:$0xff] %vm243_vm0, %v825_v7  ;;  %v4851_v28 = vmul.f32 %v4774_v53, %v662_v62 }
 0x103   : > { %v4854_v29 = vmul.f32 %v4741_v14, %v660_v8  ;;  %v663_v33 = vmax.f32 %v635_v11, 0.0  ;;  %574 = vst.msk [vmem:[#allocation2 + $0x90] sm:$0xff] %vm243_vm0, %v546_v12  ;;  %v606_v34 = vmul.f32 %v4691_v30, %v546_v12  ;;  %v544_v37 = vmax.f32 %v482_v13, 0.0 }
 0x104   : > { %v633_v38 = vadd.f32 %v4699_v36, %v601_v15  ;;  %v493_v40 = vadd.f32 %v3968_v16, %v4687_v27  ;;  %990 = vrot.lane.b32.xlu1 %v945_v18, %s4411_s10  ;;  %1030 = vrot.lane.b32.xlu0 %v958_v19, %s4412_s25  ;;  %v484_v45 = vpop.f32.mrf.mxu0  ;;  %858 = vst.msk [vmem:[#allocation3 + $0x78] sm:$0xff] %vm243_vm0, %v4851_v28 }
 0x105   : > { %856 = vst.msk [vmem:[#allocation3 + $0x68] sm:$0xff] %vm243_vm0, %v4854_v29  ;;  %v638_v41 = vadd.f32 %v4699_v36, %v606_v34  ;;  %572 = vst.msk [vmem:[#allocation2 + $0x80] sm:$0xff] %vm243_vm0, %v544_v37  ;;  %v604_v42 = vmul.f32 %v4691_v30, %v544_v37  ;;  %v485_v43 = vadd.f32 %v4687_v27, %v484_v45  ;;  %v907_v49 = vld [vmem:[#allocation3 + $0x41] sm:$0xff]  ;;  %v4897_v34 = vpop.permute.xlu1 %783 }
 0x106   : > { %v4873_v50 = vmul.f32 %v4798_v10, %v663_v33  ;;  %v661_v54 = vmax.f32 %v633_v38, 0.0  ;;  %v547_v56 = vmax.f32 %v493_v40, 0.0  ;;  %v3971_v57 = vpop.f32.mrf.mxu0  ;;  %v959_v58 = vpack.c.bf16 %v907_v49, %v906_v44  ;;  %6102 = vst [vmem:[#allocation28_spill] sm:$0xff] %v4897_v34 }
 0x107   : > { %v946_v62 = vpack.c.bf16 %v825_v7, %v4815_v39  ;;  %v666_v63 = vmax.f32 %v638_v41, 0.0  ;;  %v636_v0 = vadd.f32 %v4699_v36, %v604_v42  ;;  %v545_v1 = vmax.f32 %v485_v43, 0.0  ;;  %v4905_v41 = vpop.permute.xlu0 %788 }
 0x108   : > { %v506_v4 = vadd.f32 %v3971_v57, %v4687_v27  ;;  %859 = vst.msk [vmem:[#allocation3 + $0x80] sm:$0xff] %vm243_vm0, %v4873_v50  ;;  %575 = vst.msk [vmem:[#allocation2 + $0x98] sm:$0xff] %vm243_vm0, %v547_v56  ;;  %v607_v48 = vmul.f32 %v4691_v30, %v547_v56  ;;  %1032 = vrot.lane.b32.xlu1 %v959_v58, %s4412_s25  ;;  %v497_v5 = vpop.f32.mrf.mxu0  ;;  %v829_v39 = vmul.f32 %v4761_v46, %v661_v54  ;;  %v910_v57 = vld [vmem:[#allocation3 + $0x59] sm:$0xff] }
 0x109   : > { %992 = vrot.lane.b32.xlu0 %v946_v62, %s4411_s10  ;;  %v664_v6 = vmax.f32 %v636_v0, 0.0  ;;  %573 = vst.msk [vmem:[#allocation2 + $0x88] sm:$0xff] %vm243_vm0, %v545_v1  ;;  %v605_v7 = vmul.f32 %v4691_v30, %v545_v1  ;;  %v498_v11 = vadd.f32 %v4687_v27, %v497_v5  ;;  %v908_v12 = vld [vmem:[#allocation3 + $0x49] sm:$0xff]  ;;  %v909_v13 = vld [vmem:[#allocation3 + $0x51] sm:$0xff]  ;;  %v947_v18 = vpack.c.bf16 %v4828_v59, %v4808_v31 }
 0x10a   : > { %v550_v8 = vmax.f32 %v506_v4, 0.0  ;;  %v639_v15 = vadd.f32 %v4699_v36, %v607_v48  ;;  %v3972_v16 = vpop.f32.mrf.mxu0  ;;  %v960_v19 = vpack.c.bf16 %v909_v13, %v908_v12  ;;  %857 = vst.msk [vmem:[#allocation3 + $0x70] sm:$0xff] %vm243_vm0, %v829_v39  ;;  %v4895_v33 = vmul.f32 %v4836_v2, %v666_v63  ;;  %6103 = vst [vmem:[#allocation29_spill] sm:$0xff] %v4905_v41 }
 0x10b   : > { %v4900_v37 = vmul.f32 %v4804_v17, %v664_v6  ;;  %v637_v38 = vadd.f32 %v4699_v36, %v605_v7  ;;  %v548_v45 = vmax.f32 %v498_v11, 0.0  ;;  %v509_v59 = vadd.f32 %v3972_v16, %v4687_v27 }
 0x10c   : > { %578 = vst.msk [vmem:[#allocation2 + $0xb0] sm:$0xff] %vm243_vm0, %v550_v8  ;;  %v610_v40 = vmul.f32 %v4691_v30, %v550_v8  ;;  %v667_v31 = vmax.f32 %v639_v15, 0.0  ;;  %994 = vrot.lane.b32.xlu1 %v947_v18, %s4411_s10  ;;  %v500_v42 = vpop.f32.mrf.mxu0  ;;  %v911_v43 = vld [vmem:[#allocation3 + $0x61] sm:$0xff]  ;;  %862 = vst.msk [vmem:[#allocation3 + $0x98] sm:$0xff] %vm243_vm0, %v4895_v33  ;;  %v948_v0 = vpack.c.bf16 %v829_v39, %v4854_v29  ;;  %v4931_v39 = vpop.permute.xlu1 %793 }
 0x10d   : > { %1034 = vrot.lane.b32.xlu0 %v960_v19, %s4412_s25  ;;  %860 = vst.msk [vmem:[#allocation3 + $0x88] sm:$0xff] %vm243_vm0, %v4900_v37  ;;  %v665_v44 = vmax.f32 %v637_v38, 0.0  ;;  %576 = vst.msk [vmem:[#allocation2 + $0xa0] sm:$0xff] %vm243_vm0, %v548_v45  ;;  %v608_v54 = vmul.f32 %v4691_v30, %v548_v45  ;;  %v501_v56 = vadd.f32 %v4687_v27, %v500_v42  ;;  %v551_v58 = vmax.f32 %v509_v59, 0.0  ;;  %v4936_v19 = vpop.permute.xlu0 %798 }
 0x10e   : > { %v642_v49 = vadd.f32 %v4699_v36, %v610_v40  ;;  %v3975_v62 = vpop.f32.mrf.mxu0  ;;  %v961_v63 = vpack.c.bf16 %v911_v43, %v910_v57  ;;  %v4920_v1 = vmul.f32 %v4864_v61, %v667_v31  ;;  %6104 = vst [vmem:[#allocation30_spill] sm:$0xff] %v4931_v39  ;;  %6105 = vst [vmem:[#allocation31_spill] sm:$0xff] %v4936_v19 }
 0x10f   : > { %v640_v48 = vadd.f32 %v4699_v36, %v608_v54  ;;  %v549_v5 = vmax.f32 %v501_v56, 0.0  ;;  %v522_v6 = vadd.f32 %v3975_v62, %v4687_v27  ;;  %579 = vst.msk [vmem:[#allocation2 + $0xb8] sm:$0xff] %vm243_vm0, %v551_v58  ;;  %v611_v7 = vmul.f32 %v4691_v30, %v551_v58 }
 0x110   : > { %v670_v4 = vmax.f32 %v642_v49, 0.0  ;;  %1036 = vrot.lane.b32.xlu1 %v961_v63, %s4412_s25  ;;  %v513_v8 = vpop.f32.mrf.mxu0  ;;  %v833_v29 = vmul.f32 %v4830_v60, %v665_v44  ;;  %863 = vst.msk [vmem:[#allocation3 + $0xa0] sm:$0xff] %vm243_vm0, %v4920_v1  ;;  %v949_v45 = vpack.c.bf16 %v4873_v50, %v4851_v28 }
 0x111   : > { %996 = vrot.lane.b32.xlu0 %v948_v0, %s4411_s10  ;;  %v668_v11 = vmax.f32 %v640_v48, 0.0  ;;  %577 = vst.msk [vmem:[#allocation2 + $0xa8] sm:$0xff] %vm243_vm0, %v549_v5  ;;  %v609_v12 = vmul.f32 %v4691_v30, %v549_v5  ;;  %v554_v13 = vmax.f32 %v522_v6, 0.0  ;;  %v514_v15 = vadd.f32 %v4687_v27, %v513_v8  ;;  %v912_v16 = vld [vmem:[#allocation3 + $0x69] sm:$0xff]  ;;  %v913_v18 = vld [vmem:[#allocation3 + $0x71] sm:$0xff]  ;;  %v914_v0 = vld [vmem:[#allocation3 + $0x79] sm:$0xff] }
 0x112   : > { %v643_v38 = vadd.f32 %v4699_v36, %v611_v7  ;;  %v3976_v40 = vpop.f32.mrf.mxu0  ;;  %v962_v31 = vpack.c.bf16 %v913_v18, %v912_v16  ;;  %861 = vst.msk [vmem:[#allocation3 + $0x90] sm:$0xff] %vm243_vm0, %v833_v29  ;;  %v4943_v59 = vmul.f32 %v4905_v41, %v670_v4  ;;  %v950_v5 = vpack.c.bf16 %v833_v29, %v4900_v37  ;;  %v4961_v7 = vpop.permute.xlu1 %803 }
 0x113   : > { %v836_v42 = vmul.f32 %v4875_v51, %v668_v11  ;;  %v641_v43 = vadd.f32 %v4699_v36, %v609_v12  ;;  %582 = vst.msk [vmem:[#allocation2 + $0xd0] sm:$0xff] %vm243_vm0, %v554_v13  ;;  %v614_v44 = vmul.f32 %v4691_v30, %v554_v13  ;;  %v552_v49 = vmax.f32 %v514_v15, 0.0  ;;  %6106 = vst [vmem:[#allocation32_spill] sm:$0xff] %v4961_v7  ;;  %v4965_v15 = vpop.permute.xlu0 %808 }
 0x114   : > { %v671_v54 = vmax.f32 %v643_v38, 0.0  ;;  %v525_v56 = vadd.f32 %v3976_v40, %v4687_v27  ;;  %998 = vrot.lane.b32.xlu1 %v949_v45, %s4411_s10  ;;  %v516_v28 = vpop.f32.mrf.mxu0  ;;  %v915_v50 = vld [vmem:[#allocation3 + $0x81] sm:$0xff]  ;;  %866 = vst.msk [vmem:[#allocation3 + $0xb8] sm:$0xff] %vm243_vm0, %v4943_v59  ;;  %6107 = vst [vmem:[#allocation33_spill] sm:$0xff] %v4965_v15  ;;  %v951_v45 = vpack.c.bf16 %v4920_v1, %v4895_v33 }
 0x115   : > { %1038 = vrot.lane.b32.xlu0 %v962_v31, %s4412_s25  ;;  %864 = vst.msk [vmem:[#allocation3 + $0xa8] sm:$0xff] %vm243_vm0, %v836_v42  ;;  %v669_v57 = vmax.f32 %v641_v43, 0.0  ;;  %v646_v58 = vadd.f32 %v4699_v36, %v614_v44  ;;  %580 = vst.msk [vmem:[#allocation2 + $0xc0] sm:$0xff] %vm243_vm0, %v552_v49  ;;  %v612_v62 = vmul.f32 %v4691_v30, %v552_v49 }
 0x116   : > { %v517_v63 = vadd.f32 %v4687_v27, %v516_v28  ;;  %v555_v4 = vmax.f32 %v525_v56, 0.0  ;;  %v963_v48 = vpack.c.bf16 %v915_v50, %v914_v0  ;;  %v839_v6 = vmul.f32 %v4931_v39, %v671_v54  ;;  %v4984_v56 = vpop.permute.xlu1 %813 }
 0x117   : > { %v674_v8 = vmax.f32 %v646_v58, 0.0  ;;  %v644_v11 = vadd.f32 %v4699_v36, %v612_v62  ;;  %v837_v13 = vmul.f32 %v4897_v34, %v669_v57  ;;  %6108 = vst [vmem:[#allocation34_spill] sm:$0xff] %v4984_v56 }
 0x118   : > { %v553_v12 = vmax.f32 %v517_v63, 0.0  ;;  %583 = vst.msk [vmem:[#allocation2 + $0xd8] sm:$0xff] %vm243_vm0, %v555_v4  ;;  %v615_v27 = vmul.f32 %v4691_v30, %v555_v4  ;;  %1040 = vrot.lane.b32.xlu1 %v963_v48, %s4412_s25  ;;  %867 = vst.msk [vmem:[#allocation3 + $0xc0] sm:$0xff] %vm243_vm0, %v839_v6  ;;  %v953_v63 = vpack.c.bf16 %v839_v6, %v4943_v59  ;;  %v873_v6 = vld [vmem:[#allocation3 + $0xf] sm:$0xff] }
 0x119   : > { %1000 = vrot.lane.b32.xlu0 %v950_v5, %s4411_s10  ;;  %v672_v37 = vmax.f32 %v644_v11, 0.0  ;;  %v916_v16 = vld [vmem:[#allocation3 + $0x89] sm:$0xff]  ;;  %v917_v18 = vld [vmem:[#allocation3 + $0x91] sm:$0xff]  ;;  %865 = vst.msk [vmem:[#allocation3 + $0xb0] sm:$0xff] %vm243_vm0, %v837_v13  ;;  %v842_v38 = vmul.f32 %v4965_v15, %v674_v8  ;;  %v952_v1 = vpack.c.bf16 %v837_v13, %v836_v42 }
 0x11a   : > { %581 = vst.msk [vmem:[#allocation2 + $0xc8] sm:$0xff] %vm243_vm0, %v553_v12  ;;  %v613_v29 = vmul.f32 %v4691_v30, %v553_v12  ;;  %v647_v40 = vadd.f32 %v4699_v36, %v615_v27  ;;  %v964_v31 = vpack.c.bf16 %v917_v18, %v916_v16  ;;  %v918_v30 = vld [vmem:[#allocation3 + $0x99] sm:$0xff] }
 0x11b   : > { %v840_v43 = vmul.f32 %v4936_v19, %v672_v37  ;;  %870 = vst.msk [vmem:[#allocation3 + $0xd8] sm:$0xff] %vm243_vm0, %v842_v38  ;;  %v874_v18 = vld [vmem:[#allocation3 + $0x17] sm:$0xff] }
 0x11c   : > { %v645_v44 = vadd.f32 %v4699_v36, %v613_v29  ;;  %v675_v49 = vmax.f32 %v647_v40, 0.0  ;;  %1002 = vrot.lane.b32.xlu1 %v951_v45, %s4411_s10  ;;  %v919_v54 = vld [vmem:[#allocation3 + $0xa1] sm:$0xff] }
 0x11d   : > { %1042 = vrot.lane.b32.xlu0 %v964_v31, %s4412_s25  ;;  %868 = vst.msk [vmem:[#allocation3 + $0xc8] sm:$0xff] %vm243_vm0, %v840_v43  ;;  %v965_v33 = vpack.c.bf16 %v919_v54, %v918_v30  ;;  %v872_v29 = vld [vmem:[#allocation3 + $0x7] sm:$0xff]  ;;  %v877_v30 = vld [vmem:[#allocation3 + $0x2f] sm:$0xff] }
 0x11e   : > { %v673_v28 = vmax.f32 %v645_v44, 0.0  ;;  %v843_v50 = vmul.f32 %v4984_v56, %v675_v49  ;;  %v928_v16 = vpack.c.bf16 %v873_v6, %v872_v29  ;;  %v4322_v31 = vld [vmem:[%s6020_s4 + $0x80] sm:$0xff]  }
 0x11f   : > { %v922_v42 = vld [vmem:[#allocation3 + $0xb9] sm:$0xff] }
 0x120   : > { %v841_v36 = vmul.f32 %v4961_v7, %v673_v28  ;;  %1044 = vrot.lane.b32.xlu1 %v965_v33, %s4412_s25  ;;  %v920_v57 = vld [vmem:[#allocation3 + $0xa9] sm:$0xff]  ;;  %v921_v58 = vld [vmem:[#allocation3 + $0xb1] sm:$0xff]  ;;  %871 = vst.msk [vmem:[#allocation3 + $0xe0] sm:$0xff] %vm243_vm0, %v843_v50  ;;  %v955_v12 = vpack.c.bf16 %v843_v50, %v842_v38 }
 0x121   : > { %1004 = vrot.lane.b32.xlu0 %v952_v1, %s4411_s10  ;;  %v966_v62 = vpack.c.bf16 %v921_v58, %v920_v57  ;;  %v4323_v1 = vld [vmem:[%s6020_s4 + $0x78] sm:$0xff]  }
 0x122   : > { %869 = vst.msk [vmem:[#allocation3 + $0xd0] sm:$0xff] %vm243_vm0, %v841_v36  ;;  %v954_v48 = vpack.c.bf16 %v841_v36, %v840_v43  ;;  %v875_v43 = vld [vmem:[#allocation3 + $0x1f] sm:$0xff]  ;;  %v876_v36 = vld [vmem:[#allocation3 + $0x27] sm:$0xff]  ;;  %v878_v58 = vld [vmem:[#allocation3 + $0x37] sm:$0xff] }
 0x123   : > { %v929_v49 = vpack.c.bf16 %v875_v43, %v874_v18  ;;  %v930_v57 = vpack.c.bf16 %v877_v30, %v876_v36  ;;  %v885_v43 = vld [vmem:[#allocation3 + $0x6f] sm:$0xff] }
 0x124   : > { %1006 = vrot.lane.b32.xlu1 %v953_v63, %s4411_s10  ;;  %v923_v0 = vld [vmem:[#allocation3 + $0xc1] sm:$0xff] }
 0x125   : > { %1046 = vrot.lane.b32.xlu0 %v966_v62, %s4412_s25  ;;  %v967_v4 = vpack.c.bf16 %v923_v0, %v922_v42  ;;  %v4324_v0 = vld [vmem:[%s6020_s4 + $0x70] sm:$0xff]  }
 0x127   : > { %v926_v13 = vld [vmem:[#allocation3 + $0xd9] sm:$0xff]  ;;  %v927_v27 = vld [vmem:[#allocation3 + $0xe1] sm:$0xff] }
 0x128   : > { %1048 = vrot.lane.b32.xlu1 %v967_v4, %s4412_s25  ;;  %v969_v59 = vpack.c.bf16 %v927_v27, %v926_v13  ;;  %v879_v4 = vld [vmem:[#allocation3 + $0x3f] sm:$0xff]  ;;  %v4325_v13 = vld [vmem:[%s6020_s4 + $0x68] sm:$0xff]  }
 0x129   : > { %1008 = vrot.lane.b32.xlu0 %v954_v48, %s4411_s10  ;;  %v924_v5 = vld [vmem:[#allocation3 + $0xc9] sm:$0xff]  ;;  %v925_v8 = vld [vmem:[#allocation3 + $0xd1] sm:$0xff] }
 0x12a   : > { %v968_v11 = vpack.c.bf16 %v925_v8, %v924_v5  ;;  %v931_v5 = vpack.c.bf16 %v879_v4, %v878_v58 }
 0x12c   : > { %1010 = vrot.lane.b32.xlu1 %v955_v12, %s4411_s10 }
 0x12d   : > { %1050 = vrot.lane.b32.xlu0 %v968_v11, %s4412_s25 }
 0x130   : > { %1052 = vrot.lane.b32.xlu1 %v969_v59, %s4412_s25  ;;  %v880_v59 = vld [vmem:[#allocation3 + $0x47] sm:$0xff] }
 0x164   : > { %v987_v40 = vpop.permute.xlu1 %986 }
 0x165   : > { %v1059_v54 = vsel %vm243_vm0, %v929_v49, %v987_v40  ;;  %v4326_v40 = vld [vmem:[%s6020_s4 + $0x60] sm:$0xff]  }
 0x166   : > { %v985_v37 = vpop.permute.xlu0 %984 }
 0x167   : > { %v1056_v45 = vsel %vm243_vm0, %v928_v16, %v985_v37  ;;  %v882_v37 = vld [vmem:[#allocation3 + $0x57] sm:$0xff] }
 0x16e   : > { %v1027_v38 = vpop.permute.xlu0 %1026 }
 0x16f   : > { %v1098_v44 = vsel %vm1096_vm1, %v1056_v45, %v1027_v38  ;;  %v883_v45 = vld [vmem:[#allocation3 + $0x5f] sm:$0xff] }
 0x170   : > { %3990 = vmatmul.mubr.msk.bf16.vlgmr.msra.gmra.mxu1 %vm1186_vm2, %v1098_v44  ;;  %4029 = vmatprep.mubr.msk.bf16.mxu0 %vm1186_vm2, %v1098_v44 }
 0x171   : > { %4255 = vmatpush3.bf16.msra.mxu1 %v4772_v52 }
 0x172   : > { %v1029_v28 = vpop.permute.xlu1 %1028  ;;  %v989_v33 = vpop.permute.xlu0 %988  ;;  %4250 = vmatprep.subr.bf16.mxu1 %v4322_v31 }
 0x173   : > { %v5014_v50 = vsel %vm1096_vm1, %v1059_v54, %v1029_v28  ;;  %v1062_v62 = vsel %vm243_vm0, %v930_v57, %v989_v33  ;;  %v884_v28 = vld [vmem:[#allocation3 + $0x67] sm:$0xff] }
 0x174   : > { %3993 = vmatprep.mubr.msk.bf16.mxu1 %vm1186_vm2, %v5014_v50  ;;  %4030 = vmatmul.mubr.msk.bf16.vlgmr.msra.gmra.mxu0 %vm1186_vm2, %v5014_v50  ;;  %v934_v33 = vpack.c.bf16 %v885_v43, %v884_v28  ;;  %v894_v28 = vld [vmem:[#allocation3 + $0xb7] sm:$0xff] }
 0x175   : > { %4058 = vmatpush3.bf16.msra.mxu0 %v4772_v52  ;;  %4256 = vmatpush3.bf16.msra.mxu1 %v4322_v31  ;;  %v881_v52 = vld [vmem:[#allocation3 + $0x4f] sm:$0xff] }
 0x176   : > { %v991_v63 = vpop.permute.xlu1 %990  ;;  %v1031_v42 = vpop.permute.xlu0 %1030  ;;  %4059 = vmatprep.subr.bf16.mxu0 %v4322_v31  ;;  %4251 = vmatprep.subr.bf16.mxu1 %v4323_v1  ;;  %v932_v6 = vpack.c.bf16 %v881_v52, %v880_v59 }
 0x177   : > { %v5026_v48 = vsel %vm1096_vm1, %v1062_v62, %v1031_v42  ;;  %v1065_v8 = vsel %vm243_vm0, %v931_v5, %v991_v63  ;;  %v887_v62 = vld [vmem:[#allocation3 + $0x7f] sm:$0xff] }
 0x178   : > { %3994 = vmatmul.mubr.msk.bf16.gmra.mxu1 %vm1186_vm2, %v5026_v48  ;;  %4033 = vmatprep.mubr.msk.bf16.mxu0 %vm1186_vm2, %v5026_v48 }
 0x179   : > { %4060 = vmatpush3.bf16.msra.mxu0 %v4322_v31  ;;  %4257 = vmatpush3.bf16.msra.mxu1 %v4323_v1  ;;  %v933_v31 = vpack.c.bf16 %v883_v45, %v882_v37 }
 0x17a   : > { %v1033_v11 = vpop.permute.xlu1 %1032  ;;  %4061 = vmatprep.subr.bf16.mxu0 %v4323_v1  ;;  %4252 = vmatprep.subr.bf16.mxu1 %v4324_v0 }
 0x17b   : > { %v993_v12 = vpop.permute.xlu0 %992  ;;  %v5037_v27 = vsel %vm1096_vm1, %v1065_v8, %v1033_v11  ;;  %v888_v11 = vld [vmem:[#allocation3 + $0x87] sm:$0xff] }
 0x17c   : > { %3997 = vmatprep.mubr.msk.bf16.mxu1 %vm1186_vm2, %v5037_v27  ;;  %4034 = vmatmul.mubr.msk.bf16.gmra.mxu0 %vm1186_vm2, %v5037_v27  ;;  %v1068_v29 = vsel %vm243_vm0, %v932_v6, %v993_v12 }
 0x17d   : > { %4062 = vmatpush3.bf16.msra.mxu0 %v4323_v1  ;;  %4258 = vmatpush3.bf16.msra.mxu1 %v4324_v0  ;;  %v886_v1 = vld [vmem:[#allocation3 + $0x77] sm:$0xff] }
 0x17e   : > { %v995_v16 = vpop.permute.xlu1 %994  ;;  %4063 = vmatprep.subr.bf16.mxu0 %v4324_v0  ;;  %4253 = vmatprep.subr.bf16.mxu1 %v4325_v13  ;;  %v935_v42 = vpack.c.bf16 %v887_v62, %v886_v1 }
 0x17f   : > { %v1035_v18 = vpop.permute.xlu0 %1034  ;;  %v1071_v44 = vsel %vm243_vm0, %v933_v31, %v995_v16 }
 0x180   : > { %v5048_v38 = vsel %vm1096_vm1, %v1068_v29, %v1035_v18  ;;  %v891_v29 = vld [vmem:[#allocation3 + $0x9f] sm:$0xff] }
 0x181   : > { %3998 = vmatmul.mubr.msk.bf16.gmra.mxu1 %vm1186_vm2, %v5048_v38  ;;  %4037 = vmatprep.mubr.msk.bf16.mxu0 %vm1186_vm2, %v5048_v38 }
 0x182   : > { %4064 = vmatpush3.bf16.msra.mxu0 %v4324_v0  ;;  %4259 = vmatpush3.bf16.msra.mxu1 %v4325_v13  ;;  %v1037_v49 = vpop.permute.xlu1 %1036  ;;  %v889_v0 = vld [vmem:[#allocation3 + $0x8f] sm:$0xff] }
 0x183   : > { %v997_v30 = vpop.permute.xlu0 %996  ;;  %4065 = vmatprep.subr.bf16.mxu0 %v4325_v13  ;;  %4254 = vmatprep.subr.bf16.mxu1 %v4326_v40  ;;  %v5056_v54 = vsel %vm1096_vm1, %v1071_v44, %v1037_v49  ;;  %v936_v12 = vpack.c.bf16 %v889_v0, %v888_v11  ;;  %v892_v49 = vld [vmem:[#allocation3 + $0xa7] sm:$0xff] }
 0x184   : > { %4001 = vmatprep.mubr.msk.bf16.mxu1 %vm1186_vm2, %v5056_v54  ;;  %4038 = vmatmul.mubr.msk.bf16.gmra.mxu0 %vm1186_vm2, %v5056_v54  ;;  %v1074_v36 = vsel %vm243_vm0, %v934_v33, %v997_v30  ;;  %v896_v11 = vld [vmem:[#allocation3 + $0xc7] sm:$0xff] }
 0x186   : > { %4066 = vmatpush3.bf16.msra.mxu0 %v4325_v13  ;;  %4260 = vmatpush3.bf16.msra.mxu1 %v4326_v40  ;;  %v999_v57 = vpop.permute.xlu1 %998  ;;  %v890_v13 = vld [vmem:[#allocation3 + $0x97] sm:$0xff] }
 0x187   : > { %v1039_v58 = vpop.permute.xlu0 %1038  ;;  %4067 = vmatprep.subr.bf16.mxu0 %v4326_v40  ;;  %v1077_v4 = vsel %vm243_vm0, %v935_v42, %v999_v57  ;;  %v937_v18 = vpack.c.bf16 %v891_v29, %v890_v13  ;;  %v895_v57 = vld [vmem:[#allocation3 + $0xbf] sm:$0xff]  ;;  %v897_v42 = vld [vmem:[#allocation3 + $0xcf] sm:$0xff]  ;;  %v898_v13 = vld [vmem:[#allocation3 + $0xd7] sm:$0xff] }
 0x188   : > { %v5064_v63 = vsel %vm1096_vm1, %v1074_v36, %v1039_v58  ;;  %v939_v62 = vpack.c.bf16 %v895_v57, %v894_v28  ;;  %v899_v29 = vld [vmem:[#allocation3 + $0xdf] sm:$0xff] }
 0x189   : > { %4002 = vmatmul.mubr.msk.bf16.gmra.mxu1 %vm1186_vm2, %v5064_v63  ;;  %4041 = vmatprep.mubr.msk.bf16.mxu0 %vm1186_vm2, %v5064_v63 }
 0x18a   : > { %4068 = vmatpush3.bf16.msra.mxu0 %v4326_v40  ;;  %v1041_v5 = vpop.permute.xlu1 %1040  ;;  %v893_v40 = vld [vmem:[#allocation3 + $0xaf] sm:$0xff] }
 0x18b   : > { %v1001_v52 = vpop.permute.xlu0 %1000  ;;  %v1112_v8 = vsel %vm1096_vm1, %v1077_v4, %v1041_v5  ;;  %v938_v30 = vpack.c.bf16 %v893_v40, %v892_v49  ;;  %v941_v40 = vpack.c.bf16 %v899_v29, %v898_v13 }
 0x18c   : > { %4005 = vmatprep.mubr.msk.bf16.mxu1 %vm1186_vm2, %v1112_v8  ;;  %4042 = vmatmul.mubr.msk.bf16.gmra.mxu0 %vm1186_vm2, %v1112_v8  ;;  %v1080_v59 = vsel %vm243_vm0, %v936_v12, %v1001_v52  ;;  %v940_v12 = vpack.c.bf16 %v897_v42, %v896_v11 }
 0x18e   : > { %v1003_v6 = vpop.permute.xlu1 %1002 }
 0x18f   : > { %v1043_v37 = vpop.permute.xlu0 %1042  ;;  %v1083_v45 = vsel %vm243_vm0, %v937_v18, %v1003_v6 }
 0x190   : > { %v1114_v16 = vsel %vm1096_vm1, %v1080_v59, %v1043_v37 }
 0x191   : > { %4006 = vmatmul.mubr.msk.bf16.gmra.mxu1 %vm1186_vm2, %v1114_v16  ;;  %4045 = vmatprep.mubr.msk.bf16.mxu0 %vm1186_vm2, %v1114_v16 }
 0x192   : > { %v1045_v31 = vpop.permute.xlu1 %1044 }
 0x193   : > { %v1005_v43 = vpop.permute.xlu0 %1004  ;;  %v1116_v44 = vsel %vm1096_vm1, %v1083_v45, %v1045_v31 }
 0x194   : > { %4009 = vmatprep.mubr.msk.bf16.mxu1 %vm1186_vm2, %v1116_v44  ;;  %4046 = vmatmul.mubr.msk.bf16.gmra.mxu0 %vm1186_vm2, %v1116_v44  ;;  %v1086_v33 = vsel %vm243_vm0, %v938_v30, %v1005_v43 }
 0x196   : > { %v1007_v1 = vpop.permute.xlu1 %1006 }
 0x197   : > { %v1047_v36 = vpop.permute.xlu0 %1046  ;;  %v1089_v0 = vsel %vm243_vm0, %v939_v62, %v1007_v1 }
 0x198   : > { %v1118_v58 = vsel %vm1096_vm1, %v1086_v33, %v1047_v36 }
 0x199   : > { %4010 = vmatmul.mubr.msk.bf16.gmra.mxu1 %vm1186_vm2, %v1118_v58  ;;  %4049 = vmatprep.mubr.msk.bf16.mxu0 %vm1186_vm2, %v1118_v58 }
 0x19a   : > { %v1049_v4 = vpop.permute.xlu1 %1048 }
 0x19b   : > { %v1009_v5 = vpop.permute.xlu0 %1008  ;;  %v1120_v52 = vsel %vm1096_vm1, %v1089_v0, %v1049_v4 }
 0x19c   : > { %4013 = vmatprep.mubr.msk.bf16.mxu1 %vm1186_vm2, %v1120_v52  ;;  %4050 = vmatmul.mubr.msk.bf16.gmra.mxu0 %vm1186_vm2, %v1120_v52  ;;  %v1092_v59 = vsel %vm243_vm0, %v940_v12, %v1009_v5 }
 0x19e   : > { %v1011_v6 = vpop.permute.xlu1 %1010 }
 0x19f   : > { %v1051_v37 = vpop.permute.xlu0 %1050  ;;  %v1095_v45 = vsel %vm243_vm0, %v941_v40, %v1011_v6 }
 0x1a0   : > { %v1122_v18 = vsel %vm1096_vm1, %v1092_v59, %v1051_v37 }
 0x1a1   : > { %4014 = vmatmul.mubr.msk.bf16.gmra.mxu1 %vm1186_vm2, %v1122_v18  ;;  %4053 = vmatprep.mubr.msk.bf16.mxu0 %vm1186_vm2, %v1122_v18 }
 0x1a2   : > { %4073 = vmatprep.mubr.msk.bf16.mxu1 %vm1186_vm2, %v5037_v27  ;;  %v1053_v31 = vpop.permute.xlu1 %1052 }
 0x1a3   : > { %v1124_v43 = vsel %vm1096_vm1, %v1095_v45, %v1053_v31 }
 0x1a4   : > { %4054 = vmatmul.mubr.msk.bf16.gmra.mxu0 %vm1186_vm2, %v1124_v43 }
 0x1a5   : > { %4069 = vmatprep.mubr.msk.bf16.mxu0 %vm1186_vm2, %v5014_v50  ;;  %v4327_v50 = vld [vmem:[%s6019_s3 + $0x18] sm:$0xff]  }
 0x1a6   : > { %4097 = vmatprep.subr.bf16.mxu0 %v4327_v50 }
 0x1a9   : > { %4074 = vmatmul.mubr.msk.bf16.vlgmr.msra.gmra.mxu1 %vm1186_vm2, %v5048_v38 }
 0x1aa   : > { %4077 = vmatprep.mubr.msk.bf16.mxu1 %vm1186_vm2, %v5056_v54 }
 0x1ac   : > { %4070 = vmatmul.mubr.msk.bf16.vlgmr.msra.gmra.mxu0 %vm1186_vm2, %v5026_v48  ;;  %v4328_v48 = vld [vmem:[%s6019_s3 + $0x10] sm:$0xff]  }
 0x1ad   : > { %4098 = vmatpush3.bf16.msra.mxu0 %v4327_v50 }
 0x1ae   : > { %4099 = vmatprep.subr.bf16.mxu0 %v4328_v48 }
 0x1b1   : > { %4078 = vmatmul.mubr.msk.bf16.gmra.mxu1 %vm1186_vm2, %v5064_v63  ;;  %4100 = vmatpush3.bf16.msra.mxu0 %v4328_v48 }
 0x1b2   : > { %4081 = vmatprep.mubr.msk.bf16.mxu1 %vm1186_vm2, %v1112_v8 }
 0x1b9   : > { %4082 = vmatmul.mubr.msk.bf16.gmra.mxu1 %vm1186_vm2, %v1114_v16 }
 0x1ba   : > { %4085 = vmatprep.mubr.msk.bf16.mxu1 %vm1186_vm2, %v1116_v44 }
 0x1c1   : > { %4086 = vmatmul.mubr.msk.bf16.gmra.mxu1 %vm1186_vm2, %v1118_v58 }
 0x1c2   : > { %4089 = vmatprep.mubr.msk.bf16.mxu1 %vm1186_vm2, %v1120_v52 }
 0x1c9   : > { %4090 = vmatmul.mubr.msk.bf16.gmra.mxu1 %vm1186_vm2, %v1122_v18 }
 0x1ca   : > { %4093 = vmatprep.mubr.msk.bf16.mxu1 %vm1186_vm2, %v1124_v43 }
 0x1d1   : > { %4094 = vmatmul.mubr.bf16.gmra.mxu1 %v6022_v3 }
 0x1d2   : > { %4141 = vmatprep.mubr.bf16.mxu1 %v6022_v3 }
 0x230   : > { %v3991_v27 = vpop.f32.mrf.mxu1 }
 0x232   : > { %v1250_v38 = vpop.f32.mrf.mxu1 }
 0x234   : > { %v5124_v54 = vpop.f32.mrf.mxu1  ;;  %v4031_v63 = vpop.f32.mrf.mxu0 }
 0x235   : > { %v1442_v24 = vadd.f32 %v4031_v63, %v3991_v27 }
 0x236   : > { %v5126_v8 = vpop.f32.mrf.mxu1  ;;  %v1433_v16 = vpop.f32.mrf.mxu0 }
 0x237   : > { %v1434_v21 = vadd.f32 %v1433_v16, %v1250_v38 }
 0x238   : > { %v5128_v44 = vpop.f32.mrf.mxu1  ;;  %v4032_v49 = vpop.f32.mrf.mxu0 }
 0x23a   : > { %v1266_v30 = vpop.f32.mrf.mxu1  ;;  %v5130_v28 = vpop.f32.mrf.mxu0 }
 0x23b   : > { %v1437_v27 = vadd.f32 %v5130_v28, %v5126_v8 }
 0x23c   : > { %v5132_v33 = vpop.f32.mrf.mxu1  ;;  %v5134_v1 = vpop.f32.mrf.mxu0 }
 0x23e   : > { %v1269_v36 = vpop.f32.mrf.mxu1  ;;  %v1449_v57 = vpop.f32.mrf.mxu0 }
 0x23f   : > { %v1450_v26 = vadd.f32 %v1449_v57, %v1266_v30  ;;  %v1835_v57 = vld [vmem:[#allocation2 + $0x28] sm:$0xff] }
 0x240   : > { %v4036_v62 = vpop.f32.mrf.mxu0 }
 0x241   : > { %v5136_v58 = vpop.f32.mrf.mxu1  ;;  %v1461_v63 = vadd.f32 %v4036_v62, %v5132_v33  ;;  %v1833_v62 = vld [vmem:[#allocation2 + $0x18] sm:$0xff] }
 0x242   : > { %v1452_v0 = vpop.f32.mrf.mxu0 }
 0x243   : > { %v5138_v42 = vpop.f32.mrf.mxu1 }
 0x244   : > { %v5142_v5 = vpop.f32.mrf.mxu0 }
 0x245   : > { %v5140_v4 = vpop.f32.mrf.mxu1 }
 0x246   : > { %v5146_v11 = vpop.f32.mrf.mxu0 }
 0x247   : > { %v5144_v52 = vpop.f32.mrf.mxu1  ;;  %v1466_v8 = vadd.f32 %v5146_v11, %v5138_v42 }
 0x248   : > { %v5150_v13 = vpop.f32.mrf.mxu0 }
 0x249   : > { %v5148_v12 = vpop.f32.mrf.mxu1 }
 0x24a   : > { %v5154_v6 = vpop.f32.mrf.mxu0 }
 0x24b   : > { %v5152_v59 = vpop.f32.mrf.mxu1 }
 0x24c   : > { %v5158_v29 = vpop.f32.mrf.mxu0 }
 0x24d   : > { %v5156_v37 = vpop.f32.mrf.mxu1 }
 0x24e   : > { %v5162_v40 = vpop.f32.mrf.mxu0 }
 0x24f   : > { %v5160_v18 = vpop.f32.mrf.mxu1 }
 0x250   : > { %v5166_v31 = vpop.f32.mrf.mxu0 }
 0x251   : > { %v5164_v45 = vpop.f32.mrf.mxu1 }
 0x252   : > { %v5170_v50 = vpop.f32.mrf.mxu0 }
 0x253   : > { %v5168_v43 = vpop.f32.mrf.mxu1 }
 0x254   : > { %v5174_v3 = vpop.f32.mrf.mxu0 }
 0x255   : > { %v5172_v48 = vpop.f32.mrf.mxu1 }
 0x256   : > { %v5178_v56 = vpop.f32.mrf.mxu0 }
 0x257   : > { %v5176_v7 = vpop.f32.mrf.mxu1 }
 0x258   : > { %v5182_v15 = vpop.f32.mrf.mxu0 }
 0x259   : > { %v5180_v19 = vpop.f32.mrf.mxu1 }
 0x25a   : > { %6109 = vst [vmem:[#allocation35_spill] sm:$0xff] %v5180_v19  ;;  %v5186_v39 = vpop.f32.mrf.mxu0 }
 0x25b   : > { %v5184_v34 = vpop.f32.mrf.mxu1 }
 0x25c   : > { %v5190_v41 = vpop.f32.mrf.mxu0 }
 0x25d   : > { %v5188_v51 = vpop.f32.mrf.mxu1  ;;  %6110 = vst [vmem:[#allocation36_spill] sm:$0xff] %v5190_v41 }
 0x25e   : > { %v5194_v61 = vpop.f32.mrf.mxu0 }
 0x25f   : > { %v5192_v60 = vpop.f32.mrf.mxu1 }
 0x260   : > { %v5198_v2 = vpop.f32.mrf.mxu0 }
 0x261   : > { %v5196_v17 = vpop.f32.mrf.mxu1 }
 0x262   : > { %6111 = vst [vmem:[#allocation37_spill] sm:$0xff] %v5196_v17  ;;  %v5202_v10 = vpop.f32.mrf.mxu0  ;;  %v1453_v17 = vadd.f32 %v1452_v0, %v1269_v36  ;;  %v1830_v36 = vld [vmem:[#allocation2] sm:$0xff] }
 0x263   : > { %v5200_v46 = vpop.f32.mrf.mxu1 }
 0x264   : > { %6112 = vst [vmem:[#allocation38_spill] sm:$0xff] %v5200_v46  ;;  %v5206_v53 = vpop.f32.mrf.mxu0 }
 0x265   : > { %v5204_v14 = vpop.f32.mrf.mxu1  ;;  %6114 = vst [vmem:[#allocation40_spill] sm:$0xff] %v5206_v53 }
 0x266   : > { %6113 = vst [vmem:[#allocation39_spill] sm:$0xff] %v5204_v14  ;;  %v5210_v9 = vpop.f32.mrf.mxu0 }
 0x267   : > { %v5208_v47 = vpop.f32.mrf.mxu1  ;;  %6116 = vst [vmem:[#allocation42_spill] sm:$0xff] %v5210_v9  ;;  %v5218_v9 = vld [vmem:[%s4680_s23 + $0x3] ss:$0 sm:$0xff] }
 0x268   : > { %6115 = vst [vmem:[#allocation41_spill] sm:$0xff] %v5208_v47  ;;  %v5212_v35 = vpop.f32.mrf.mxu0  ;;  %v1445_v47 = vadd.f32 %v4032_v49, %v5124_v54 }
 0x269   : > { %6117 = vst [vmem:[#allocation43_spill] sm:$0xff] %v5212_v35  ;;  %v4075_v55 = vpop.f32.mrf.mxu1 }
 0x26a   : > { %v5214_v25 = vpop.f32.mrf.mxu0 }
 0x26b   : > { %6118 = vst [vmem:[#allocation44_spill] sm:$0xff] %v5214_v25  ;;  %v1643_v32 = vpop.f32.mrf.mxu1 }
 0x26c   : > { %v4071_v22 = vpop.f32.mrf.mxu0  ;;  %v1742_v14 = vadd.f32 %v1643_v32, %v1450_v26 }
 0x26d   : > { %v4076_v23 = vpop.f32.mrf.mxu1  ;;  %v1740_v20 = vadd.f32 %v4071_v22, %v1442_v24 }
 0x26e   : > { %v1627_v53 = vpop.f32.mrf.mxu0  ;;  %v1774_v24 = vmul.f32 %v5218_v9, %v1742_v14 }
 0x26f   : > { %v1646_v46 = vpop.f32.mrf.mxu1  ;;  %v1738_v35 = vadd.f32 %v1627_v53, %v1434_v21  ;;  %v1772_v22 = vmul.f32 %v5218_v9, %v1740_v20  ;;  %v1458_v21 = vadd.f32 %v5134_v1, %v5128_v44  ;;  %v1745_v53 = vadd.f32 %v4076_v23, %v1461_v63  ;;  %v1831_v63 = vld [vmem:[#allocation2 + $0x8] sm:$0xff] }
 0x270   : > { %v1743_v41 = vadd.f32 %v1646_v46, %v1453_v17  ;;  %v4072_v19 = vpop.f32.mrf.mxu0  ;;  %v5230_v46 = vld [vmem:[%s4680_s23 + $0x4] ss:$0 sm:$0xff] }
 0x271   : > { %v4079_v25 = vpop.f32.mrf.mxu1  ;;  %v1770_v26 = vmul.f32 %v5218_v9, %v1738_v35  ;;  %v1741_v38 = vadd.f32 %v4072_v19, %v1445_v47  ;;  %v1469_v47 = vadd.f32 %v5154_v6, %v5144_v52  ;;  %v1744_v19 = vadd.f32 %v4075_v55, %v1458_v21  ;;  %v1832_v52 = vld [vmem:[#allocation2 + $0x10] sm:$0xff] }
 0x272   : > { %v1775_v32 = vmul.f32 %v5218_v9, %v1743_v41  ;;  %v1630_v54 = vpop.f32.mrf.mxu0  ;;  %v1804_v44 = vadd.f32 %v5230_v46, %v1772_v22  ;;  %v1806_v23 = vadd.f32 %v5230_v46, %v1774_v24  ;;  %v1777_v1 = vmul.f32 %v5218_v9, %v1745_v53 }
 0x273   : > { %v1659_v16 = vpop.f32.mrf.mxu1  ;;  %v1739_v17 = vadd.f32 %v1630_v54, %v1437_v27  ;;  %v1802_v20 = vadd.f32 %v5230_v46, %v1770_v26  ;;  %v1773_v35 = vmul.f32 %v5218_v9, %v1741_v38  ;;  %v1477_v55 = vadd.f32 %v5150_v13, %v5140_v4  ;;  %v1834_v26 = vld [vmem:[#allocation2 + $0x20] sm:$0xff] }
 0x274   : > { %v1807_v14 = vadd.f32 %v5230_v46, %v1775_v32  ;;  %v1746_v28 = vadd.f32 %v1659_v16, %v1466_v8  ;;  %v1776_v24 = vmul.f32 %v5218_v9, %v1744_v19  ;;  %v1860_v32 = vadd.f32 %v1832_v52, %v1804_v44 }
 0x275   : > { %v4080_v41 = vpop.f32.mrf.mxu1  ;;  %v1771_v49 = vmul.f32 %v5218_v9, %v1739_v17  ;;  %v1805_v30 = vadd.f32 %v5230_v46, %v1773_v35  ;;  %v1858_v11 = vadd.f32 %v1830_v36, %v1802_v20  ;;  %v1474_v16 = vadd.f32 %v5142_v5, %v5136_v58 }
 0x276   : > { %v1863_v6 = vadd.f32 %v1835_v57, %v1807_v14  ;;  %v1862_v21 = vadd.f32 %v1834_v26, %v1806_v23  ;;  %v1778_v53 = vmul.f32 %v5218_v9, %v1746_v28  ;;  %v1809_v13 = vadd.f32 %v5230_v46, %v1777_v1  ;;  %v1837_v28 = vld [vmem:[#allocation2 + $0x38] sm:$0xff] }
 0x277   : > { %v1662_v33 = vpop.f32.mrf.mxu1  ;;  %v1803_v42 = vadd.f32 %v5230_v46, %v1771_v49  ;;  %v1861_v27 = vadd.f32 %v1833_v62, %v1805_v30  ;;  %v1749_v20 = vadd.f32 %v4080_v41, %v1477_v55  ;;  %v1482_v14 = vadd.f32 %v5162_v40, %v5152_v59  ;;  %v1839_v62 = vld [vmem:[#allocation2 + $0x48] sm:$0xff] }
 0x278   : > { %v1747_v0 = vadd.f32 %v1662_v33, %v1469_v47  ;;  %v1886_v35 = vmax.f32 %v1858_v11, 0.0  ;;  %v1891_v47 = vmax.f32 %v1863_v6, 0.0  ;;  %v1485_v58 = vadd.f32 %v5170_v50, %v5160_v18  ;;  %v1838_v6 = vld [vmem:[#allocation2 + $0x40] sm:$0xff] }
 0x279   : > { %v4083_v22 = vpop.f32.mrf.mxu1  ;;  %v1859_v38 = vadd.f32 %v1831_v63, %v1803_v42  ;;  %v1889_v17 = vmax.f32 %v1861_v27, 0.0  ;;  %v1808_v5 = vadd.f32 %v5230_v46, %v1776_v24  ;;  %v1888_v49 = vmax.f32 %v1860_v32, 0.0 }
 0x27a   : > { %v1779_v54 = vmul.f32 %v5218_v9, %v1747_v0  ;;  %v1748_v23 = vadd.f32 %v4079_v25, %v1474_v16  ;;  %v1890_v30 = vmax.f32 %v1862_v21, 0.0  ;;  %v1810_v33 = vadd.f32 %v5230_v46, %v1778_v53  ;;  %v1836_v0 = vld [vmem:[#allocation2 + $0x30] sm:$0xff] }
 0x27b   : > { %v1675_v4 = vpop.f32.mrf.mxu1  ;;  %v1887_v8 = vmax.f32 %v1859_v38, 0.0  ;;  %v1865_v59 = vadd.f32 %v1837_v28, %v1809_v13  ;;  %v1921_v40 = vpack.c.bf16 %v1889_v17, %v1888_v49  ;;  %v1781_v57 = vmul.f32 %v5218_v9, %v1749_v20 }
 0x27c   : > { %v1811_v19 = vadd.f32 %v5230_v46, %v1779_v54  ;;  %v1750_v41 = vadd.f32 %v1675_v4, %v1482_v14  ;;  %v1922_v50 = vpack.c.bf16 %v1891_v47, %v1890_v30  ;;  %v1493_v25 = vadd.f32 %v5166_v31, %v5156_v37  ;;  %v1842_v30 = vld [vmem:[#allocation2 + $0x60] sm:$0xff] }
 0x27d   : > { %v4084_v44 = vpop.f32.mrf.mxu1  ;;  %v1920_v36 = vpack.c.bf16 %v1887_v8, %v1886_v35  ;;  %v1864_v52 = vadd.f32 %v1836_v0, %v1808_v5  ;;  %v1780_v11 = vmul.f32 %v5218_v9, %v1748_v23  ;;  %v1866_v63 = vadd.f32 %v1838_v6, %v1810_v33 }
 0x27e   : > { %v1867_v55 = vadd.f32 %v1839_v62, %v1811_v19  ;;  %v1782_v24 = vmul.f32 %v5218_v9, %v1750_v41  ;;  %v1490_v32 = vadd.f32 %v5158_v29, %v5148_v12  ;;  %v1893_v38 = vmax.f32 %v1865_v59, 0.0  ;;  %v1841_v12 = vld [vmem:[#allocation2 + $0x58] sm:$0xff] }
 0x27f   : > { %v1678_v1 = vpop.f32.mrf.mxu1  ;;  %4101 = vmatprep.mubr.msk.bf16.mxu0 %vm243_vm0, %v1920_v36  ;;  %v1813_v37 = vadd.f32 %v5230_v46, %v1781_v57  ;;  %v1753_v31 = vadd.f32 %v4084_v44, %v1493_v25  ;;  %v1498_v54 = vadd.f32 %v5178_v56, %v5168_v43  ;;  %v1501_v4 = vadd.f32 %v5186_v39, %v5176_v7  ;;  %v1843_v43 = vld [vmem:[#allocation2 + $0x68] sm:$0xff] }
 0x280   : > { %v1751_v42 = vadd.f32 %v1678_v1, %v1485_v58  ;;  %4102 = vmatmul.mubr.msk.bf16.vlgmr.msra.gmra.mxu0 %vm243_vm0, %v1921_v40  ;;  %v1895_v16 = vmax.f32 %v1867_v55, 0.0  ;;  %v1892_v13 = vmax.f32 %v1864_v52, 0.0  ;;  %v1812_v17 = vadd.f32 %v5230_v46, %v1780_v11  ;;  %v1840_v58 = vld [vmem:[#allocation2 + $0x50] sm:$0xff] }
 0x281   : > { %v4087_v18 = vpop.f32.mrf.mxu1  ;;  %4105 = vmatprep.mubr.msk.bf16.mxu0 %vm243_vm0, %v1922_v50  ;;  %v1752_v8 = vadd.f32 %v4083_v22, %v1490_v32  ;;  %v1894_v20 = vmax.f32 %v1866_v63, 0.0  ;;  %v1814_v29 = vadd.f32 %v5230_v46, %v1782_v24  ;;  %v1869_v47 = vadd.f32 %v1841_v12, %v1813_v37  ;;  %v1844_v24 = vld [vmem:[#allocation2 + $0x70] sm:$0xff] }
 0x282   : > { %v1783_v27 = vmul.f32 %v5218_v9, %v1751_v42  ;;  %v1785_v56 = vmul.f32 %v5218_v9, %v1753_v31  ;;  %v1923_v44 = vpack.c.bf16 %v1893_v38, %v1892_v13  ;;  %v1509_v7 = vadd.f32 %v5182_v15, %v5172_v48  ;;  %v1846_v31 = vld [vmem:[#allocation2 + $0x80] sm:$0xff]  ;;  %v6122_v12 = vld [vmem:[#allocation42_spill] sm:$0xff] }
 0x283   : > { %v1691_v26 = vpop.f32.mrf.mxu1  ;;  %v1924_v39 = vpack.c.bf16 %v1895_v16, %v1894_v20  ;;  %v1868_v22 = vadd.f32 %v1840_v58, %v1812_v17  ;;  %v1784_v23 = vmul.f32 %v5218_v9, %v1752_v8  ;;  %v1870_v33 = vadd.f32 %v1842_v30, %v1814_v29  ;;  %v6120_v13 = vld [vmem:[#allocation36_spill] sm:$0xff]  ;;  %v6121_v20 = vld [vmem:[#allocation38_spill] sm:$0xff] }
 0x284   : > { %v1815_v21 = vadd.f32 %v5230_v46, %v1783_v27  ;;  %v1754_v14 = vadd.f32 %v1691_v26, %v1498_v54  ;;  %v1506_v36 = vadd.f32 %v5174_v3, %v5164_v45  ;;  %v1897_v59 = vmax.f32 %v1869_v47, 0.0  ;;  %v1845_v3 = vld [vmem:[#allocation2 + $0x78] sm:$0xff] }
 0x285   : > { %v4088_v53 = vpop.f32.mrf.mxu1  ;;  %v1817_v15 = vadd.f32 %v5230_v46, %v1785_v56  ;;  %v1514_v40 = vadd.f32 %v5194_v61, %v5184_v34  ;;  %v1896_v0 = vmax.f32 %v1868_v22, 0.0  ;;  %v1816_v55 = vadd.f32 %v5230_v46, %v1784_v23  ;;  %v1847_v34 = vld [vmem:[#allocation2 + $0x88] sm:$0xff] }
 0x286   : > { %v1871_v5 = vadd.f32 %v1843_v43, %v1815_v21  ;;  %v1786_v41 = vmul.f32 %v5218_v9, %v1754_v14  ;;  %v1757_v48 = vadd.f32 %v4088_v53, %v1509_v7  ;;  %v1756_v50 = vadd.f32 %v4087_v18, %v1506_v36  ;;  %v6123_v56 = vld [vmem:[#allocation41_spill] sm:$0xff]  ;;  %v6124_v43 = vld [vmem:[#allocation44_spill] sm:$0xff] }
 0x287   : > { %v1694_v35 = vpop.f32.mrf.mxu1  ;;  %v1517_v25 = vadd.f32 %v5202_v10, %v5192_v60  ;;  %v1898_v52 = vmax.f32 %v1870_v33, 0.0  ;;  %v1873_v27 = vadd.f32 %v1845_v3, %v1817_v15  ;;  %v1925_v63 = vpack.c.bf16 %v1897_v59, %v1896_v0  ;;  %v1849_v7 = vld [vmem:[#allocation2 + $0x98] sm:$0xff]  ;;  %v1848_v59 = vld [vmem:[#allocation2 + $0x90] sm:$0xff]  ;;  %v1850_v0 = vld [vmem:[#allocation2 + $0xa0] sm:$0xff] }
 0x288   : > { %v1755_v19 = vadd.f32 %v1694_v35, %v1501_v4  ;;  %4106 = vmatmul.mubr.msk.bf16.gmra.mxu0 %vm243_vm0, %v1923_v44  ;;  %v1899_v57 = vmax.f32 %v1871_v5, 0.0  ;;  %v1818_v45 = vadd.f32 %v5230_v46, %v1786_v41  ;;  %v1789_v61 = vmul.f32 %v5218_v9, %v1757_v48  ;;  %v6119_v4 = vld [vmem:[#allocation35_spill] sm:$0xff]  ;;  %v1851_v41 = vld [vmem:[#allocation2 + $0xa8] sm:$0xff]  ;;  %v6128_v3 = vld [vmem:[#allocation40_spill] sm:$0xff] }
 0x289   : > { %v4091_v49 = vpop.f32.mrf.mxu1  ;;  %4109 = vmatprep.mubr.msk.bf16.mxu0 %vm243_vm0, %v1924_v39  ;;  %v1525_v18 = vadd.f32 %v5198_v2, %v5188_v51  ;;  %v1872_v10 = vadd.f32 %v1844_v24, %v1816_v55  ;;  %v1788_v60 = vmul.f32 %v5218_v9, %v1756_v50  ;;  %v1522_v17 = vadd.f32 %v6120_v13, %v6119_v4 }
 0x28a   : > { %v1787_v28 = vmul.f32 %v5218_v9, %v1755_v19  ;;  %v1926_v37 = vpack.c.bf16 %v1899_v57, %v1898_v52  ;;  %v1874_v54 = vadd.f32 %v1846_v31, %v1818_v45  ;;  %v1901_v8 = vmax.f32 %v1873_v27, 0.0  ;;  %v6126_v57 = vld [vmem:[#allocation43_spill] sm:$0xff]  ;;  %v6127_v52 = vld [vmem:[#allocation37_spill] sm:$0xff] }
 0x28b   : > { %v1707_v1 = vpop.f32.mrf.mxu1  ;;  %v1821_v2 = vadd.f32 %v5230_v46, %v1789_v61  ;;  %v1530_v29 = vadd.f32 %v6122_v12, %v6121_v20  ;;  %v1533_v19 = vadd.f32 %v6124_v43, %v6123_v56  ;;  %v1900_v44 = vmax.f32 %v1872_v10, 0.0  ;;  %v1855_v31 = vld [vmem:[#allocation2 + $0xc8] sm:$0xff]  ;;  %v1856_v56 = vld [vmem:[#allocation2 + $0xd0] sm:$0xff] }
 0x28c   : > { %v1819_v62 = vadd.f32 %v5230_v46, %v1787_v28  ;;  %v1758_v11 = vadd.f32 %v1707_v1, %v1514_v40  ;;  %v1820_v58 = vadd.f32 %v5230_v46, %v1788_v60  ;;  %v1760_v5 = vadd.f32 %v4091_v49, %v1522_v17  ;;  %v6125_v40 = vld [vmem:[#allocation39_spill] sm:$0xff]  ;;  %v1854_v17 = vld [vmem:[#allocation2 + $0xc0] sm:$0xff] }
 0x28d   : > { %v4092_v42 = vpop.f32.mrf.mxu1  ;;  %v1902_v39 = vmax.f32 %v1874_v54, 0.0  ;;  %v1877_v28 = vadd.f32 %v1849_v7, %v1821_v2  ;;  %v1927_v36 = vpack.c.bf16 %v1901_v8, %v1900_v44  ;;  %v1538_v45 = vadd.f32 %v6128_v3, %v6127_v52  ;;  %v4335_v7 = vld [vmem:[%s6020_s4 + $0xe0] sm:$0xff]  }
 0x28e   : > { %v1875_v26 = vadd.f32 %v1847_v34, %v1819_v62  ;;  %v1790_v16 = vmul.f32 %v5218_v9, %v1758_v11  ;;  %v1761_v51 = vadd.f32 %v4092_v42, %v1525_v18  ;;  %v1541_v62 = vadd.f32 %v6126_v57, %v6125_v40  ;;  %v5371_v40 = vld [vmem:[%s4680_s23 + $0xa] ss:$0 sm:$0xff] }
 0x28f   : > { %v1710_v6 = vpop.f32.mrf.mxu1  ;;  %v1876_v42 = vadd.f32 %v1848_v59, %v1820_v58  ;;  %v1792_v49 = vmul.f32 %v5218_v9, %v1760_v5  ;;  %v1905_v11 = vmax.f32 %v1877_v28, 0.0  ;;  %v4330_v5 = vld [vmem:[%s6020_s4 + $0xb0] sm:$0xff]   ;;  %v4334_v28 = vld [vmem:[%s6020_s4 + $0x98] sm:$0xff]  }
 0x290   : > { %v1759_v32 = vadd.f32 %v1710_v6, %v1517_v25  ;;  %4110 = vmatmul.mubr.msk.bf16.gmra.mxu0 %vm243_vm0, %v1925_v63  ;;  %v1903_v14 = vmax.f32 %v1875_v26, 0.0  ;;  %v1822_v22 = vadd.f32 %v5230_v46, %v1790_v16  ;;  %v1793_v33 = vmul.f32 %v5218_v9, %v1761_v51  ;;  %v1852_v16 = vld [vmem:[#allocation2 + $0xb0] sm:$0xff] }
 0x291   : > { %v4095_v38 = vpop.f32.mrf.mxu1  ;;  %4113 = vmatprep.mubr.msk.bf16.mxu0 %vm243_vm0, %v1926_v37  ;;  %v1904_v63 = vmax.f32 %v1876_v42, 0.0  ;;  %v1824_v24 = vadd.f32 %v5230_v46, %v1792_v49  ;;  %v1853_v37 = vld [vmem:[#allocation2 + $0xb8] sm:$0xff] }
 0x292   : > { %v1791_v21 = vmul.f32 %v5218_v9, %v1759_v32  ;;  %v1928_v48 = vpack.c.bf16 %v1903_v14, %v1902_v39  ;;  %v1878_v50 = vadd.f32 %v1850_v0, %v1822_v22  ;;  %v1825_v6 = vadd.f32 %v5230_v46, %v1793_v33  ;;  %v1857_v14 = vld [vmem:[#allocation2 + $0xd8] sm:$0xff]  ;;  %v4333_v39 = vld [vmem:[%s6020_s4 + $0xe8] sm:$0xff]  }
 0x293   : > { %v1723_v53 = vpop.f32.mrf.mxu1  ;;  %v1764_v26 = vadd.f32 %v4095_v38, %v1538_v45  ;;  %v1929_v54 = vpack.c.bf16 %v1905_v11, %v1904_v63  ;;  %v1880_v4 = vadd.f32 %v1852_v16, %v1824_v24  ;;  %4169 = vmatprep.subr.bf16.mxu0 %v4333_v39  ;;  %v4331_v22 = vld [vmem:[%s6020_s4 + $0xa8] sm:$0xff]  }
 0x294   : > { %v1823_v35 = vadd.f32 %v5230_v46, %v1791_v21  ;;  %v1762_v23 = vadd.f32 %v1723_v53, %v1530_v29  ;;  %v1906_v32 = vmax.f32 %v1878_v50, 0.0  ;;  %v1881_v10 = vadd.f32 %v1853_v37, %v1825_v6  ;;  %4170 = vmatpush3.bf16.msra.mxu0 %v4333_v39  ;;  %v5363_v33 = vld [vmem:[%s4680_s23 + $0x8] ss:$0 sm:$0xff] }
 0x295   : > { %v4096_v47 = vpop.f32.mrf.mxu1  ;;  %v1796_v13 = vmul.f32 %v5218_v9, %v1764_v26  ;;  %v1908_v20 = vmax.f32 %v1880_v4, 0.0  ;;  %4171 = vmatprep.subr.bf16.mxu0 %v4335_v7  ;;  %v6132_v39 = vld [vmem:[#allocation9_spill] sm:$0xff] }
 0x296   : > { %v1879_v15 = vadd.f32 %v1851_v41, %v1823_v35  ;;  %v1794_v25 = vmul.f32 %v5218_v9, %v1762_v23  ;;  %v1765_v27 = vadd.f32 %v4096_v47, %v1541_v62  ;;  %v1909_v38 = vmax.f32 %v1881_v10, 0.0  ;;  %v4336_v23 = vld [vmem:[%s6020_s4 + $0xd8] sm:$0xff]  }
 0x297   : > { %v1726_v30 = vpop.f32.mrf.mxu1  ;;  %v1828_v12 = vadd.f32 %v5230_v46, %v1796_v13  ;;  %v4339_v13 = vld [vmem:[%s6020_s4 + $0xc8] sm:$0xff]  }
 0x298   : > { %v1763_v1 = vadd.f32 %v1726_v30, %v1533_v19  ;;  %4114 = vmatmul.mubr.msk.bf16.gmra.mxu0 %vm243_vm0, %v1927_v36  ;;  %v1907_v61 = vmax.f32 %v1879_v15, 0.0  ;;  %v1826_v18 = vadd.f32 %v5230_v46, %v1794_v25  ;;  %v1797_v60 = vmul.f32 %v5218_v9, %v1765_v27  ;;  %v4332_v30 = vld [vmem:[%s6020_s4 + $0xa0] sm:$0xff]   ;;  %v5367_v36 = vld [vmem:[%s4680_s23 + $0x9] ss:$0 sm:$0xff] }
 0x299   : > { %4117 = vmatprep.mubr.msk.bf16.mxu0 %vm243_vm0, %v1928_v48  ;;  %v1931_v47 = vpack.c.bf16 %v1909_v38, %v1908_v20  ;;  %4172 = vmatpush3.bf16.msra.mxu0 %v4335_v7  ;;  %v6130_v38 = vld [vmem:[#allocation7_spill] sm:$0xff] }
 0x29a   : > { %v1795_v55 = vmul.f32 %v5218_v9, %v1763_v1  ;;  %v1930_v53 = vpack.c.bf16 %v1907_v61, %v1906_v32  ;;  %v1882_v8 = vadd.f32 %v1854_v17, %v1826_v18  ;;  %v1829_v2 = vadd.f32 %v5230_v46, %v1797_v60  ;;  %4173 = vmatprep.subr.bf16.mxu0 %v4336_v23  ;;  %v4337_v61 = vld [vmem:[%s6020_s4 + $0x90] sm:$0xff]  }
 0x29b   : > { %v1884_v9 = vadd.f32 %v1856_v56, %v1828_v12 }
 0x29c   : > { %v1827_v34 = vadd.f32 %v5230_v46, %v1795_v55  ;;  %v1910_v29 = vmax.f32 %v1882_v8, 0.0  ;;  %v1885_v35 = vadd.f32 %v1857_v14, %v1829_v2  ;;  %v4329_v46 = vld [vmem:[%s6020_s4 + $0xb8] sm:$0xff]  }
 0x29d   : > { %v1912_v44 = vmax.f32 %v1884_v9, 0.0  ;;  %4129 = vmatprep.subr.bf16.mxu1 %v4329_v46  ;;  %4174 = vmatpush3.bf16.msra.mxu0 %v4336_v23 }
 0x29e   : > { %v1883_v21 = vadd.f32 %v1855_v31, %v1827_v34  ;;  %v1913_v19 = vmax.f32 %v1885_v35, 0.0  ;;  %4130 = vmatpush3.bf16.msra.mxu1 %v4329_v46  ;;  %v4338_v34 = vld [vmem:[%s6020_s4 + $0xd0] sm:$0xff]   ;;  %v6129_v31 = vld [vmem:[#allocation8_spill] sm:$0xff] }
 0x29f   : > { %4131 = vmatprep.subr.bf16.mxu1 %v4330_v5  ;;  %4175 = vmatprep.subr.bf16.mxu0 %v4338_v34 }
 0x2a0   : > { %4118 = vmatmul.mubr.msk.bf16.gmra.mxu0 %vm243_vm0, %v1929_v54  ;;  %v1911_v51 = vmax.f32 %v1883_v21, 0.0  ;;  %v1933_v58 = vpack.c.bf16 %v1913_v19, %v1912_v44 }
 0x2a1   : > { %4121 = vmatprep.mubr.msk.bf16.mxu0 %vm243_vm0, %v1930_v53  ;;  %4176 = vmatpush3.bf16.msra.mxu0 %v4338_v34 }
 0x2a2   : > { %v1932_v43 = vpack.c.bf16 %v1911_v51, %v1910_v29  ;;  %4132 = vmatpush3.bf16.msra.mxu1 %v4330_v5  ;;  %4177 = vmatprep.subr.bf16.mxu0 %v4339_v13 }
 0x2a3   : > { %4133 = vmatprep.subr.bf16.mxu1 %v4331_v22 }
 0x2a5   : > { %4178 = vmatpush3.bf16.msra.mxu0 %v4339_v13 }
 0x2a6   : > { %4134 = vmatpush3.bf16.msra.mxu1 %v4331_v22  ;;  %v4341_v22 = vld [vmem:[%s6020_s4 + $0xc0] sm:$0xff]  }
 0x2a7   : > { %4135 = vmatprep.subr.bf16.mxu1 %v4332_v30  ;;  %4179 = vmatprep.subr.bf16.mxu0 %v4341_v22 }
 0x2a8   : > { %4122 = vmatmul.mubr.msk.bf16.gmra.mxu0 %vm243_vm0, %v1931_v47  ;;  %v6131_v47 = vld [vmem:[#allocation10_spill] sm:$0xff] }
 0x2a9   : > { %4125 = vmatprep.mubr.msk.bf16.mxu0 %vm243_vm0, %v1932_v43  ;;  %4180 = vmatpush3.bf16.msra.mxu0 %v4341_v22 }
 0x2aa   : > { %4136 = vmatpush3.bf16.msra.mxu1 %v4332_v30 }
 0x2ab   : > { %4137 = vmatprep.subr.bf16.mxu1 %v4334_v28 }
 0x2ae   : > { %4138 = vmatpush3.bf16.msra.mxu1 %v4334_v28 }
 0x2af   : > { %4139 = vmatprep.subr.bf16.mxu1 %v4337_v61 }
 0x2b0   : > { %4126 = vmatmul.mubr.msk.bf16.gmra.mxu0 %vm243_vm0, %v1933_v58  ;;  %v5420_v58 = vld [vmem:[%s6020_s4 + $0x118] sm:$0xff]  }
 0x2b2   : > { %4140 = vmatpush3.bf16.msra.mxu1 %v4337_v61 }
 0x2b3   : > { %4209 = vmatprep.subr.bf16.mxu1 %v5420_v58 }
 0x340   : > { %v4103_v41 = vpop.f32.mrf.mxu0 }
 0x341   : > { %v2040_v1 = vadd.f32 %v4103_v41, %v5363_v33 }
 0x342   : > { %v2031_v59 = vpop.f32.mrf.mxu0 }
 0x343   : > { %v2144_v15 = vmax.f32 %v2040_v1, 0.0  ;;  %v2032_v48 = vadd.f32 %v5363_v33, %v2031_v59 }
 0x344   : > { %v4104_v57 = vpop.f32.mrf.mxu0 }
 0x345   : > { %2172 = vst.msk [vmem:[#allocation2 + $0x10] sm:$0xff] %vm243_vm0, %v2144_v15  ;;  %v2204_v62 = vmul.f32 %v5367_v36, %v2144_v15  ;;  %v2142_v42 = vmax.f32 %v2032_v48, 0.0  ;;  %v2043_v49 = vadd.f32 %v4104_v57, %v5363_v33  ;;  %v6133_v48 = vld [vmem:[#allocation13_spill] sm:$0xff] }
 0x346   : > { %v2034_v0 = vpop.f32.mrf.mxu0 }
 0x347   : > { %v2236_v55 = vadd.f32 %v5371_v40, %v2204_v62  ;;  %2170 = vst.msk [vmem:[#allocation2] sm:$0xff] %vm243_vm0, %v2142_v42  ;;  %v2202_v50 = vmul.f32 %v5367_v36, %v2142_v42  ;;  %v2145_v25 = vmax.f32 %v2043_v49, 0.0  ;;  %v2035_v52 = vadd.f32 %v5363_v33, %v2034_v0  ;;  %v6134_v62 = vld [vmem:[#allocation11_spill] sm:$0xff] }
 0x348   : > { %v4107_v3 = vpop.f32.mrf.mxu0 }
 0x349   : > { %v2264_v45 = vmax.f32 %v2236_v55, 0.0  ;;  %v2234_v11 = vadd.f32 %v5371_v40, %v2202_v50  ;;  %2173 = vst.msk [vmem:[#allocation2 + $0x18] sm:$0xff] %vm243_vm0, %v2145_v25  ;;  %v2205_v6 = vmul.f32 %v5367_v36, %v2145_v25  ;;  %v2143_v27 = vmax.f32 %v2035_v52, 0.0 }
 0x34a   : > { %v2056_v63 = vadd.f32 %v4107_v3, %v5363_v33  ;;  %v2047_v24 = vpop.f32.mrf.mxu0 }
 0x34b   : > { %v2262_v26 = vmax.f32 %v2234_v11, 0.0  ;;  %v2237_v32 = vadd.f32 %v5371_v40, %v2205_v6  ;;  %2171 = vst.msk [vmem:[#allocation2 + $0x8] sm:$0xff] %vm243_vm0, %v2143_v27  ;;  %v2203_v37 = vmul.f32 %v5367_v36, %v2143_v27  ;;  %v2048_v18 = vadd.f32 %v5363_v33, %v2047_v24  ;;  %v6135_v6 = vld [vmem:[#allocation14_spill] sm:$0xff] }
 0x34c   : > { %v2148_v10 = vmax.f32 %v2056_v63, 0.0  ;;  %v4108_v60 = vpop.f32.mrf.mxu0  ;;  %v5395_v54 = vmul.f32 %v2264_v45, %v6129_v31 }
 0x34d   : > { %v2265_v16 = vmax.f32 %v2237_v32, 0.0  ;;  %v2235_v21 = vadd.f32 %v5371_v40, %v2203_v37  ;;  %v2146_v53 = vmax.f32 %v2048_v18, 0.0  ;;  %v2059_v4 = vadd.f32 %v4108_v60, %v5363_v33  ;;  %v6136_v18 = vld [vmem:[#allocation12_spill] sm:$0xff] }
 0x34e   : > { %2176 = vst.msk [vmem:[#allocation2 + $0x30] sm:$0xff] %vm243_vm0, %v2148_v10  ;;  %v2208_v17 = vmul.f32 %v5367_v36, %v2148_v10  ;;  %v2050_v8 = vpop.f32.mrf.mxu0  ;;  %v2290_v2 = vmul.f32 %v2262_v26, %v6130_v38  ;;  %2320 = vst.msk [vmem:[#allocation3 + $0x18] sm:$0xff] %vm243_vm0, %v5395_v54 }
 0x34f   : > { %v2263_v51 = vmax.f32 %v2235_v21, 0.0  ;;  %2174 = vst.msk [vmem:[#allocation2 + $0x20] sm:$0xff] %vm243_vm0, %v2146_v53  ;;  %v2206_v20 = vmul.f32 %v5367_v36, %v2146_v53  ;;  %v2149_v12 = vmax.f32 %v2059_v4, 0.0  ;;  %v2051_v29 = vadd.f32 %v5363_v33, %v2050_v8 }
 0x350   : > { %v2240_v14 = vadd.f32 %v5371_v40, %v2208_v17  ;;  %v4111_v35 = vpop.f32.mrf.mxu0  ;;  %2318 = vst.msk [vmem:[#allocation3 + $0x8] sm:$0xff] %vm243_vm0, %v2290_v2  ;;  %v2293_v56 = vmul.f32 %v2265_v16, %v6131_v47 }
 0x351   : > { %v2238_v43 = vadd.f32 %v5371_v40, %v2206_v20  ;;  %2177 = vst.msk [vmem:[#allocation2 + $0x38] sm:$0xff] %vm243_vm0, %v2149_v12  ;;  %v2209_v9 = vmul.f32 %v5367_v36, %v2149_v12  ;;  %v2147_v19 = vmax.f32 %v2051_v29, 0.0  ;;  %v2072_v44 = vadd.f32 %v4111_v35, %v5363_v33  ;;  %v6137_v12 = vld [vmem:[#allocation17_spill] sm:$0xff] }
 0x352   : > { %v2268_v46 = vmax.f32 %v2240_v14, 0.0  ;;  %v2063_v5 = vpop.f32.mrf.mxu0  ;;  %v2291_v7 = vmul.f32 %v2263_v51, %v6132_v39  ;;  %2321 = vst.msk [vmem:[#allocation3 + $0x20] sm:$0xff] %vm243_vm0, %v2293_v56  ;;  %v2417_v24 = vpack.c.bf16 %v2293_v56, %v5395_v54 }
 0x353   : > { %v2266_v23 = vmax.f32 %v2238_v43, 0.0  ;;  %v2241_v30 = vadd.f32 %v5371_v40, %v2209_v9  ;;  %2175 = vst.msk [vmem:[#allocation2 + $0x28] sm:$0xff] %vm243_vm0, %v2147_v19  ;;  %v2207_v28 = vmul.f32 %v5367_v36, %v2147_v19  ;;  %v2152_v41 = vmax.f32 %v2072_v44, 0.0  ;;  %v6138_v9 = vld [vmem:[#allocation15_spill] sm:$0xff] }
 0x354   : > { %v2064_v1 = vadd.f32 %v5363_v33, %v2063_v5  ;;  %v4112_v59 = vpop.f32.mrf.mxu0  ;;  %2319 = vst.msk [vmem:[#allocation3 + $0x10] sm:$0xff] %vm243_vm0, %v2291_v7  ;;  %v2416_v15 = vpack.c.bf16 %v2291_v7, %v2290_v2  ;;  %v5434_v57 = vmul.f32 %v2268_v46, %v6133_v48 }
 0x355   : > { %v5437_v42 = vmul.f32 %v2266_v23, %v6134_v62  ;;  %v2269_v49 = vmax.f32 %v2241_v30, 0.0  ;;  %v2239_v0 = vadd.f32 %v5371_v40, %v2207_v28  ;;  %2180 = vst.msk [vmem:[#allocation2 + $0x50] sm:$0xff] %vm243_vm0, %v2152_v41  ;;  %v2212_v55 = vmul.f32 %v5367_v36, %v2152_v41 }
 0x356   : > { %v2150_v50 = vmax.f32 %v2064_v1, 0.0  ;;  %v2075_v25 = vadd.f32 %v4112_v59, %v5363_v33  ;;  %2458 = vrot.lane.b32.xlu0 %v2416_v15, %s4411_s10  ;;  %v2066_v52 = vpop.f32.mrf.mxu0  ;;  %2324 = vst.msk [vmem:[#allocation3 + $0x38] sm:$0xff] %vm243_vm0, %v5434_v57 }
 0x357   : > { %2322 = vst.msk [vmem:[#allocation3 + $0x28] sm:$0xff] %vm243_vm0, %v5437_v42  ;;  %v2267_v3 = vmax.f32 %v2239_v0, 0.0  ;;  %v2244_v45 = vadd.f32 %v5371_v40, %v2212_v55  ;;  %v2067_v11 = vadd.f32 %v5363_v33, %v2066_v52  ;;  %v5451_v27 = vmul.f32 %v2269_v49, %v6135_v6  ;;  %v6139_v49 = vld [vmem:[#allocation18_spill] sm:$0xff] }
 0x358   : > { %2178 = vst.msk [vmem:[#allocation2 + $0x40] sm:$0xff] %vm243_vm0, %v2150_v50  ;;  %v2210_v61 = vmul.f32 %v5367_v36, %v2150_v50  ;;  %v2153_v34 = vmax.f32 %v2075_v25, 0.0  ;;  %v4115_v63 = vpop.f32.mrf.mxu0 }
 0x359   : > { %v2272_v26 = vmax.f32 %v2244_v45, 0.0  ;;  %v2151_v32 = vmax.f32 %v2067_v11, 0.0  ;;  %v2088_v37 = vadd.f32 %v4115_v63, %v5363_v33  ;;  %v2295_v10 = vmul.f32 %v2267_v3, %v6136_v18  ;;  %2325 = vst.msk [vmem:[#allocation3 + $0x40] sm:$0xff] %vm243_vm0, %v5451_v27  ;;  %v2376_v28 = vld [vmem:[#allocation3 + $0x19] sm:$0xff] }
 0x35a   : > { %v2242_v60 = vadd.f32 %v5371_v40, %v2210_v61  ;;  %2181 = vst.msk [vmem:[#allocation2 + $0x58] sm:$0xff] %vm243_vm0, %v2153_v34  ;;  %v2213_v16 = vmul.f32 %v5367_v36, %v2153_v34  ;;  %2460 = vrot.lane.b32.xlu0 %v2417_v24, %s4411_s10  ;;  %v2079_v21 = vpop.f32.mrf.mxu0  ;;  %v6140_v61 = vld [vmem:[#allocation16_spill] sm:$0xff] }
 0x35b   : > { %2179 = vst.msk [vmem:[#allocation2 + $0x48] sm:$0xff] %vm243_vm0, %v2151_v32  ;;  %v2211_v54 = vmul.f32 %v5367_v36, %v2151_v32  ;;  %v2156_v53 = vmax.f32 %v2088_v37, 0.0  ;;  %v2080_v4 = vadd.f32 %v5363_v33, %v2079_v21  ;;  %v2374_v13 = vld [vmem:[#allocation3 + $0x9] sm:$0xff]  ;;  %v2375_v17 = vld [vmem:[#allocation3 + $0x11] sm:$0xff]  ;;  %2323 = vst.msk [vmem:[#allocation3 + $0x30] sm:$0xff] %vm243_vm0, %v2295_v10  ;;  %v5470_v29 = vmul.f32 %v2272_v26, %v6137_v12 }
 0x35c   : > { %v2270_v8 = vmax.f32 %v2242_v60, 0.0  ;;  %v2245_v2 = vadd.f32 %v5371_v40, %v2213_v16  ;;  %v4116_v51 = vpop.f32.mrf.mxu0  ;;  %v2430_v20 = vpack.c.bf16 %v2375_v17, %v2374_v13  ;;  %v2418_v15 = vpack.c.bf16 %v2295_v10, %v5437_v42  ;;  %v6141_v21 = vld [vmem:[#allocation21_spill] sm:$0xff]  ;;  %v5778_v12 = vld [vmem:[%s4680_s23 + $0xc] ss:$0 sm:$0xff] }
 0x35d   : > { %v2243_v14 = vadd.f32 %v5371_v40, %v2211_v54  ;;  %2184 = vst.msk [vmem:[#allocation2 + $0x70] sm:$0xff] %vm243_vm0, %v2156_v53  ;;  %v2216_v35 = vmul.f32 %v5367_v36, %v2156_v53  ;;  %v2154_v56 = vmax.f32 %v2080_v4, 0.0  ;;  %v2091_v43 = vadd.f32 %v4116_v51, %v5363_v33  ;;  %2328 = vst.msk [vmem:[#allocation3 + $0x58] sm:$0xff] %vm243_vm0, %v5470_v29  ;;  %v6142_v53 = vld [vmem:[#allocation19_spill] sm:$0xff] }
 0x35e   : > { %v5477_v19 = vmul.f32 %v2270_v8, %v6138_v9  ;;  %v2273_v44 = vmax.f32 %v2245_v2, 0.0  ;;  %2500 = vrot.lane.b32.xlu1 %v2430_v20, %s4412_s25  ;;  %v2082_v46 = vpop.f32.mrf.mxu0  ;;  %v2377_v5 = vld [vmem:[#allocation3 + $0x21] sm:$0xff]  ;;  %v2419_v60 = vpack.c.bf16 %v5451_v27, %v5434_v57 }
 0x35f   : > { %v2271_v7 = vmax.f32 %v2243_v14, 0.0  ;;  %v2248_v22 = vadd.f32 %v5371_v40, %v2216_v35  ;;  %2182 = vst.msk [vmem:[#allocation2 + $0x60] sm:$0xff] %vm243_vm0, %v2154_v56  ;;  %v2214_v23 = vmul.f32 %v5367_v36, %v2154_v56  ;;  %v2157_v30 = vmax.f32 %v2091_v43, 0.0  ;;  %v6143_v43 = vld [vmem:[#allocation22_spill] sm:$0xff] }
 0x360   : > { %2326 = vst.msk [vmem:[#allocation3 + $0x48] sm:$0xff] %vm243_vm0, %v5477_v19  ;;  %v2083_v41 = vadd.f32 %v5363_v33, %v2082_v46  ;;  %v4119_v1 = vpop.f32.mrf.mxu0  ;;  %v2431_v59 = vpack.c.bf16 %v2377_v5, %v2376_v28  ;;  %v5490_v0 = vmul.f32 %v2273_v44, %v6139_v49  ;;  %v2380_v35 = vld [vmem:[#allocation3 + $0x39] sm:$0xff] }
 0x361   : > { %v2276_v55 = vmax.f32 %v2248_v22, 0.0  ;;  %v2246_v50 = vadd.f32 %v5371_v40, %v2214_v23  ;;  %2185 = vst.msk [vmem:[#allocation2 + $0x78] sm:$0xff] %vm243_vm0, %v2157_v30  ;;  %v2217_v25 = vmul.f32 %v5367_v36, %v2157_v30  ;;  %v2104_v52 = vadd.f32 %v4119_v1, %v5363_v33 }
 0x362   : > { %v2155_v3 = vmax.f32 %v2083_v41, 0.0  ;;  %2502 = vrot.lane.b32.xlu0 %v2431_v59, %s4412_s25  ;;  %2462 = vrot.lane.b32.xlu1 %v2418_v15, %s4411_s10  ;;  %v2095_v45 = vpop.f32.mrf.mxu0  ;;  %v2378_v11 = vld [vmem:[#allocation3 + $0x29] sm:$0xff]  ;;  %v2379_v42 = vld [vmem:[#allocation3 + $0x31] sm:$0xff]  ;;  %v2299_v34 = vmul.f32 %v2271_v7, %v6140_v61  ;;  %2329 = vst.msk [vmem:[#allocation3 + $0x60] sm:$0xff] %vm243_vm0, %v5490_v0 }
 0x363   : > { %v2274_v63 = vmax.f32 %v2246_v50, 0.0  ;;  %v2249_v24 = vadd.f32 %v5371_v40, %v2217_v25  ;;  %v2160_v26 = vmax.f32 %v2104_v52, 0.0  ;;  %v2096_v32 = vadd.f32 %v5363_v33, %v2095_v45 }
 0x364   : > { %2183 = vst.msk [vmem:[#allocation2 + $0x68] sm:$0xff] %vm243_vm0, %v2155_v3  ;;  %v2215_v37 = vmul.f32 %v5367_v36, %v2155_v3  ;;  %v4120_v10 = vpop.f32.mrf.mxu0  ;;  %v2432_v16 = vpack.c.bf16 %v2379_v42, %v2378_v11  ;;  %2327 = vst.msk [vmem:[#allocation3 + $0x50] sm:$0xff] %vm243_vm0, %v2299_v34  ;;  %v5509_v54 = vmul.f32 %v2276_v55, %v6141_v21  ;;  %v6144_v55 = vld [vmem:[#allocation20_spill] sm:$0xff] }
 0x365   : > { %v5512_v4 = vmul.f32 %v2274_v63, %v6142_v53  ;;  %v2277_v13 = vmax.f32 %v2249_v24, 0.0  ;;  %2188 = vst.msk [vmem:[#allocation2 + $0x90] sm:$0xff] %vm243_vm0, %v2160_v26  ;;  %v2220_v17 = vmul.f32 %v5367_v36, %v2160_v26  ;;  %v2158_v8 = vmax.f32 %v2096_v32, 0.0  ;;  %v6145_v26 = vld [vmem:[#allocation25_spill] sm:$0xff]  ;;  %v5775_v53 = vld [vmem:[%s4680_s23 + $0xb] ss:$0 sm:$0xff] }
 0x366   : > { %v2247_v2 = vadd.f32 %v5371_v40, %v2215_v37  ;;  %v2107_v51 = vadd.f32 %v4120_v10, %v5363_v33  ;;  %2464 = vrot.lane.b32.xlu0 %v2419_v60, %s4411_s10  ;;  %2504 = vrot.lane.b32.xlu1 %v2432_v16, %s4412_s25  ;;  %v2098_v57 = vpop.f32.mrf.mxu0  ;;  %2332 = vst.msk [vmem:[#allocation3 + $0x78] sm:$0xff] %vm243_vm0, %v5509_v54  ;;  %v6146_v37 = vld [vmem:[#allocation23_spill] sm:$0xff]  ;;  %s230_s23 = sand.u32 1, %s4399_s19  }
 0x367   : > { %2330 = vst.msk [vmem:[#allocation3 + $0x68] sm:$0xff] %vm243_vm0, %v5512_v4  ;;  %v2252_v27 = vadd.f32 %v5371_v40, %v2220_v17  ;;  %2186 = vst.msk [vmem:[#allocation2 + $0x80] sm:$0xff] %vm243_vm0, %v2158_v8  ;;  %v2218_v20 = vmul.f32 %v5367_v36, %v2158_v8  ;;  %v2099_v14 = vadd.f32 %v5363_v33, %v2098_v57  ;;  %v2381_v56 = vld [vmem:[#allocation3 + $0x41] sm:$0xff]  ;;  %s231_s8 = scalar_lea.vmem [#allocation4], %s230_s23  ;;  %s3476_s15 = scalar_lea.sflag [#allocation5], %s230_s23 }
 0x368   : > { %v5529_v44 = vmul.f32 %v2277_v13, %v6143_v43  ;;  %v2275_v46 = vmax.f32 %v2247_v2, 0.0  ;;  %v2161_v5 = vmax.f32 %v2107_v51, 0.0  ;;  %v4123_v7 = vpop.f32.mrf.mxu0  ;;  %v2433_v22 = vpack.c.bf16 %v2381_v56, %v2380_v35  ;;  %s3488_s11 = sshll.u32 %s231_s8, 4  ;;  %s3489_s11 = int_to_ptr.vmem [resolvable:$true] %s3488_s11 }
 0x369   : > { %v2420_v23 = vpack.c.bf16 %v2299_v34, %v5477_v19  ;;  %v2280_v30 = vmax.f32 %v2252_v27, 0.0  ;;  %v2250_v28 = vadd.f32 %v5371_v40, %v2218_v20  ;;  %v2159_v41 = vmax.f32 %v2099_v14, 0.0  ;;  %v2384_v20 = vld [vmem:[#allocation3 + $0x59] sm:$0xff] }
 0x36a   : > { %v2120_v1 = vadd.f32 %v4123_v7, %v5363_v33  ;;  %2333 = vst.msk [vmem:[#allocation3 + $0x80] sm:$0xff] %vm243_vm0, %v5529_v44  ;;  %2189 = vst.msk [vmem:[#allocation2 + $0x98] sm:$0xff] %vm243_vm0, %v2161_v5  ;;  %v2221_v59 = vmul.f32 %v5367_v36, %v2161_v5  ;;  %2506 = vrot.lane.b32.xlu0 %v2433_v22, %s4412_s25  ;;  %v2111_v15 = vpop.f32.mrf.mxu0  ;;  %v2303_v19 = vmul.f32 %v2275_v46, %v6144_v55  ;;  %v6147_v5 = vld [vmem:[#allocation26_spill] sm:$0xff] }
 0x36b   : > { %2466 = vrot.lane.b32.xlu1 %v2420_v23, %s4411_s10  ;;  %v2278_v50 = vmax.f32 %v2250_v28, 0.0  ;;  %2187 = vst.msk [vmem:[#allocation2 + $0x88] sm:$0xff] %vm243_vm0, %v2159_v41  ;;  %v2219_v25 = vmul.f32 %v5367_v36, %v2159_v41  ;;  %v2112_v3 = vadd.f32 %v5363_v33, %v2111_v15  ;;  %v2382_v45 = vld [vmem:[#allocation3 + $0x49] sm:$0xff]  ;;  %v2383_v11 = vld [vmem:[#allocation3 + $0x51] sm:$0xff]  ;;  %v2421_v63 = vpack.c.bf16 %v5490_v0, %v5470_v29 }
 0x36c   : > { %v2164_v52 = vmax.f32 %v2120_v1, 0.0  ;;  %v2253_v42 = vadd.f32 %v5371_v40, %v2221_v59  ;;  %v4124_v34 = vpop.f32.mrf.mxu0  ;;  %v2434_v24 = vpack.c.bf16 %v2383_v11, %v2382_v45  ;;  %2331 = vst.msk [vmem:[#allocation3 + $0x70] sm:$0xff] %vm243_vm0, %v2303_v19  ;;  %v5549_v32 = vmul.f32 %v2280_v30, %v6145_v26  ;;  %v6148_v59 = vld [vmem:[#allocation24_spill] sm:$0xff] }
 0x36d   : > { %v5552_v10 = vmul.f32 %v2278_v50, %v6146_v37  ;;  %v2251_v60 = vadd.f32 %v5371_v40, %v2219_v25  ;;  %v2162_v13 = vmax.f32 %v2112_v3, 0.0  ;;  %v2123_v8 = vadd.f32 %v4124_v34, %v5363_v33 }
 0x36e   : > { %2192 = vst.msk [vmem:[#allocation2 + $0xb0] sm:$0xff] %vm243_vm0, %v2164_v52  ;;  %v2224_v16 = vmul.f32 %v5367_v36, %v2164_v52  ;;  %v2281_v17 = vmax.f32 %v2253_v42, 0.0  ;;  %2468 = vrot.lane.b32.xlu0 %v2421_v63, %s4411_s10  ;;  %v2114_v29 = vpop.f32.mrf.mxu0  ;;  %v2385_v0 = vld [vmem:[#allocation3 + $0x61] sm:$0xff]  ;;  %2336 = vst.msk [vmem:[#allocation3 + $0x98] sm:$0xff] %vm243_vm0, %v5549_v32  ;;  %v2422_v46 = vpack.c.bf16 %v2303_v19, %v5512_v4 }
 0x36f   : > { %2508 = vrot.lane.b32.xlu1 %v2434_v24, %s4412_s25  ;;  %2334 = vst.msk [vmem:[#allocation3 + $0x88] sm:$0xff] %vm243_vm0, %v5552_v10  ;;  %v2279_v2 = vmax.f32 %v2251_v60, 0.0  ;;  %2190 = vst.msk [vmem:[#allocation2 + $0xa0] sm:$0xff] %vm243_vm0, %v2162_v13  ;;  %v2222_v57 = vmul.f32 %v5367_v36, %v2162_v13  ;;  %v2115_v27 = vadd.f32 %v5363_v33, %v2114_v29  ;;  %v2165_v14 = vmax.f32 %v2123_v8, 0.0  ;;  %v6149_v63 = vld [vmem:[#allocation29_spill] sm:$0xff]  ;;  %v6150_v60 = vld [vmem:[#allocation27_spill] sm:$0xff] }
 0x370   : > { %v2256_v51 = vadd.f32 %v5371_v40, %v2224_v16  ;;  %v4127_v35 = vpop.f32.mrf.mxu0  ;;  %v2435_v56 = vpack.c.bf16 %v2385_v0, %v2384_v20  ;;  %v5570_v7 = vmul.f32 %v2281_v17, %v6147_v5  ;;  %v2423_v42 = vpack.c.bf16 %v5529_v44, %v5509_v54 }
 0x371   : > { %v2254_v23 = vadd.f32 %v5371_v40, %v2222_v57  ;;  %v2163_v30 = vmax.f32 %v2115_v27, 0.0  ;;  %v2136_v28 = vadd.f32 %v4127_v35, %v5363_v33  ;;  %2193 = vst.msk [vmem:[#allocation2 + $0xb8] sm:$0xff] %vm243_vm0, %v2165_v14  ;;  %v2225_v41 = vmul.f32 %v5367_v36, %v2165_v14  ;;  %v2388_v20 = vld [vmem:[#allocation3 + $0x79] sm:$0xff] }
 0x372   : > { %v2284_v22 = vmax.f32 %v2256_v51, 0.0  ;;  %2510 = vrot.lane.b32.xlu0 %v2435_v56, %s4412_s25  ;;  %v2127_v1 = vpop.f32.mrf.mxu0  ;;  %v2307_v4 = vmul.f32 %v2279_v2, %v6148_v59  ;;  %2337 = vst.msk [vmem:[#allocation3 + $0xa0] sm:$0xff] %vm243_vm0, %v5570_v7 }
 0x373   : > { %2470 = vrot.lane.b32.xlu1 %v2422_v46, %s4411_s10  ;;  %v2282_v15 = vmax.f32 %v2254_v23, 0.0  ;;  %2191 = vst.msk [vmem:[#allocation2 + $0xa8] sm:$0xff] %vm243_vm0, %v2163_v30  ;;  %v2223_v19 = vmul.f32 %v5367_v36, %v2163_v30  ;;  %v2168_v50 = vmax.f32 %v2136_v28, 0.0  ;;  %v2128_v25 = vadd.f32 %v5363_v33, %v2127_v1  ;;  %v2386_v52 = vld [vmem:[#allocation3 + $0x69] sm:$0xff]  ;;  %v2387_v3 = vld [vmem:[#allocation3 + $0x71] sm:$0xff] }
 0x374   : > { %v2257_v45 = vadd.f32 %v5371_v40, %v2225_v41  ;;  %v4128_v11 = vpop.f32.mrf.mxu0  ;;  %v2436_v34 = vpack.c.bf16 %v2387_v3, %v2386_v52  ;;  %2335 = vst.msk [vmem:[#allocation3 + $0x90] sm:$0xff] %vm243_vm0, %v2307_v4  ;;  %v5589_v24 = vmul.f32 %v2284_v22, %v6149_v63  ;;  %v2424_v56 = vpack.c.bf16 %v2307_v4, %v5552_v10  ;;  %v6151_v46 = vld [vmem:[#allocation30_spill] sm:$0xff]  ;;  %v6152_v41 = vld [vmem:[#allocation28_spill] sm:$0xff] }
 0x375   : > { %v2310_v16 = vmul.f32 %v2282_v15, %v6150_v60  ;;  %v2255_v13 = vadd.f32 %v5371_v40, %v2223_v19  ;;  %2196 = vst.msk [vmem:[#allocation2 + $0xd0] sm:$0xff] %vm243_vm0, %v2168_v50  ;;  %v2228_v17 = vmul.f32 %v5367_v36, %v2168_v50  ;;  %v2166_v8 = vmax.f32 %v2128_v25, 0.0  ;;  %v6153_v50 = vld [vmem:[#allocation33_spill] sm:$0xff] }
 0x376   : > { %v2285_v29 = vmax.f32 %v2257_v45, 0.0  ;;  %v2139_v0 = vadd.f32 %v4128_v11, %v5363_v33  ;;  %2472 = vrot.lane.b32.xlu0 %v2423_v42, %s4411_s10  ;;  %v2130_v54 = vpop.f32.mrf.mxu0  ;;  %v2389_v44 = vld [vmem:[#allocation3 + $0x81] sm:$0xff]  ;;  %2340 = vst.msk [vmem:[#allocation3 + $0xb8] sm:$0xff] %vm243_vm0, %v5589_v24  ;;  %v2425_v3 = vpack.c.bf16 %v5570_v7, %v5549_v32  ;;  %v6154_v11 = vld [vmem:[#allocation31_spill] sm:$0xff]  ;;  %v6155_v32 = vld [vmem:[#allocation34_spill] sm:$0xff] }
 0x377   : > { %2512 = vrot.lane.b32.xlu1 %v2436_v34, %s4412_s25  ;;  %2338 = vst.msk [vmem:[#allocation3 + $0xa8] sm:$0xff] %vm243_vm0, %v2310_v16  ;;  %v2283_v2 = vmax.f32 %v2255_v13, 0.0  ;;  %v2260_v51 = vadd.f32 %v5371_v40, %v2228_v17  ;;  %2194 = vst.msk [vmem:[#allocation2 + $0xc0] sm:$0xff] %vm243_vm0, %v2166_v8  ;;  %v2226_v57 = vmul.f32 %v5367_v36, %v2166_v8 }
 0x378   : > { %v2131_v27 = vadd.f32 %v5363_v33, %v2130_v54  ;;  %v2169_v14 = vmax.f32 %v2139_v0, 0.0  ;;  %v2437_v35 = vpack.c.bf16 %v2389_v44, %v2388_v20  ;;  %v2313_v22 = vmul.f32 %v2285_v29, %v6151_v46  ;;  %v6156_v54 = vld [vmem:[#allocation32_spill] sm:$0xff] }
 0x379   : > { %v2288_v23 = vmax.f32 %v2260_v51, 0.0  ;;  %v2258_v30 = vadd.f32 %v5371_v40, %v2226_v57  ;;  %v2311_v1 = vmul.f32 %v2283_v2, %v6152_v41 }
 0x37a   : > { %v2167_v28 = vmax.f32 %v2131_v27, 0.0  ;;  %2197 = vst.msk [vmem:[#allocation2 + $0xd8] sm:$0xff] %vm243_vm0, %v2169_v14  ;;  %v2229_v15 = vmul.f32 %v5367_v36, %v2169_v14  ;;  %2514 = vrot.lane.b32.xlu0 %v2437_v35, %s4412_s25  ;;  %2341 = vst.msk [vmem:[#allocation3 + $0xc0] sm:$0xff] %vm243_vm0, %v2313_v22  ;;  %v2427_v57 = vpack.c.bf16 %v2313_v22, %v5589_v24 }
 0x37b   : > { %2474 = vrot.lane.b32.xlu1 %v2424_v56, %s4411_s10  ;;  %v2286_v33 = vmax.f32 %v2258_v30, 0.0  ;;  %v2390_v4 = vld [vmem:[#allocation3 + $0x89] sm:$0xff]  ;;  %v2391_v19 = vld [vmem:[#allocation3 + $0x91] sm:$0xff]  ;;  %2339 = vst.msk [vmem:[#allocation3 + $0xb0] sm:$0xff] %vm243_vm0, %v2311_v1  ;;  %v2316_v25 = vmul.f32 %v2288_v23, %v6153_v50  ;;  %v2426_v0 = vpack.c.bf16 %v2311_v1, %v2310_v16 }
 0x37c   : > { %2195 = vst.msk [vmem:[#allocation2 + $0xc8] sm:$0xff] %vm243_vm0, %v2167_v28  ;;  %v2227_v10 = vmul.f32 %v5367_v36, %v2167_v28  ;;  %v2261_v52 = vadd.f32 %v5371_v40, %v2229_v15  ;;  %v2438_v45 = vpack.c.bf16 %v2391_v19, %v2390_v4  ;;  %v2392_v36 = vld [vmem:[#allocation3 + $0x99] sm:$0xff]  ;;  %v2347_v15 = vld [vmem:[#allocation3 + $0xf] sm:$0xff] }
 0x37d   : > { %v2314_v42 = vmul.f32 %v2286_v33, %v6154_v11  ;;  %2344 = vst.msk [vmem:[#allocation3 + $0xd8] sm:$0xff] %vm243_vm0, %v2316_v25  ;;  %v2346_v33 = vld [vmem:[#allocation3 + $0x7] sm:$0xff]  ;;  %v2348_v4 = vld [vmem:[#allocation3 + $0x17] sm:$0xff] }
 0x37e   : > { %v2259_v34 = vadd.f32 %v5371_v40, %v2227_v10  ;;  %v2289_v13 = vmax.f32 %v2261_v52, 0.0  ;;  %2476 = vrot.lane.b32.xlu0 %v2425_v3, %s4411_s10  ;;  %v2393_v17 = vld [vmem:[#allocation3 + $0xa1] sm:$0xff]  ;;  %v2402_v10 = vpack.c.bf16 %v2347_v15, %v2346_v33 }
 0x37f   : > { %2516 = vrot.lane.b32.xlu1 %v2438_v45, %s4412_s25  ;;  %2342 = vst.msk [vmem:[#allocation3 + $0xc8] sm:$0xff] %vm243_vm0, %v2314_v42  ;;  %v2439_v29 = vpack.c.bf16 %v2393_v17, %v2392_v36  ;;  %v2349_v45 = vld [vmem:[#allocation3 + $0x1f] sm:$0xff] }
 0x380   : > { %v2287_v8 = vmax.f32 %v2259_v34, 0.0  ;;  %v2317_v7 = vmul.f32 %v2289_v13, %v6155_v32  ;;  %v2403_v34 = vpack.c.bf16 %v2349_v45, %v2348_v4  ;;  %v2351_v13 = vld [vmem:[#allocation3 + $0x2f] sm:$0xff] }
 0x381   : > { %v2396_v16 = vld [vmem:[#allocation3 + $0xb9] sm:$0xff]  ;;  %v4346_v4 = vld [vmem:[%s6020_s4 + $0xf0] sm:$0xff]  }
 0x382   : > { %v2315_v44 = vmul.f32 %v2287_v8, %v6156_v54  ;;  %2518 = vrot.lane.b32.xlu0 %v2439_v29, %s4412_s25  ;;  %v2394_v40 = vld [vmem:[#allocation3 + $0xa9] sm:$0xff]  ;;  %v2395_v2 = vld [vmem:[#allocation3 + $0xb1] sm:$0xff]  ;;  %2345 = vst.msk [vmem:[#allocation3 + $0xe0] sm:$0xff] %vm243_vm0, %v2317_v7  ;;  %v2429_v30 = vpack.c.bf16 %v2317_v7, %v2316_v25 }
 0x383   : > { %2478 = vrot.lane.b32.xlu1 %v2426_v0, %s4411_s10  ;;  %v2440_v51 = vpack.c.bf16 %v2395_v2, %v2394_v40  ;;  %v4342_v25 = vld [vmem:[%s6020_s4 + $0x110] sm:$0xff]   ;;  %v4343_v29 = vld [vmem:[%s6020_s4 + $0x108] sm:$0xff]  }
 0x384   : > { %2343 = vst.msk [vmem:[#allocation3 + $0xd0] sm:$0xff] %vm243_vm0, %v2315_v44  ;;  %v2428_v14 = vpack.c.bf16 %v2315_v44, %v2314_v42  ;;  %v2350_v7 = vld [vmem:[#allocation3 + $0x27] sm:$0xff] }
 0x385   : > { %v2404_v44 = vpack.c.bf16 %v2351_v13, %v2350_v7 }
 0x386   : > { %2480 = vrot.lane.b32.xlu0 %v2427_v57, %s4411_s10  ;;  %v2397_v27 = vld [vmem:[#allocation3 + $0xc1] sm:$0xff] }
 0x387   : > { %2520 = vrot.lane.b32.xlu1 %v2440_v51, %s4412_s25  ;;  %v2441_v20 = vpack.c.bf16 %v2397_v27, %v2396_v16  ;;  %v4344_v57 = vld [vmem:[%s6020_s4 + $0x100] sm:$0xff]  }
 0x388   : > { %v2353_v16 = vld [vmem:[#allocation3 + $0x3f] sm:$0xff] }
 0x389   : > { %v2400_v28 = vld [vmem:[#allocation3 + $0xd9] sm:$0xff]  ;;  %v2401_v1 = vld [vmem:[#allocation3 + $0xe1] sm:$0xff] }
 0x38a   : > { %2522 = vrot.lane.b32.xlu0 %v2441_v20, %s4412_s25  ;;  %v2443_v24 = vpack.c.bf16 %v2401_v1, %v2400_v28  ;;  %v2354_v1 = vld [vmem:[#allocation3 + $0x47] sm:$0xff] }
 0x38b   : > { %2482 = vrot.lane.b32.xlu1 %v2428_v14, %s4411_s10  ;;  %v2398_v35 = vld [vmem:[#allocation3 + $0xc9] sm:$0xff]  ;;  %v2399_v56 = vld [vmem:[#allocation3 + $0xd1] sm:$0xff] }
 0x38c   : > { %v2442_v23 = vpack.c.bf16 %v2399_v56, %v2398_v35  ;;  %v2355_v14 = vld [vmem:[#allocation3 + $0x4f] sm:$0xff] }
 0x38e   : > { %2484 = vrot.lane.b32.xlu0 %v2429_v30, %s4411_s10  ;;  %v4345_v30 = vld [vmem:[%s6020_s4 + $0xf8] sm:$0xff]   ;;  %s4347_s10 = scalar_lea.vmem %s3489_s11, 16 }
 0x38f   : > { %2524 = vrot.lane.b32.xlu1 %v2442_v23, %s4412_s25  ;;  %p4348_p11 = scmp.ne.s32.totalorder %s3489_s11, %s4347_s10 }
 0x391   : > { %p4349_p12 = pnand %p4348_p11, %p4482_p5 }
 0x393   : > { %2526 = vrot.lane.b32.xlu1 %v2443_v24, %s4412_s25  ;;  %v2406_v24 = vpack.c.bf16 %v2355_v14, %v2354_v1  ;;  %p4350_p13 = pneg %p4349_p12  ;;  %s4413_s25 = smov [#allocation4]  }
 0x394   : > { %s4351_s16 = sshll.u32 %s4413_s25, 4  ;;  %s4352_s16 = int_to_ptr.vmem [resolvable:$false] %s4351_s16 }
 0x395   : > { %s4353_s22 = scalar_lea.vmem %s4352_s16, 32  ;;  %p4354_p0 = scmp.lt.s32.totalorder %s3489_s11, %s4352_s16 }
 0x396   : > { %p4355_p1 = scmp.lt.s32.totalorder %s4353_s22, %s4347_s10 }
 0x398   : > { %p4356_p2 = por %p4355_p1, %p4354_p0 }
 0x39a   : > { %p4357_p3 = pnand %p4356_p2, %p4350_p13 }
 0x3c8   : > { %v2459_v22 = vpop.permute.xlu0 %2458 }
 0x3c9   : > { %v2530_v19 = vsel %vm243_vm0, %v2402_v10, %v2459_v22  ;;  %v2356_v22 = vld [vmem:[#allocation3 + $0x57] sm:$0xff] }
 0x3cc   : > { %v2461_v52 = vpop.permute.xlu0 %2460 }
 0x3cd   : > { %v2533_v36 = vsel %vm243_vm0, %v2403_v34, %v2461_v52 }
 0x3d0   : > { %v2501_v3 = vpop.permute.xlu1 %2500 }
 0x3d1   : > { %v2571_v42 = vsel %vm1096_vm1, %v2530_v19, %v2501_v3  ;;  %v2357_v19 = vld [vmem:[#allocation3 + $0x5f] sm:$0xff] }
 0x3d2   : > { %4142 = vmatmul.mubr.msk.bf16.vlgmr.msra.gmra.mxu1 %vm1186_vm2, %v2571_v42  ;;  %4181 = vmatprep.mubr.msk.bf16.mxu0 %vm1186_vm2, %v2571_v42  ;;  %v2407_v3 = vpack.c.bf16 %v2357_v19, %v2356_v22  ;;  %v2365_v22 = vld [vmem:[#allocation3 + $0x9f] sm:$0xff] }
 0x3d3   : > { %4210 = vmatpush3.bf16.msra.mxu1 %v5420_v58  ;;  %v2352_v58 = vld [vmem:[#allocation3 + $0x37] sm:$0xff] }
 0x3d4   : > { %v2503_v17 = vpop.permute.xlu0 %2502  ;;  %v2463_v8 = vpop.permute.xlu1 %2462  ;;  %4211 = vmatprep.subr.bf16.mxu1 %v4342_v25  ;;  %v2405_v20 = vpack.c.bf16 %v2353_v16, %v2352_v58  ;;  %v2361_v58 = vld [vmem:[#allocation3 + $0x7f] sm:$0xff] }
 0x3d5   : > { %v5654_v0 = vsel %vm1096_vm1, %v2533_v36, %v2503_v17  ;;  %v2536_v40 = vsel %vm243_vm0, %v2404_v44, %v2463_v8  ;;  %v2358_v36 = vld [vmem:[#allocation3 + $0x67] sm:$0xff]  ;;  %v2360_v8 = vld [vmem:[#allocation3 + $0x77] sm:$0xff] }
 0x3d6   : > { %4145 = vmatprep.mubr.msk.bf16.mxu1 %vm1186_vm2, %v5654_v0  ;;  %4182 = vmatmul.mubr.msk.bf16.vlgmr.msra.gmra.mxu0 %vm1186_vm2, %v5654_v0 }
 0x3d7   : > { %4212 = vmatpush3.bf16.msra.mxu1 %v4342_v25  ;;  %v2359_v25 = vld [vmem:[#allocation3 + $0x6f] sm:$0xff] }
 0x3d8   : > { %v2465_v2 = vpop.permute.xlu0 %2464  ;;  %v2505_v51 = vpop.permute.xlu1 %2504  ;;  %4213 = vmatprep.subr.bf16.mxu1 %v4343_v29  ;;  %v2408_v17 = vpack.c.bf16 %v2359_v25, %v2358_v36 }
 0x3d9   : > { %v5665_v27 = vsel %vm1096_vm1, %v2536_v40, %v2505_v51  ;;  %v2539_v35 = vsel %vm243_vm0, %v2405_v20, %v2465_v2  ;;  %v2409_v2 = vpack.c.bf16 %v2361_v58, %v2360_v8  ;;  %v2363_v51 = vld [vmem:[#allocation3 + $0x8f] sm:$0xff] }
 0x3da   : > { %4146 = vmatmul.mubr.msk.bf16.gmra.mxu1 %vm1186_vm2, %v5665_v27  ;;  %4185 = vmatprep.mubr.msk.bf16.mxu0 %vm1186_vm2, %v5665_v27  ;;  %v2371_v58 = vld [vmem:[#allocation3 + $0xcf] sm:$0xff] }
 0x3db   : > { %4214 = vmatpush3.bf16.msra.mxu1 %v4343_v29 }
 0x3dc   : > { %v2507_v56 = vpop.permute.xlu0 %2506  ;;  %4215 = vmatprep.subr.bf16.mxu1 %v4344_v57 }
 0x3dd   : > { %v2467_v23 = vpop.permute.xlu1 %2466  ;;  %v5676_v28 = vsel %vm1096_vm1, %v2539_v35, %v2507_v56  ;;  %v2362_v35 = vld [vmem:[#allocation3 + $0x87] sm:$0xff] }
 0x3de   : > { %4149 = vmatprep.mubr.msk.bf16.mxu1 %vm1186_vm2, %v5676_v28  ;;  %4186 = vmatmul.mubr.msk.bf16.gmra.mxu0 %vm1186_vm2, %v5676_v28  ;;  %v2542_v15 = vsel %vm243_vm0, %v2406_v24, %v2467_v23  ;;  %v2410_v56 = vpack.c.bf16 %v2363_v51, %v2362_v35  ;;  %v2364_v23 = vld [vmem:[#allocation3 + $0x97] sm:$0xff] }
 0x3df   : > { %4216 = vmatpush3.bf16.msra.mxu1 %v4344_v57 }
 0x3e0   : > { %v2469_v33 = vpop.permute.xlu0 %2468  ;;  %4217 = vmatprep.subr.bf16.mxu1 %v4345_v30 }
 0x3e1   : > { %v2509_v10 = vpop.permute.xlu1 %2508  ;;  %v2545_v45 = vsel %vm243_vm0, %v2407_v3, %v2469_v33  ;;  %v2411_v33 = vpack.c.bf16 %v2365_v22, %v2364_v23 }
 0x3e2   : > { %v5687_v52 = vsel %vm1096_vm1, %v2542_v15, %v2509_v10  ;;  %v2367_v10 = vld [vmem:[#allocation3 + $0xaf] sm:$0xff] }
 0x3e3   : > { %4150 = vmatmul.mubr.msk.bf16.gmra.mxu1 %vm1186_vm2, %v5687_v52  ;;  %4189 = vmatprep.mubr.msk.bf16.mxu0 %vm1186_vm2, %v5687_v52 }
 0x3e4   : > { %4218 = vmatpush3.bf16.msra.mxu1 %v4345_v30  ;;  %v2511_v42 = vpop.permute.xlu0 %2510 }
 0x3e5   : > { %v2471_v34 = vpop.permute.xlu1 %2470  ;;  %4219 = vmatprep.subr.bf16.mxu1 %v4346_v4  ;;  %v5695_v13 = vsel %vm1096_vm1, %v2545_v45, %v2511_v42  ;;  %v2366_v45 = vld [vmem:[#allocation3 + $0xa7] sm:$0xff] }
 0x3e6   : > { %4153 = vmatprep.mubr.msk.bf16.mxu1 %vm1186_vm2, %v5695_v13  ;;  %4190 = vmatmul.mubr.msk.bf16.gmra.mxu0 %vm1186_vm2, %v5695_v13  ;;  %v2548_v29 = vsel %vm243_vm0, %v2408_v17, %v2471_v34  ;;  %v2412_v42 = vpack.c.bf16 %v2367_v10, %v2366_v45  ;;  %v2368_v34 = vld [vmem:[#allocation3 + $0xb7] sm:$0xff] }
 0x3e8   : > { %4220 = vmatpush3.bf16.msra.mxu1 %v4346_v4  ;;  %v2473_v7 = vpop.permute.xlu0 %2472 }
 0x3e9   : > { %v2513_v44 = vpop.permute.xlu1 %2512  ;;  %v2551_v57 = vsel %vm243_vm0, %v2409_v2, %v2473_v7 }
 0x3ea   : > { %v5703_v40 = vsel %vm1096_vm1, %v2548_v29, %v2513_v44  ;;  %v2369_v29 = vld [vmem:[#allocation3 + $0xbf] sm:$0xff] }
 0x3eb   : > { %4154 = vmatmul.mubr.msk.bf16.gmra.mxu1 %vm1186_vm2, %v5703_v40  ;;  %4193 = vmatprep.mubr.msk.bf16.mxu0 %vm1186_vm2, %v5703_v40  ;;  %v2413_v44 = vpack.c.bf16 %v2369_v29, %v2368_v34 }
 0x3ec   : > { %v2515_v16 = vpop.permute.xlu0 %2514 }
 0x3ed   : > { %v2475_v20 = vpop.permute.xlu1 %2474  ;;  %v2585_v14 = vsel %vm1096_vm1, %v2551_v57, %v2515_v16 }
 0x3ee   : > { %4157 = vmatprep.mubr.msk.bf16.mxu1 %vm1186_vm2, %v2585_v14  ;;  %4194 = vmatmul.mubr.msk.bf16.gmra.mxu0 %vm1186_vm2, %v2585_v14  ;;  %v2554_v30 = vsel %vm243_vm0, %v2410_v56, %v2475_v20  ;;  %v2370_v20 = vld [vmem:[#allocation3 + $0xc7] sm:$0xff]  ;;  %v2372_v56 = vld [vmem:[#allocation3 + $0xd7] sm:$0xff] }
 0x3ef   : > { %v2414_v35 = vpack.c.bf16 %v2371_v58, %v2370_v20 }
 0x3f0   : > { %v2477_v1 = vpop.permute.xlu0 %2476 }
 0x3f1   : > { %v2517_v24 = vpop.permute.xlu1 %2516  ;;  %v2557_v4 = vsel %vm243_vm0, %v2411_v33, %v2477_v1  ;;  %v2373_v1 = vld [vmem:[#allocation3 + $0xdf] sm:$0xff] }
 0x3f2   : > { %v2587_v15 = vsel %vm1096_vm1, %v2554_v30, %v2517_v24  ;;  %v2415_v33 = vpack.c.bf16 %v2373_v1, %v2372_v56 }
 0x3f3   : > { %4158 = vmatmul.mubr.msk.bf16.gmra.mxu1 %vm1186_vm2, %v2587_v15  ;;  %4197 = vmatprep.mubr.msk.bf16.mxu0 %vm1186_vm2, %v2587_v15 }
 0x3f4   : > { %v2519_v19 = vpop.permute.xlu0 %2518 }
 0x3f5   : > { %v2479_v3 = vpop.permute.xlu1 %2478  ;;  %v2589_v25 = vsel %vm1096_vm1, %v2557_v4, %v2519_v19 }
 0x3f6   : > { %4161 = vmatprep.mubr.msk.bf16.mxu1 %vm1186_vm2, %v2589_v25  ;;  %4198 = vmatmul.mubr.msk.bf16.gmra.mxu0 %vm1186_vm2, %v2589_v25  ;;  %v2560_v36 = vsel %vm243_vm0, %v2412_v42, %v2479_v3 }
 0x3f8   : > { %v2481_v17 = vpop.permute.xlu0 %2480 }
 0x3f9   : > { %v2521_v8 = vpop.permute.xlu1 %2520  ;;  %v2563_v2 = vsel %vm243_vm0, %v2413_v44, %v2481_v17 }
 0x3fa   : > { %v2591_v7 = vsel %vm1096_vm1, %v2560_v36, %v2521_v8 }
 0x3fb   : > { %4162 = vmatmul.mubr.msk.bf16.gmra.mxu1 %vm1186_vm2, %v2591_v7  ;;  %4201 = vmatprep.mubr.msk.bf16.mxu0 %vm1186_vm2, %v2591_v7 }
 0x3fc   : > { %v2523_v51 = vpop.permute.xlu0 %2522 }
 0x3fd   : > { %v2483_v57 = vpop.permute.xlu1 %2482  ;;  %v2593_v16 = vsel %vm1096_vm1, %v2563_v2, %v2523_v51 }
 0x3fe   : > { %4165 = vmatprep.mubr.msk.bf16.mxu1 %vm1186_vm2, %v2593_v16  ;;  %4202 = vmatmul.mubr.msk.bf16.gmra.mxu0 %vm1186_vm2, %v2593_v16  ;;  %v2566_v23 = vsel %vm243_vm0, %v2414_v35, %v2483_v57 }
 0x400   : > { %v2485_v24 = vpop.permute.xlu0 %2484 }
 0x401   : > { %v2525_v30 = vpop.permute.xlu1 %2524  ;;  %v2569_v10 = vsel %vm243_vm0, %v2415_v33, %v2485_v24 }
 0x402   : > { %v2595_v22 = vsel %vm1096_vm1, %v2566_v23, %v2525_v30 }
 0x403   : > { %4166 = vmatmul.mubr.msk.bf16.gmra.mxu1 %vm1186_vm2, %v2595_v22  ;;  %4205 = vmatprep.mubr.msk.bf16.mxu0 %vm1186_vm2, %v2595_v22 }
 0x404   : > { %4221 = vmatprep.mubr.msk.bf16.mxu1 %vm1186_vm2, %v5654_v0  ;;  %v6157_v0 = vmov 0  }
 0x405   : > { %v2527_v4 = vpop.permute.xlu1 %2526 }
 0x406   : > { %v2597_v19 = vsel %vm1096_vm1, %v2569_v10, %v2527_v4 }
 0x407   : > { %4206 = vmatmul.mubr.msk.bf16.gmra.mxu0 %vm1186_vm2, %v2597_v19 }
 0x40b   : > { %4222 = vmatmul.mubr.msk.bf16.vlgmr.msra.gmra.mxu1 %vm1186_vm2, %v5665_v27 }
 0x40c   : > { %4225 = vmatprep.mubr.msk.bf16.mxu1 %vm1186_vm2, %v5676_v28 }
 0x413   : > { %4226 = vmatmul.mubr.msk.bf16.gmra.mxu1 %vm1186_vm2, %v5687_v52 }
 0x414   : > { %4229 = vmatprep.mubr.msk.bf16.mxu1 %vm1186_vm2, %v5695_v13 }
 0x41b   : > { %4230 = vmatmul.mubr.msk.bf16.gmra.mxu1 %vm1186_vm2, %v5703_v40 }
 0x41c   : > { %4233 = vmatprep.mubr.msk.bf16.mxu1 %vm1186_vm2, %v2585_v14 }
 0x423   : > { %4234 = vmatmul.mubr.msk.bf16.gmra.mxu1 %vm1186_vm2, %v2587_v15 }
 0x424   : > { %4237 = vmatprep.mubr.msk.bf16.mxu1 %vm1186_vm2, %v2589_v25 }
 0x42b   : > { %4238 = vmatmul.mubr.msk.bf16.gmra.mxu1 %vm1186_vm2, %v2591_v7 }
 0x42c   : > { %4241 = vmatprep.mubr.msk.bf16.mxu1 %vm1186_vm2, %v2593_v16 }
 0x433   : > { %4242 = vmatmul.mubr.msk.bf16.gmra.mxu1 %vm1186_vm2, %v2595_v22 }
 0x434   : > { %4245 = vmatprep.mubr.msk.bf16.mxu1 %vm1186_vm2, %v2597_v19 }
 0x43b   : > { %4246 = vmatmul.mubr.bf16.gmra.mxu1 %v6157_v0 }
 0x492   : > { %v4143_v27 = vpop.f32.mrf.mxu1 }
 0x494   : > { %v2720_v28 = vpop.f32.mrf.mxu1 }
 0x496   : > { %v4144_v52 = vpop.f32.mrf.mxu1  ;;  %v4183_v13 = vpop.f32.mrf.mxu0 }
 0x497   : > { %v2912_v43 = vadd.f32 %v4183_v13, %v4143_v27 }
 0x498   : > { %v2723_v40 = vpop.f32.mrf.mxu1  ;;  %v2903_v14 = vpop.f32.mrf.mxu0 }
 0x499   : > { %v2904_v61 = vadd.f32 %v2903_v14, %v2720_v28 }
 0x49a   : > { %v4147_v3 = vpop.f32.mrf.mxu1  ;;  %v4184_v15 = vpop.f32.mrf.mxu0 }
 0x49b   : > { %v2915_v6 = vadd.f32 %v4184_v15, %v4144_v52  ;;  %v3302_v15 = vld [vmem:[#allocation2 + $0x10] sm:$0xff] }
 0x49c   : > { %v2736_v45 = vpop.f32.mrf.mxu1  ;;  %v2906_v25 = vpop.f32.mrf.mxu0 }
 0x49e   : > { %v4148_v42 = vpop.f32.mrf.mxu1  ;;  %v4187_v34 = vpop.f32.mrf.mxu0 }
 0x49f   : > { %v2928_v39 = vadd.f32 %v4187_v34, %v4147_v3 }
 0x4a0   : > { %v2739_v36 = vpop.f32.mrf.mxu1  ;;  %v2919_v17 = vpop.f32.mrf.mxu0 }
 0x4a2   : > { %v4188_v29 = vpop.f32.mrf.mxu0 }
 0x4a3   : > { %v4151_v8 = vpop.f32.mrf.mxu1  ;;  %v2931_v47 = vadd.f32 %v4188_v29, %v4148_v42 }
 0x4a4   : > { %v2922_v44 = vpop.f32.mrf.mxu0 }
 0x4a5   : > { %v2752_v7 = vpop.f32.mrf.mxu1  ;;  %v2923_v28 = vadd.f32 %v2922_v44, %v2739_v36 }
 0x4a6   : > { %v4191_v2 = vpop.f32.mrf.mxu0 }
 0x4a7   : > { %v4152_v58 = vpop.f32.mrf.mxu1 }
 0x4a8   : > { %v2935_v57 = vpop.f32.mrf.mxu0 }
 0x4a9   : > { %v2755_v51 = vpop.f32.mrf.mxu1 }
 0x4aa   : > { %v4192_v20 = vpop.f32.mrf.mxu0 }
 0x4ab   : > { %v4155_v16 = vpop.f32.mrf.mxu1  ;;  %v5785_v14 = vadd.f32 %v4192_v20, %v4152_v58 }
 0x4ac   : > { %v2938_v56 = vpop.f32.mrf.mxu0 }
 0x4ad   : > { %v2768_v35 = vpop.f32.mrf.mxu1 }
 0x4ae   : > { %v4195_v30 = vpop.f32.mrf.mxu0 }
 0x4af   : > { %v4156_v23 = vpop.f32.mrf.mxu1 }
 0x4b0   : > { %v2951_v24 = vpop.f32.mrf.mxu0 }
 0x4b1   : > { %v2771_v1 = vpop.f32.mrf.mxu1 }
 0x4b2   : > { %v4196_v33 = vpop.f32.mrf.mxu0 }
 0x4b3   : > { %v4159_v22 = vpop.f32.mrf.mxu1 }
 0x4b4   : > { %v2954_v4 = vpop.f32.mrf.mxu0 }
 0x4b5   : > { %v2784_v10 = vpop.f32.mrf.mxu1 }
 0x4b6   : > { %v4199_v0 = vpop.f32.mrf.mxu0 }
 0x4b7   : > { %v4160_v19 = vpop.f32.mrf.mxu1 }
 0x4b8   : > { %v2967_v11 = vpop.f32.mrf.mxu0 }
 0x4b9   : > { %v5756_v54 = vpop.f32.mrf.mxu1 }
 0x4ba   : > { %v4200_v46 = vpop.f32.mrf.mxu0 }
 0x4bb   : > { %v5758_v32 = vpop.f32.mrf.mxu1 }
 0x4bc   : > { %v2970_v59 = vpop.f32.mrf.mxu0 }
 0x4bd   : > { %v5760_v50 = vpop.f32.mrf.mxu1  ;;  %v5809_v20 = vadd.f32 %v2970_v59, %v5756_v54 }
 0x4be   : > { %v4203_v26 = vpop.f32.mrf.mxu0 }
 0x4bf   : > { %v5762_v41 = vpop.f32.mrf.mxu1 }
 0x4c0   : > { %v2983_v9 = vpop.f32.mrf.mxu0 }
 0x4c1   : > { %v5764_v60 = vpop.f32.mrf.mxu1 }
 0x4c2   : > { %v4204_v52 = vpop.f32.mrf.mxu0 }
 0x4c3   : > { %v5766_v63 = vpop.f32.mrf.mxu1 }
 0x4c4   : > { %6158 = vst [vmem:[#allocation35_spill] sm:$0xff] %v5766_v63  ;;  %v2986_v29 = vpop.f32.mrf.mxu0 }
 0x4c5   : > { %v5768_v5 = vpop.f32.mrf.mxu1 }
 0x4c6   : > { %6159 = vst [vmem:[#allocation36_spill] sm:$0xff] %v5768_v5  ;;  %v2907_v5 = vadd.f32 %v2906_v25, %v2723_v40 }
 0x4c7   : > { %v5770_v37 = vpop.f32.mrf.mxu1  ;;  %v4207_v59 = vpop.f32.mrf.mxu0 }
 0x4c8   : > { %6160 = vst [vmem:[#allocation38_spill] sm:$0xff] %v5770_v37  ;;  %v2920_v37 = vadd.f32 %v2919_v17, %v2736_v45  ;;  %v5789_v45 = vadd.f32 %v2938_v56, %v2755_v51  ;;  %v3301_v56 = vld [vmem:[#allocation2 + $0x8] sm:$0xff] }
 0x4c9   : > { %v5772_v55 = vpop.f32.mrf.mxu1 }
 0x4ca   : > { %6161 = vst [vmem:[#allocation42_spill] sm:$0xff] %v5772_v55 }
 0x4cb   : > { %v4223_v21 = vpop.f32.mrf.mxu1 }
 0x4cc   : > { %v3210_v49 = vadd.f32 %v4223_v21, %v2912_v43  ;;  %v2944_v21 = vadd.f32 %v4191_v2, %v4151_v8  ;;  %v5783_v43 = vadd.f32 %v2935_v57, %v2752_v7  ;;  %v5799_v8 = vadd.f32 %v2954_v4, %v2771_v1  ;;  %v3303_v7 = vld [vmem:[#allocation2 + $0x18] sm:$0xff]  ;;  %v6162_v4 = vld [vmem:[#allocation10_spill] sm:$0xff] }
 0x4cd   : > { %v3097_v18 = vpop.f32.mrf.mxu1  ;;  %v5805_v2 = vadd.f32 %v4200_v46, %v4160_v19 }
 0x4ce   : > { %v3242_v62 = vmul.f32 %v5775_v53, %v3210_v49  ;;  %v3208_v48 = vadd.f32 %v3097_v18, %v2904_v61 }
 0x4cf   : > { %v4224_v63 = vpop.f32.mrf.mxu1 }
 0x4d0   : > { %v3274_v27 = vadd.f32 %v5778_v12, %v3242_v62  ;;  %v3240_v13 = vmul.f32 %v5775_v53, %v3208_v48  ;;  %v3211_v55 = vadd.f32 %v4224_v63, %v2915_v6  ;;  %v5791_v62 = vadd.f32 %v4195_v30, %v4155_v16  ;;  %v3300_v63 = vld [vmem:[#allocation2] sm:$0xff] }
 0x4d1   : > { %v3100_v49 = vpop.f32.mrf.mxu1  ;;  %v5793_v48 = vadd.f32 %v2951_v24, %v2768_v35  ;;  %v5795_v6 = vadd.f32 %v4196_v33, %v4156_v23  ;;  %v5812_v35 = vadd.f32 %v4203_v26, %v5758_v32 }
 0x4d2   : > { %v3330_v18 = vadd.f32 %v3302_v15, %v3274_v27  ;;  %v3272_v61 = vadd.f32 %v5778_v12, %v3240_v13  ;;  %v3243_v40 = vmul.f32 %v5775_v53, %v3211_v55  ;;  %v3209_v3 = vadd.f32 %v3100_v49, %v2907_v5 }
 0x4d3   : > { %v4227_v25 = vpop.f32.mrf.mxu1  ;;  %v5801_v55 = vadd.f32 %v4199_v0, %v4159_v22  ;;  %v5803_v5 = vadd.f32 %v2967_v11, %v2784_v10  ;;  %v5820_v22 = vadd.f32 %v4204_v52, %v5762_v41  ;;  %v3306_v10 = vld [vmem:[#allocation2 + $0x30] sm:$0xff] }
 0x4d4   : > { %v3358_v42 = vmax.f32 %v3330_v18, 0.0  ;;  %v3328_v34 = vadd.f32 %v3300_v63, %v3272_v61  ;;  %v3275_v36 = vadd.f32 %v5778_v12, %v3243_v40  ;;  %v3241_v17 = vmul.f32 %v5775_v53, %v3209_v3  ;;  %v6163_v52 = vld [vmem:[#allocation35_spill] sm:$0xff]  ;;  %v6164_v18 = vld [vmem:[#allocation9_spill] sm:$0xff] }
 0x4d5   : > { %v3214_v44 = vadd.f32 %v4227_v25, %v2928_v39  ;;  %v3113_v58 = vpop.f32.mrf.mxu1  ;;  %v5816_v39 = vadd.f32 %v2983_v9, %v5760_v50  ;;  %v5832_v15 = vadd.f32 %v4207_v59, %v6163_v52  ;;  %v3310_v59 = vld [vmem:[#allocation2 + $0x50] sm:$0xff] }
 0x4d6   : > { %v3356_v51 = vmax.f32 %v3328_v34, 0.0  ;;  %v3331_v57 = vadd.f32 %v3303_v7, %v3275_v36  ;;  %v3273_v16 = vadd.f32 %v5778_v12, %v3241_v17  ;;  %v3212_v23 = vadd.f32 %v3113_v58, %v2920_v37 }
 0x4d7   : > { %v3246_v11 = vmul.f32 %v5775_v53, %v3214_v44  ;;  %v4228_v30 = vpop.f32.mrf.mxu1  ;;  %v3386_v46 = vmul.f32 %v3358_v42, %v6129_v31  ;;  %v5825_v37 = vadd.f32 %v2986_v29, %v5764_v60  ;;  %v3304_v60 = vld [vmem:[#allocation2 + $0x20] sm:$0xff]  ;;  %v3307_v42 = vld [vmem:[#allocation2 + $0x38] sm:$0xff] }
 0x4d8   : > { %v3359_v1 = vmax.f32 %v3331_v57, 0.0  ;;  %v3329_v24 = vadd.f32 %v3301_v56, %v3273_v16  ;;  %v3244_v26 = vmul.f32 %v5775_v53, %v3212_v23  ;;  %v3215_v32 = vadd.f32 %v4228_v30, %v2931_v47 }
 0x4d9   : > { %v3278_v54 = vadd.f32 %v5778_v12, %v3246_v11  ;;  %v3116_v33 = vpop.f32.mrf.mxu1  ;;  %v3384_v9 = vmul.f32 %v3356_v51, %v6130_v38  ;;  %v5835_v47 = vsel %vm243_vm0, %v3386_v46, -inf  ;;  %v3305_v51 = vld [vmem:[#allocation2 + $0x28] sm:$0xff]  ;;  %v6166_v46 = vld [vmem:[#allocation11_spill] sm:$0xff] }
 0x4da   : > { %v3357_v50 = vmax.f32 %v3329_v24, 0.0  ;;  %v3213_v31 = vadd.f32 %v3116_v33, %v2923_v28  ;;  %v3387_v19 = vmul.f32 %v3359_v1, %v6162_v4  ;;  %v3276_v41 = vadd.f32 %v5778_v12, %v3244_v26 }
 0x4db   : > { %v3334_v0 = vadd.f32 %v3306_v10, %v3278_v54  ;;  %v3247_v27 = vmul.f32 %v5775_v53, %v3215_v32  ;;  %v4231_v13 = vpop.f32.mrf.mxu1  ;;  %v5841_v25 = vsel %vm243_vm0, %v3384_v9, -inf  ;;  %v6167_v10 = vld [vmem:[#allocation14_spill] sm:$0xff] }
 0x4dc   : > { %v3245_v38 = vmul.f32 %v5775_v53, %v3213_v31  ;;  %v3218_v49 = vadd.f32 %v4231_v13, %v2944_v21  ;;  %v3385_v28 = vmul.f32 %v3357_v50, %v6164_v18  ;;  %v3332_v40 = vadd.f32 %v3304_v60, %v3276_v41  ;;  %v6165_v21 = vld [vmem:[#allocation13_spill] sm:$0xff] }
 0x4dd   : > { %v3362_v61 = vmax.f32 %v3334_v0, 0.0  ;;  %v3279_v3 = vadd.f32 %v5778_v12, %v3247_v27  ;;  %v3129_v63 = vpop.f32.mrf.mxu1  ;;  %v5847_v29 = vsel %vm243_vm0, %v3387_v19, -inf  ;;  %v3308_v31 = vld [vmem:[#allocation2 + $0x40] sm:$0xff] }
 0x4de   : > { %v3277_v34 = vadd.f32 %v5778_v12, %v3245_v38  ;;  %v3250_v36 = vmul.f32 %v5775_v53, %v3218_v49  ;;  %v3216_v17 = vadd.f32 %v3129_v63, %v5783_v43  ;;  %v3360_v44 = vmax.f32 %v3332_v40, 0.0  ;;  %v6168_v27 = vld [vmem:[#allocation12_spill] sm:$0xff]  ;;  %v6169_v40 = vld [vmem:[#allocation17_spill] sm:$0xff] }
 0x4df   : > { %v3390_v7 = vmul.f32 %v3362_v61, %v6165_v21  ;;  %v3335_v58 = vadd.f32 %v3307_v42, %v3279_v3  ;;  %v4232_v57 = vpop.f32.mrf.mxu1  ;;  %v5854_v30 = vsel %vm243_vm0, %v3385_v28, -inf }
 0x4e0   : > { %v3333_v16 = vadd.f32 %v3305_v51, %v3277_v34  ;;  %v3282_v56 = vadd.f32 %v5778_v12, %v3250_v36  ;;  %v3248_v11 = vmul.f32 %v5775_v53, %v3216_v17  ;;  %v3219_v23 = vadd.f32 %v4232_v57, %v5785_v14 }
 0x4e1   : > { %v3420_v43 = vsel %vm243_vm0, %v3390_v7, -inf  ;;  %v3388_v1 = vmul.f32 %v3360_v44, %v6166_v46  ;;  %v3363_v24 = vmax.f32 %v3335_v58, 0.0  ;;  %v3132_v54 = vpop.f32.mrf.mxu1  ;;  %v3309_v58 = vld [vmem:[#allocation2 + $0x48] sm:$0xff]  ;;  %v3314_v46 = vld [vmem:[#allocation2 + $0x70] sm:$0xff] }
 0x4e2   : > { %v3421_v26 = vmax.f32 %v5835_v47, %v3420_v43  ;;  %v3361_v32 = vmax.f32 %v3333_v16, 0.0  ;;  %v3338_v33 = vadd.f32 %v3310_v59, %v3282_v56  ;;  %v3280_v9 = vadd.f32 %v5778_v12, %v3248_v11 }
 0x4e3   : > { %v3416_v50 = vsel %vm243_vm0, %v3388_v1, -inf  ;;  %v3391_v14 = vmul.f32 %v3363_v24, %v6167_v10  ;;  %v3251_v4 = vmul.f32 %v5775_v53, %v3219_v23  ;;  %v3217_v19 = vadd.f32 %v3132_v54, %v5789_v45  ;;  %v4235_v0 = vpop.f32.mrf.mxu1 }
 0x4e4   : > { %v3417_v41 = vmax.f32 %v5841_v25, %v3416_v50  ;;  %v3389_v13 = vmul.f32 %v3361_v32, %v6168_v27  ;;  %v3366_v52 = vmax.f32 %v3338_v33, 0.0  ;;  %v3336_v47 = vadd.f32 %v3308_v31, %v3280_v9  ;;  %v3311_v25 = vld [vmem:[#allocation2 + $0x58] sm:$0xff]  ;;  %v3312_v27 = vld [vmem:[#allocation2 + $0x60] sm:$0xff] }
 0x4e5   : > { %v3422_v60 = vsel %vm243_vm0, %v3391_v14, -inf  ;;  %v3283_v38 = vadd.f32 %v5778_v12, %v3251_v4  ;;  %v3249_v49 = vmul.f32 %v5775_v53, %v3217_v19  ;;  %v3222_v18 = vadd.f32 %v4235_v0, %v5791_v62  ;;  %v3145_v28 = vpop.f32.mrf.mxu1  ;;  %v6170_v62 = vld [vmem:[#allocation15_spill] sm:$0xff]  ;;  %v6172_v31 = vld [vmem:[#allocation36_spill] sm:$0xff] }
 0x4e6   : > { %v3423_v61 = vmax.f32 %v5847_v29, %v3422_v60  ;;  %v3418_v45 = vsel %vm243_vm0, %v3389_v13, -inf  ;;  %v3394_v3 = vmul.f32 %v3366_v52, %v6169_v40  ;;  %v3364_v63 = vmax.f32 %v3336_v47, 0.0  ;;  %v6173_v19 = vld [vmem:[#allocation16_spill] sm:$0xff] }
 0x4e7   : > { %v3419_v42 = vmax.f32 %v5854_v30, %v3418_v45  ;;  %v3339_v34 = vadd.f32 %v3311_v25, %v3283_v38  ;;  %v3281_v36 = vadd.f32 %v5778_v12, %v3249_v49  ;;  %v3254_v17 = vmul.f32 %v5775_v53, %v3222_v18  ;;  %v4236_v21 = vpop.f32.mrf.mxu1  ;;  %v2999_v30 = vpop.f32.mrf.mxu0  ;;  %v3315_v13 = vld [vmem:[#allocation2 + $0x78] sm:$0xff]  ;;  %v3313_v45 = vld [vmem:[#allocation2 + $0x68] sm:$0xff] }
 0x4e8   : > { %v3428_v7 = vsel %vm243_vm0, %v3394_v3, -inf  ;;  %v3392_v44 = vmul.f32 %v3364_v63, %v6170_v62  ;;  %v3220_v29 = vadd.f32 %v3145_v28, %v5793_v48  ;;  %v3223_v51 = vadd.f32 %v4236_v21, %v5795_v6  ;;  %v6171_v6 = vld [vmem:[#allocation18_spill] sm:$0xff] }
 0x4e9   : > { %v5880_v57 = vmax.f32 %v3421_v26, %v3428_v7  ;;  %v3367_v16 = vmax.f32 %v3339_v34, 0.0  ;;  %v3337_v56 = vadd.f32 %v3309_v58, %v3281_v36  ;;  %v3286_v11 = vadd.f32 %v5778_v12, %v3254_v17  ;;  %v3148_v23 = vpop.f32.mrf.mxu1 }
 0x4ea   : > { %v3424_v43 = vsel %vm243_vm0, %v3392_v44, -inf  ;;  %v3252_v1 = vmul.f32 %v5775_v53, %v3220_v29  ;;  %v3255_v24 = vmul.f32 %v5775_v53, %v3223_v51  ;;  %v3221_v59 = vadd.f32 %v3148_v23, %v5799_v8  ;;  %v6175_v29 = vld [vmem:[#allocation19_spill] sm:$0xff] }
 0x4eb   : > { %v5887_v48 = vmax.f32 %v3417_v41, %v3424_v43  ;;  %v3395_v54 = vmul.f32 %v3367_v16, %v6171_v6  ;;  %v3365_v26 = vmax.f32 %v3337_v56, 0.0  ;;  %v3342_v32 = vadd.f32 %v3314_v46, %v3286_v11  ;;  %v4239_v33 = vpop.f32.mrf.mxu1  ;;  %v3318_v56 = vld [vmem:[#allocation2 + $0x90] sm:$0xff] }
 0x4ec   : > { %v3284_v9 = vadd.f32 %v5778_v12, %v3252_v1  ;;  %v3287_v50 = vadd.f32 %v5778_v12, %v3255_v24  ;;  %v3253_v10 = vmul.f32 %v5775_v53, %v3221_v59  ;;  %v3226_v14 = vadd.f32 %v4239_v33, %v5801_v55  ;;  %v6174_v55 = vld [vmem:[#allocation21_spill] sm:$0xff]  ;;  %v6177_v24 = vld [vmem:[#allocation20_spill] sm:$0xff] }
 0x4ed   : > { %v5895_v4 = vadd.f32 %v2999_v30, %v6172_v31  ;;  %v3430_v8 = vsel %vm243_vm0, %v3395_v54, -inf  ;;  %v3393_v0 = vmul.f32 %v3365_v26, %v6173_v19  ;;  %v3370_v41 = vmax.f32 %v3342_v32, 0.0  ;;  %v3161_v52 = vpop.f32.mrf.mxu1  ;;  %v3316_v59 = vld [vmem:[#allocation2 + $0x80] sm:$0xff] }
 0x4ee   : > { %v5899_v47 = vmax.f32 %v3423_v61, %v3430_v8  ;;  %v3340_v60 = vadd.f32 %v3312_v27, %v3284_v9  ;;  %v3343_v38 = vadd.f32 %v3315_v13, %v3287_v50  ;;  %v3285_v49 = vadd.f32 %v5778_v12, %v3253_v10  ;;  %v4208_v50 = vpop.f32.mrf.mxu0  ;;  %v6178_v19 = vld [vmem:[#allocation25_spill] sm:$0xff] }
 0x4ef   : > { %v3426_v18 = vsel %vm243_vm0, %v3393_v0, -inf  ;;  %v3398_v28 = vmul.f32 %v3370_v41, %v6174_v55  ;;  %v3258_v40 = vmul.f32 %v5775_v53, %v3226_v14  ;;  %v3224_v3 = vadd.f32 %v3161_v52, %v5803_v5  ;;  %v4240_v63 = vpop.f32.mrf.mxu1  ;;  %v6176_v5 = vld [vmem:[#allocation22_spill] sm:$0xff]  ;;  %v6180_v55 = vld [vmem:[#allocation23_spill] sm:$0xff] }
 0x4f0   : > { %v5906_v25 = vmax.f32 %v3419_v42, %v3426_v18  ;;  %v3368_v34 = vmax.f32 %v3340_v60, 0.0  ;;  %v3371_v36 = vmax.f32 %v3343_v38, 0.0  ;;  %v3341_v61 = vadd.f32 %v3313_v45, %v3285_v49  ;;  %v6179_v38 = vld [vmem:[#allocation38_spill] sm:$0xff] }
 0x4f1   : > { %v3436_v17 = vsel %vm243_vm0, %v3398_v28, -inf  ;;  %v3290_v21 = vadd.f32 %v5778_v12, %v3258_v40  ;;  %v3256_v7 = vmul.f32 %v5775_v53, %v3224_v3  ;;  %v3227_v62 = vadd.f32 %v4240_v63, %v5805_v2  ;;  %v3164_v44 = vpop.f32.mrf.mxu1  ;;  %v3317_v45 = vld [vmem:[#allocation2 + $0x88] sm:$0xff]  ;;  %v3322_v40 = vld [vmem:[#allocation2 + $0xb0] sm:$0xff] }
 0x4f2   : > { %v3437_v58 = vmax.f32 %v5880_v57, %v3436_v17  ;;  %v3396_v51 = vmul.f32 %v3368_v34, %v6175_v29  ;;  %v3399_v16 = vmul.f32 %v3371_v36, %v6176_v5  ;;  %v3369_v42 = vmax.f32 %v3341_v61, 0.0 }
 0x4f3   : > { %v3346_v11 = vadd.f32 %v3318_v56, %v3290_v21  ;;  %v3288_v23 = vadd.f32 %v5778_v12, %v3256_v7  ;;  %v3259_v30 = vmul.f32 %v5775_v53, %v3227_v62  ;;  %v3225_v43 = vadd.f32 %v3164_v44, %v5809_v20  ;;  %v4243_v46 = vpop.f32.mrf.mxu1  ;;  %v6181_v44 = vld [vmem:[#allocation26_spill] sm:$0xff] }
 0x4f4   : > { %v3432_v1 = vsel %vm243_vm0, %v3396_v51, -inf  ;;  %v3438_v2 = vsel %vm243_vm0, %v3399_v16, -inf  ;;  %v3397_v57 = vmul.f32 %v3369_v42, %v6177_v24  ;;  %v3230_v6 = vadd.f32 %v4243_v46, %v5812_v35  ;;  %v3323_v24 = vld [vmem:[#allocation2 + $0xb8] sm:$0xff] }
 0x4f5   : > { %v3433_v54 = vmax.f32 %v5887_v48, %v3432_v1  ;;  %v3439_v26 = vmax.f32 %v5899_v47, %v3438_v2  ;;  %v3374_v32 = vmax.f32 %v3346_v11, 0.0  ;;  %v3344_v33 = vadd.f32 %v3316_v59, %v3288_v23  ;;  %v3177_v9 = vpop.f32.mrf.mxu1  ;;  %v3319_v48 = vld [vmem:[#allocation2 + $0x98] sm:$0xff]  ;;  %v6183_v1 = vld [vmem:[#allocation29_spill] sm:$0xff] }
 0x4f6   : > { %v3434_v20 = vsel %vm243_vm0, %v3397_v57, -inf  ;;  %v3291_v10 = vadd.f32 %v5778_v12, %v3259_v30  ;;  %v3257_v14 = vmul.f32 %v5775_v53, %v3225_v43  ;;  %v3262_v31 = vmul.f32 %v5775_v53, %v3230_v6  ;;  %v3002_v30 = vpop.f32.mrf.mxu0 }
 0x4f7   : > { %v3435_v8 = vmax.f32 %v5906_v25, %v3434_v20  ;;  %v3402_v35 = vmul.f32 %v3374_v32, %v6178_v19  ;;  %v3372_v0 = vmax.f32 %v3344_v33, 0.0  ;;  %v3228_v41 = vadd.f32 %v3177_v9, %v5816_v39  ;;  %v4244_v27 = vpop.f32.mrf.mxu1 }
 0x4f8   : > { %v3347_v13 = vadd.f32 %v3319_v48, %v3291_v10  ;;  %v3289_v52 = vadd.f32 %v5778_v12, %v3257_v14  ;;  %v3294_v47 = vadd.f32 %v5778_v12, %v3262_v31  ;;  %v3231_v60 = vadd.f32 %v4244_v27, %v5820_v22  ;;  %v6184_v10 = vld [vmem:[#allocation42_spill] sm:$0xff] }
 0x4f9   : > { %v3011_v49 = vadd.f32 %v4208_v50, %v6179_v38  ;;  %v3444_v18 = vsel %vm243_vm0, %v3402_v35, -inf  ;;  %v3400_v28 = vmul.f32 %v3372_v0, %v6180_v55  ;;  %v3260_v3 = vmul.f32 %v5775_v53, %v3228_v41  ;;  %v3180_v63 = vpop.f32.mrf.mxu1  ;;  %v3321_v35 = vld [vmem:[#allocation2 + $0xa8] sm:$0xff]  ;;  %v3324_v38 = vld [vmem:[#allocation2 + $0xc0] sm:$0xff] }
 0x4fa   : > { %v5938_v39 = vmax.f32 %v3437_v58, %v3444_v18  ;;  %v3375_v25 = vmax.f32 %v3347_v13, 0.0  ;;  %v3345_v34 = vadd.f32 %v3317_v45, %v3289_v52  ;;  %v3350_v36 = vadd.f32 %v3322_v40, %v3294_v47  ;;  %v3320_v58 = vld [vmem:[#allocation2 + $0xa0] sm:$0xff] }
 0x4fb   : > { %v3440_v61 = vsel %vm243_vm0, %v3400_v28, -inf  ;;  %v3292_v22 = vadd.f32 %v5778_v12, %v3260_v3  ;;  %v3263_v17 = vmul.f32 %v5775_v53, %v3231_v60  ;;  %v3229_v21 = vadd.f32 %v3180_v63, %v5825_v37  ;;  %v4247_v7 = vpop.f32.mrf.mxu1  ;;  %v6182_v37 = vld [vmem:[#allocation24_spill] sm:$0xff]  ;;  %v3326_v60 = vld [vmem:[#allocation2 + $0xd0] sm:$0xff] }
 0x4fc   : > { %v5944_v62 = vmax.f32 %v3433_v54, %v3440_v61  ;;  %v3403_v29 = vmul.f32 %v3375_v25, %v6181_v44  ;;  %v3373_v51 = vmax.f32 %v3345_v34, 0.0  ;;  %v3378_v5 = vmax.f32 %v3350_v36, 0.0  ;;  %v6186_v25 = vld [vmem:[#allocation30_spill] sm:$0xff]  ;;  %v6189_v44 = vld [vmem:[#allocation31_spill] sm:$0xff] }
 0x4fd   : > { %v3348_v16 = vadd.f32 %v3320_v58, %v3292_v22  ;;  %v3295_v42 = vadd.f32 %v5778_v12, %v3263_v17  ;;  %v3261_v56 = vmul.f32 %v5775_v53, %v3229_v21  ;;  %v3234_v11 = vadd.f32 %v4247_v7, %v5832_v15  ;;  %v3193_v23 = vpop.f32.mrf.mxu1  ;;  %v3327_v17 = vld [vmem:[#allocation2 + $0xd8] sm:$0xff]  ;;  %v3325_v21 = vld [vmem:[#allocation2 + $0xc8] sm:$0xff] }
 0x4fe   : > { %v3446_v43 = vsel %vm243_vm0, %v3403_v29, -inf  ;;  %v3401_v46 = vmul.f32 %v3373_v51, %v6182_v37  ;;  %v3406_v2 = vmul.f32 %v3378_v5, %v6183_v1  ;;  %v3232_v57 = vadd.f32 %v3193_v23, %v5895_v4  ;;  %v6185_v4 = vld [vmem:[#allocation27_spill] sm:$0xff]  ;;  %v6188_v7 = vld [vmem:[#allocation33_spill] sm:$0xff] }
 0x4ff   : > { %v3447_v59 = vmax.f32 %v3439_v26, %v3446_v43  ;;  %v3376_v6 = vmax.f32 %v3348_v16, 0.0  ;;  %v3351_v54 = vadd.f32 %v3323_v24, %v3295_v42  ;;  %v3293_v32 = vadd.f32 %v5778_v12, %v3261_v56  ;;  %v4248_v33 = vpop.f32.mrf.mxu1 }
 0x500   : > { %v3442_v9 = vsel %vm243_vm0, %v3401_v46, -inf  ;;  %v3452_v15 = vsel %vm243_vm0, %v3406_v2, -inf  ;;  %v3266_v50 = vmul.f32 %v5775_v53, %v3234_v11  ;;  %v3264_v20 = vmul.f32 %v5775_v53, %v3232_v57 }
 0x501   : > { %v3003_v14 = vadd.f32 %v3002_v30, %v6184_v10  ;;  %v3443_v31 = vmax.f32 %v3435_v8, %v3442_v9  ;;  %v3453_v19 = vmax.f32 %v5938_v39, %v3452_v15  ;;  %v3404_v26 = vmul.f32 %v3376_v6, %v6185_v4  ;;  %v3196_v0 = vpop.f32.mrf.mxu1  ;;  %v6191_v30 = vld [vmem:[#allocation32_spill] sm:$0xff] }
 0x502   : > { %v3349_v48 = vadd.f32 %v3321_v35, %v3293_v32  ;;  %v3298_v41 = vadd.f32 %v5778_v12, %v3266_v50  ;;  %v3296_v27 = vadd.f32 %v5778_v12, %v3264_v20  ;;  %v3235_v13 = vadd.f32 %v4248_v33, %v3011_v49  ;;  %v6187_v49 = vld [vmem:[#allocation28_spill] sm:$0xff] }
 0x503   : > { %v3448_v52 = vsel %vm243_vm0, %v3404_v26, -inf  ;;  %v3379_v47 = vmax.f32 %v3351_v54, 0.0  ;;  %v3233_v18 = vadd.f32 %v3196_v0, %v3003_v14 }
 0x504   : > { %v3449_v8 = vmax.f32 %v5944_v62, %v3448_v52  ;;  %v3377_v55 = vmax.f32 %v3349_v48, 0.0  ;;  %v3354_v28 = vadd.f32 %v3326_v60, %v3298_v41  ;;  %v3352_v45 = vadd.f32 %v3324_v38, %v3296_v27 }
 0x505   : > { %v3267_v40 = vmul.f32 %v5775_v53, %v3235_v13  ;;  %v3265_v3 = vmul.f32 %v5775_v53, %v3233_v18  ;;  %v3407_v34 = vmul.f32 %v3379_v47, %v6186_v25 }
 0x506   : > { %v3382_v63 = vmax.f32 %v3354_v28, 0.0  ;;  %v3380_v39 = vmax.f32 %v3352_v45, 0.0  ;;  %v3405_v36 = vmul.f32 %v3377_v55, %v6187_v49 }
 0x507   : > { %v3299_v61 = vadd.f32 %v5778_v12, %v3267_v40  ;;  %v3297_v22 = vadd.f32 %v5778_v12, %v3265_v3  ;;  %v3454_v53 = vsel %vm243_vm0, %v3407_v34, -inf  ;;  %v6190_v12 = vld [vmem:[#allocation34_spill] sm:$0xff] }
 0x508   : > { %v3410_v62 = vmul.f32 %v3382_v63, %v6188_v7  ;;  %v3408_v29 = vmul.f32 %v3380_v39, %v6189_v44  ;;  %v3450_v58 = vsel %vm243_vm0, %v3405_v36, -inf  ;;  %v3455_v37 = vmax.f32 %v3447_v59, %v3454_v53 }
 0x509   : > { %v3355_v51 = vadd.f32 %v3327_v17, %v3299_v61  ;;  %v3353_v5 = vadd.f32 %v3325_v21, %v3297_v22  ;;  %v3451_v46 = vmax.f32 %v3443_v31, %v3450_v58 }
 0x50a   : > { %v3460_v56 = vsel %vm243_vm0, %v3410_v62, -inf  ;;  %v3456_v11 = vsel %vm243_vm0, %v3408_v29, -inf }
 0x50b   : > { %v3383_v16 = vmax.f32 %v3355_v51, 0.0  ;;  %v3381_v42 = vmax.f32 %v3353_v5, 0.0  ;;  %v3461_v24 = vmax.f32 %v3453_v19, %v3460_v56  ;;  %v3457_v57 = vmax.f32 %v3449_v8, %v3456_v11 }
 0x50d   : > { %v3411_v23 = vmul.f32 %v3383_v16, %v6190_v12  ;;  %v3409_v43 = vmul.f32 %v3381_v42, %v6191_v30 }
 0x50f   : > { %v3462_v1 = vsel %vm243_vm0, %v3411_v23, -inf  ;;  %v3458_v2 = vsel %vm243_vm0, %v3409_v43, -inf }
 0x510   : > { %v3463_v6 = vmax.f32 %v3455_v37, %v3462_v1  ;;  %v3459_v54 = vmax.f32 %v3451_v46, %v3458_v2 }
 0x512   : > { %v3465_v32 = vmax.f32 %v3461_v24, %v3463_v6  ;;  %v3464_v33 = vmax.f32 %v3457_v57, %v3459_v54 }
 0x514   : > { %v3466_v9 = vmax.f32 %v3464_v33, %v3465_v32 }
 0x516   : > { %v3467_v15 = vrot.slane %v3466_v9, 4 }
 0x518   : > { %v3468_v50 = vmax.f32 %v3466_v9, %v3467_v15 }
 0x51a   : > { %v3469_v20 = vrot.slane %v3468_v50, 2 }
 0x51c   : > { %v3470_v10 = vmax.f32 %v3468_v50, %v3469_v20 }
 0x51e   : > { %v3471_v59 = vrot.slane %v3470_v10, 1 }
 0x520   : > { %v3472_v14 = vmax.f32 %v3470_v10, %v3471_v59 }
 0x522   : > { %3474 = vst.msk [vmem:[%s231_s8] sm:$0x1] %vm3473_vm3, %v3472_v14 }
 0x523   : > { %4360 = shalt.err (!%p4357_p3)
}
 0x524   : > { %s4361_s17 = scalar_lea.hbm %s3486_s14, 16  ;;  %s4365_s30 = scalar_lea.hbm %s6021_s5, 32 }
 0x525   : > { %p4362_p4 = scmp.ne.s32.totalorder %s3486_s14, %s4361_s17  ;;  %p4366_p9 = scmp.lt.s32.totalorder %s3486_s14, %s6021_s5 }
 0x526   : > { %p4367_p10 = scmp.lt.s32.totalorder %s4365_s30, %s4361_s17 }
 0x527   : > { %p4363_p7 = pnand %p4362_p4, %p4482_p5 }
 0x528   : > { %p4368_p11 = por %p4367_p10, %p4366_p9 }
 0x529   : > { %p4364_p8 = pneg %p4363_p7 }
 0x52b   : > { %p4369_p12 = pnand %p4368_p11, %p4364_p8 }
 0x52d   : > { %4372 = shalt.err (!%p4369_p12)
}
 0x52e   : > { %4262 = dma.vmem_to_hbm [thread:$0]  (%p4482_p5), %s3489_s11, 16, %s3486_s14, %s3476_s15  }
 0x52f PF: > { %p4268_p13 = scmp.ge.s32.totalorder %s4407_s21, 2  ;;  %s3500_s7 = sand.u32 1, %s4395_s18  }
 0x530   : > { %s3501_s8 = scalar_lea.sflag [#allocation5], %s3500_s7 }
 0x531   : > { %p4265_p0 = pnand %p4268_p13, %p4486_p6 }
 0x533   : > { %p4266_p1 = pneg %p4265_p0 }
 0x535   : > { %4390 = dma.done.wait (%p4266_p1), %s3501_s8, 16  }
 0x536   : > { %4392 = vsyncadd (%p4266_p1), %s3501_s8, 4294967280  ;;  %p15_p2 = scmp.ge.s32.totalorder %s4469_s24, 4   ;;  %s6192_s18 = smov %s4399_s19 }
 0x537   : > { %s6193_s19 = smov %s4403_s20  ;;  %s6194_s20 = smov %s4480_s27 }
 0x538   : > { %s6195_s21 = smov %s4469_s24  ;;  %17 = sbr.rel (!%p15_p2) target bundleno = 3 (0x3), region = 85 }
 0x53d   :  { %3505 = vsyncpa [#allocation5], 1 }
 0x53e   :  { %3507 = vsyncpa [#allocation5 + $0x1], 1 }

</bundles_post_ra>
